<compile_context>
chip_gen: v7x
topology: tpu7x:2x2x1
jax: 0.10.0
libtpu: 0.0.40
codegen_flags: <defaults>
</compile_context>

<pallas_src>
import functools

import jax
import jax.numpy as jnp
from jax import lax
from jax.experimental import pallas as pl
from jax.experimental.pallas import tpu as pltpu

LRELU_SLOPE = 0.1
DILATIONS = (1, 3, 5)
KSIZE = 3
HALO = 128  # lane-aligned halo per side
# Total receptive field of the whole block, per side (d+1 per conv pair).
_RECEPTIVE = sum(d + 1 for d in DILATIONS)  # = 12
# Halo must cover the receptive field AND keep roll-wrap garbage (max(d) lanes
# at the extended-tile edge, propagating at most _RECEPTIVE further) away from
# the centre slab.  128 >> 29, but keep the invariant explicit.
assert HALO >= 2 * _RECEPTIVE + max(DILATIONS), "HALO too small for receptive field"


def _leaky_relu(x):
    # max(x, 0.1*x) == leaky_relu for slope < 1; 2 VALU ops.
    return jnp.maximum(x, LRELU_SLOPE * x)


def _round_up(n, m):
    return (n + m - 1) // m * m


def _make_kernel(C, TT, T_valid):
    """Kernel closure over static channel count, time-tile size and true T."""
    TE = TT + 2 * HALO  # extended (haloed) tile width

    def kernel(xl_ref, xc_ref, xr_ref, w1_ref, b1_ref, w2_ref, b2_ref, o_ref):
        ti = pl.program_id(1)

        # Extended tile: [left halo | centre | right halo]; lane-aligned concat.
        xe = jnp.concatenate(
            [xl_ref[0], xc_ref[0], xr_ref[0]], axis=-1).astype(jnp.float32)

        # Global position of every column and a single validity mask, computed
        # once per grid step.  Zeroing each conv's *input* at invalid positions
        # is exactly Conv1d zero padding (and also neutralizes clamped-halo /
        # right-pad garbage before it can enter any matmul).
        pos = lax.broadcasted_iota(jnp.int32, (C, TE), 1) + (ti * TT - HALO)
        valid = ((pos >= 0) & (pos < T_valid)).astype(jnp.float32)

        def conv(xin, w_ref, b_ref, s, d):
            # Taps via static lane rotation (XLU); wrap-around only pollutes
            # columns within max(d) lanes of the extended-tile edge.
            tap_m = pltpu.roll(xin, d, axis=1)        # col c <- xin[c - d]
            tap_p = pltpu.roll(xin, TE - d, axis=1)   # col c <- xin[c + d]
            # Three accumulating (C,C)@(C,TE) MXU matmuls, bf16 in / f32 acc.
            y = jnp.dot(w_ref[s, 0], tap_m.astype(jnp.bfloat16),
                        preferred_element_type=jnp.float32)
            y = y + jnp.dot(w_ref[s, 1], xin.astype(jnp.bfloat16),
                            preferred_element_type=jnp.float32)
            y = y + jnp.dot(w_ref[s, 2], tap_p.astype(jnp.bfloat16),
                            preferred_element_type=jnp.float32)
            return y + b_ref[s]  # (C, 1) bias broadcasts over lanes

        x = xe
        for s, d in enumerate(DILATIONS):
            xt = _leaky_relu(x) * valid
            xt = conv(xt, w1_ref, b1_ref, s, d)
            xt = _leaky_relu(xt) * valid
            xt = conv(xt, w2_ref, b2_ref, s, 1)
            x = xt + x

        # Write back only the centre slab (lane-aligned static slice).
        o_ref[0] = x[:, HALO:HALO + TT].astype(o_ref.dtype)

    return kernel


def resblock1_pallas(x, w1, b1, w2, b2, *, tile_t=1024):
    """ResBlock1 forward.

    x : (B, C, T) float32
    w1, w2 : (3, C_out, C_in, K) weight-norm-folded conv weights
    b1, b2 : (3, C) biases
    """
    B, C, T = x.shape

    TT = min(_round_up(tile_t, 128), _round_up(T, 128))
    TT = max(TT, HALO)
    T_round = _round_up(T, TT)
    nt = T_round // TT
    nl = TT // HALO                      # halo-sized blocks per tile
    n_halo_blocks = T_round // HALO

    # Tap-major weight layout: (3, C_out, C_in, K) -> (3, K, C_out, C_in) so
    # each conv is three independent (C,C) matmuls; bf16 operands for the MXU.
    w1_k = jnp.transpose(w1, (0, 3, 1, 2)).astype(jnp.bfloat16)
    w2_k = jnp.transpose(w2, (0, 3, 1, 2)).astype(jnp.bfloat16)
    b1_k = b1[:, :, None].astype(jnp.float32)
    b2_k = b2[:, :, None].astype(jnp.float32)

    # No left/right halo padding needed (halo indices are clamped below);
    # only pad the remainder on the right when T is not tile-aligned.
    x_in = x.astype(jnp.float32)
    if T_round != T:
        x_in = jnp.pad(x_in, ((0, 0), (0, 0), (0, T_round - T)))

    kernel = _make_kernel(C, TT, T)

    out = pl.pallas_call(
        kernel,
        out_shape=jax.ShapeDtypeStruct((B, C, T_round), jnp.float32),
        grid=(B, nt),
        in_specs=[
            # left halo: the 128 columns before this tile (clamped at t=0;
            # out-of-range contents are killed by the in-kernel pos mask).
            pl.BlockSpec((1, C, HALO),
                         lambda b, i: (b, 0, jnp.maximum(i * nl - 1, 0))),
            # centre tile
            pl.BlockSpec((1, C, TT), lambda b, i: (b, 0, i)),
            # right halo: the 128 columns after this tile (clamped at the end).
            pl.BlockSpec((1, C, HALO),
                         lambda b, i: (b, 0,
                                       jnp.minimum((i + 1) * nl,
                                                   n_halo_blocks - 1))),
            # grid-constant fused conv weights / biases (DMA'd once).
            pl.BlockSpec((3, KSIZE, C, C), lambda b, i: (0, 0, 0, 0)),
            pl.BlockSpec((3, C, 1), lambda b, i: (0, 0, 0)),
            pl.BlockSpec((3, KSIZE, C, C), lambda b, i: (0, 0, 0, 0)),
            pl.BlockSpec((3, C, 1), lambda b, i: (0, 0, 0)),
        ],
        out_specs=pl.BlockSpec((1, C, TT), lambda b, i: (b, 0, i)),
        compiler_params=pltpu.CompilerParams(
            dimension_semantics=("parallel", "parallel"),
            vmem_limit_bytes=64 * 1024 * 1024),
    )(x_in, x_in, x_in, w1_k, b1_k, w2_k, b2_k)

    return out if T_round == T else out[:, :, :T]


# ---------------- parameter construction (weight-norm folded) ----------------

def make_weightnorm_conv_params(key, n_layers, channels, ksize):
    kv, kg, kb = jax.random.split(key, 3)
    # PyTorch init_weights: normal(mean=0, std=0.01) on the direction tensor.
    v = 0.01 * jax.random.normal(
        kv, (n_layers, channels, channels, ksize), jnp.float32)
    # weight_norm: w = g * v / ||v|| (norm over all dims except out-channel);
    # row norms end up == g (O(1)) so the numerical check is non-trivial.
    g = 0.5 + jax.random.uniform(kg, (n_layers, channels), dtype=jnp.float32)
    norm = jnp.sqrt(jnp.sum(v * v, axis=(2, 3)) + 1e-12)
    w = v * (g / norm)[:, :, None, None]
    b = 0.1 * jax.random.normal(kb, (n_layers, channels), jnp.float32)
    return w, b


# ---------------- pure-JAX reference (for correctness check) ----------------

def conv1d_ref(x, w, b, dil):
    pad = (KSIZE * dil - dil) // 2
    y = lax.conv_general_dilated(
        x, w, window_strides=(1,), padding=[(pad, pad)],
        rhs_dilation=(dil,), dimension_numbers=("NCH", "OIH", "NCH"))
    return y + b[None, :, None]


def _leaky_relu_ref(x):
    return jnp.where(x > 0, x, LRELU_SLOPE * x)


def resblock1_ref(x, w1, b1, w2, b2):
    for i, d in enumerate(DILATIONS):
        xt = _leaky_relu_ref(x)
        xt = conv1d_ref(xt, w1[i], b1[i], d)
        xt = _leaky_relu_ref(xt)
        xt = conv1d_ref(xt, w2[i], b2[i], 1)
        x = xt + x
    return x


if __name__ == "__main__":
    key = jax.random.PRNGKey(0)

    # Two small configs:
    #  1) 3 time tiles -> exercises left edge, interior tile, right edge and
    #     cross-tile halos.
    #  2) single tile with a non-aligned T -> exercises both clamped halos and
    #     the remainder right-pad path.
    configs = [
        (2, 32, 384, 128),
        (1, 16, 200, 256),
    ]

    for (B, C, T, tile_t) in configs:
        kx, k1, k2, key = jax.random.split(key, 4)
        x = jax.random.normal(kx, (B, C, T), jnp.float32)
        w1, b1 = make_weightnorm_conv_params(k1, len(DILATIONS), C, KSIZE)
        w2, b2 = make_weightnorm_conv_params(k2, len(DILATIONS), C, KSIZE)

        out = resblock1_pallas(x, w1, b1, w2, b2, tile_t=tile_t)
        out = jax.block_until_ready(out)

        ref = resblock1_ref(x, w1, b1, w2, b2)
        assert out.shape == (B, C, T) and out.dtype == jnp.float32

        # bf16 MXU operands (f32 accumulation / residual) vs pure-f32 reference
        # -> sub-1% relative error expected; structural bugs would be O(30%+).
        max_err = float(jnp.max(jnp.abs(out - ref)))
        scale = float(jnp.max(jnp.abs(ref)))
        assert max_err < 0.05 * max(1.0, scale), (
            f"cfg {(B, C, T, tile_t)}: max abs err {max_err} (scale {scale})")

    print("KERNEL_OK")
</pallas_src>

<mosaic_0001>
module attributes {stable_mosaic.version = 11 : i64} {
  func.func @kernel(%arg0: i32, %arg1: i32, %arg2: memref<1x32x128xf32, #tpu.memory_space<vmem>>, %arg3: memref<1x32x128xf32, #tpu.memory_space<vmem>>, %arg4: memref<1x32x128xf32, #tpu.memory_space<vmem>>, %arg5: memref<3x3x32x32xbf16, #tpu.memory_space<vmem>>, %arg6: memref<3x32x1xf32, #tpu.memory_space<vmem>>, %arg7: memref<3x3x32x32xbf16, #tpu.memory_space<vmem>>, %arg8: memref<3x32x1xf32, #tpu.memory_space<vmem>>, %arg9: memref<1x32x128xf32, #tpu.memory_space<vmem>>) attributes {dimension_semantics = [#tpu.dimension_semantics<parallel>, #tpu.dimension_semantics<parallel>], iteration_bounds = array<i64: 2, 3>, scalar_prefetch = 0 : i64, scratch_operands = 0 : i64, tpu.core_type = #tpu.core_type<tc>, window_params = [{transform_indices = @transform_0, window_bounds = array<i64: 1, 32, 128>}, {transform_indices = @transform_1, window_bounds = array<i64: 1, 32, 128>}, {transform_indices = @transform_2, window_bounds = array<i64: 1, 32, 128>}, {pipeline_mode = #tpu.pipeline_mode<synchronous>, transform_indices = @transform_3, window_bounds = array<i64: 3, 3, 32, 32>}, {pipeline_mode = #tpu.pipeline_mode<synchronous>, transform_indices = @transform_4, window_bounds = array<i64: 3, 32, 1>}, {pipeline_mode = #tpu.pipeline_mode<synchronous>, transform_indices = @transform_5, window_bounds = array<i64: 3, 3, 32, 32>}, {pipeline_mode = #tpu.pipeline_mode<synchronous>, transform_indices = @transform_6, window_bounds = array<i64: 3, 32, 1>}, {transform_indices = @transform_7, window_bounds = array<i64: 1, 32, 128>}]} {
    %c0 = arith.constant 0 : index
    %c0_0 = arith.constant 0 : index
    %c0_1 = arith.constant 0 : index
    %0 = vector.load %arg2[%c0, %c0_0, %c0_1] : memref<1x32x128xf32, #tpu.memory_space<vmem>>, vector<1x32x128xf32>
    %1 = vector.shape_cast %0 : vector<1x32x128xf32> to vector<32x128xf32>
    %c0_2 = arith.constant 0 : index
    %c0_3 = arith.constant 0 : index
    %c0_4 = arith.constant 0 : index
    %2 = vector.load %arg3[%c0_2, %c0_3, %c0_4] : memref<1x32x128xf32, #tpu.memory_space<vmem>>, vector<1x32x128xf32>
    %3 = vector.shape_cast %2 : vector<1x32x128xf32> to vector<32x128xf32>
    %c0_5 = arith.constant 0 : index
    %c0_6 = arith.constant 0 : index
    %c0_7 = arith.constant 0 : index
    %4 = vector.load %arg4[%c0_5, %c0_6, %c0_7] : memref<1x32x128xf32, #tpu.memory_space<vmem>>, vector<1x32x128xf32>
    %5 = vector.shape_cast %4 : vector<1x32x128xf32> to vector<32x128xf32>
    %6 = tpu.concatenate %1, %3, %5 in 1 : vector<32x128xf32>, vector<32x128xf32>, vector<32x128xf32> -> vector<32x384xf32>
    %7 = tpu.iota {dimensions = array<i32: 1>} : vector<32x384xi32>
    %c128_i32 = arith.constant 128 : i32
    %8 = arith.muli %arg1, %c128_i32 : i32
    %c128_i32_8 = arith.constant 128 : i32
    %9 = arith.subi %8, %c128_i32_8 : i32
    %10 = vector.broadcast %9 : i32 to vector<32x384xi32>
    %11 = arith.addi %7, %10 : vector<32x384xi32>
    %c0_i32 = arith.constant 0 : i32
    %12 = vector.broadcast %c0_i32 : i32 to vector<32x384xi32>
    %13 = arith.cmpi sge, %11, %12 : vector<32x384xi32>
    %c384_i32 = arith.constant 384 : i32
    %14 = vector.broadcast %c384_i32 : i32 to vector<32x384xi32>
    %15 = arith.cmpi slt, %11, %14 : vector<32x384xi32>
    %16 = arith.andi %13, %15 : vector<32x384xi1>
    %17 = arith.extui %16 : vector<32x384xi1> to vector<32x384xi32>
    %18 = arith.sitofp %17 : vector<32x384xi32> to vector<32x384xf32>
    %cst = arith.constant 1.000000e-01 : f32
    %19 = vector.broadcast %cst : f32 to vector<32x384xf32>
    %20 = arith.mulf %19, %6 : vector<32x384xf32>
    %21 = arith.maximumf %6, %20 : vector<32x384xf32>
    %22 = arith.mulf %21, %18 : vector<32x384xf32>
    %c1_i32 = arith.constant 1 : i32
    %23 = tpu.dynamic_rotate %22 by %c1_i32 dim 1 : vector<32x384xf32>, i32 -> vector<32x384xf32>
    %c383_i32 = arith.constant 383 : i32
    %24 = tpu.dynamic_rotate %22 by %c383_i32 dim 1 : vector<32x384xf32>, i32 -> vector<32x384xf32>
    %c0_9 = arith.constant 0 : index
    %c0_10 = arith.constant 0 : index
    %c0_11 = arith.constant 0 : index
    %c0_12 = arith.constant 0 : index
    %25 = vector.load %arg5[%c0_9, %c0_10, %c0_11, %c0_12] : memref<3x3x32x32xbf16, #tpu.memory_space<vmem>>, vector<1x1x32x32xbf16>
    %26 = vector.shape_cast %25 : vector<1x1x32x32xbf16> to vector<32x32xbf16>
    %27 = arith.truncf %23 : vector<32x384xf32> to vector<32x384xbf16>
    %cst_13 = arith.constant dense<0.000000e+00> : vector<32x384xf32>
    %28 = tpu.matmul %26, %27, %cst_13 {dimension_numbers = #tpu.dot_dimension_numbers<[1], [0], [0], [1], [0, 0, 1, 1], [], []>} : vector<32x32xbf16>, vector<32x384xbf16>, vector<32x384xf32> -> vector<32x384xf32>
    %c0_14 = arith.constant 0 : index
    %c1 = arith.constant 1 : index
    %c0_15 = arith.constant 0 : index
    %c0_16 = arith.constant 0 : index
    %29 = vector.load %arg5[%c0_14, %c1, %c0_15, %c0_16] : memref<3x3x32x32xbf16, #tpu.memory_space<vmem>>, vector<1x1x32x32xbf16>
    %30 = vector.shape_cast %29 : vector<1x1x32x32xbf16> to vector<32x32xbf16>
    %31 = arith.truncf %22 : vector<32x384xf32> to vector<32x384xbf16>
    %cst_17 = arith.constant dense<0.000000e+00> : vector<32x384xf32>
    %32 = tpu.matmul %30, %31, %cst_17 {dimension_numbers = #tpu.dot_dimension_numbers<[1], [0], [0], [1], [0, 0, 1, 1], [], []>} : vector<32x32xbf16>, vector<32x384xbf16>, vector<32x384xf32> -> vector<32x384xf32>
    %33 = arith.addf %28, %32 : vector<32x384xf32>
    %c0_18 = arith.constant 0 : index
    %c2 = arith.constant 2 : index
    %c0_19 = arith.constant 0 : index
    %c0_20 = arith.constant 0 : index
    %34 = vector.load %arg5[%c0_18, %c2, %c0_19, %c0_20] : memref<3x3x32x32xbf16, #tpu.memory_space<vmem>>, vector<1x1x32x32xbf16>
    %35 = vector.shape_cast %34 : vector<1x1x32x32xbf16> to vector<32x32xbf16>
    %36 = arith.truncf %24 : vector<32x384xf32> to vector<32x384xbf16>
    %cst_21 = arith.constant dense<0.000000e+00> : vector<32x384xf32>
    %37 = tpu.matmul %35, %36, %cst_21 {dimension_numbers = #tpu.dot_dimension_numbers<[1], [0], [0], [1], [0, 0, 1, 1], [], []>} : vector<32x32xbf16>, vector<32x384xbf16>, vector<32x384xf32> -> vector<32x384xf32>
    %38 = arith.addf %33, %37 : vector<32x384xf32>
    %c0_22 = arith.constant 0 : index
    %c0_23 = arith.constant 0 : index
    %c0_24 = arith.constant 0 : index
    %39 = vector.load %arg6[%c0_22, %c0_23, %c0_24] : memref<3x32x1xf32, #tpu.memory_space<vmem>>, vector<1x32x1xf32>
    %40 = vector.shape_cast %39 : vector<1x32x1xf32> to vector<32x1xf32>
    %41 = vector.broadcast %40 : vector<32x1xf32> to vector<32x384xf32>
    %42 = arith.addf %38, %41 : vector<32x384xf32>
    %cst_25 = arith.constant 1.000000e-01 : f32
    %43 = vector.broadcast %cst_25 : f32 to vector<32x384xf32>
    %44 = arith.mulf %43, %42 : vector<32x384xf32>
    %45 = arith.maximumf %42, %44 : vector<32x384xf32>
    %46 = arith.mulf %45, %18 : vector<32x384xf32>
    %c1_i32_26 = arith.constant 1 : i32
    %47 = tpu.dynamic_rotate %46 by %c1_i32_26 dim 1 : vector<32x384xf32>, i32 -> vector<32x384xf32>
    %c383_i32_27 = arith.constant 383 : i32
    %48 = tpu.dynamic_rotate %46 by %c383_i32_27 dim 1 : vector<32x384xf32>, i32 -> vector<32x384xf32>
    %c0_28 = arith.constant 0 : index
    %c0_29 = arith.constant 0 : index
    %c0_30 = arith.constant 0 : index
    %c0_31 = arith.constant 0 : index
    %49 = vector.load %arg7[%c0_28, %c0_29, %c0_30, %c0_31] : memref<3x3x32x32xbf16, #tpu.memory_space<vmem>>, vector<1x1x32x32xbf16>
    %50 = vector.shape_cast %49 : vector<1x1x32x32xbf16> to vector<32x32xbf16>
    %51 = arith.truncf %47 : vector<32x384xf32> to vector<32x384xbf16>
    %cst_32 = arith.constant dense<0.000000e+00> : vector<32x384xf32>
    %52 = tpu.matmul %50, %51, %cst_32 {dimension_numbers = #tpu.dot_dimension_numbers<[1], [0], [0], [1], [0, 0, 1, 1], [], []>} : vector<32x32xbf16>, vector<32x384xbf16>, vector<32x384xf32> -> vector<32x384xf32>
    %c0_33 = arith.constant 0 : index
    %c1_34 = arith.constant 1 : index
    %c0_35 = arith.constant 0 : index
    %c0_36 = arith.constant 0 : index
    %53 = vector.load %arg7[%c0_33, %c1_34, %c0_35, %c0_36] : memref<3x3x32x32xbf16, #tpu.memory_space<vmem>>, vector<1x1x32x32xbf16>
    %54 = vector.shape_cast %53 : vector<1x1x32x32xbf16> to vector<32x32xbf16>
    %55 = arith.truncf %46 : vector<32x384xf32> to vector<32x384xbf16>
    %cst_37 = arith.constant dense<0.000000e+00> : vector<32x384xf32>
    %56 = tpu.matmul %54, %55, %cst_37 {dimension_numbers = #tpu.dot_dimension_numbers<[1], [0], [0], [1], [0, 0, 1, 1], [], []>} : vector<32x32xbf16>, vector<32x384xbf16>, vector<32x384xf32> -> vector<32x384xf32>
    %57 = arith.addf %52, %56 : vector<32x384xf32>
    %c0_38 = arith.constant 0 : index
    %c2_39 = arith.constant 2 : index
    %c0_40 = arith.constant 0 : index
    %c0_41 = arith.constant 0 : index
    %58 = vector.load %arg7[%c0_38, %c2_39, %c0_40, %c0_41] : memref<3x3x32x32xbf16, #tpu.memory_space<vmem>>, vector<1x1x32x32xbf16>
    %59 = vector.shape_cast %58 : vector<1x1x32x32xbf16> to vector<32x32xbf16>
    %60 = arith.truncf %48 : vector<32x384xf32> to vector<32x384xbf16>
    %cst_42 = arith.constant dense<0.000000e+00> : vector<32x384xf32>
    %61 = tpu.matmul %59, %60, %cst_42 {dimension_numbers = #tpu.dot_dimension_numbers<[1], [0], [0], [1], [0, 0, 1, 1], [], []>} : vector<32x32xbf16>, vector<32x384xbf16>, vector<32x384xf32> -> vector<32x384xf32>
    %62 = arith.addf %57, %61 : vector<32x384xf32>
    %c0_43 = arith.constant 0 : index
    %c0_44 = arith.constant 0 : index
    %c0_45 = arith.constant 0 : index
    %63 = vector.load %arg8[%c0_43, %c0_44, %c0_45] : memref<3x32x1xf32, #tpu.memory_space<vmem>>, vector<1x32x1xf32>
    %64 = vector.shape_cast %63 : vector<1x32x1xf32> to vector<32x1xf32>
    %65 = vector.broadcast %64 : vector<32x1xf32> to vector<32x384xf32>
    %66 = arith.addf %62, %65 : vector<32x384xf32>
    %67 = arith.addf %66, %6 : vector<32x384xf32>
    %cst_46 = arith.constant 1.000000e-01 : f32
    %68 = vector.broadcast %cst_46 : f32 to vector<32x384xf32>
    %69 = arith.mulf %68, %67 : vector<32x384xf32>
    %70 = arith.maximumf %67, %69 : vector<32x384xf32>
    %71 = arith.mulf %70, %18 : vector<32x384xf32>
    %c3_i32 = arith.constant 3 : i32
    %72 = tpu.dynamic_rotate %71 by %c3_i32 dim 1 : vector<32x384xf32>, i32 -> vector<32x384xf32>
    %c381_i32 = arith.constant 381 : i32
    %73 = tpu.dynamic_rotate %71 by %c381_i32 dim 1 : vector<32x384xf32>, i32 -> vector<32x384xf32>
    %c1_47 = arith.constant 1 : index
    %c0_48 = arith.constant 0 : index
    %c0_49 = arith.constant 0 : index
    %c0_50 = arith.constant 0 : index
    %74 = vector.load %arg5[%c1_47, %c0_48, %c0_49, %c0_50] : memref<3x3x32x32xbf16, #tpu.memory_space<vmem>>, vector<1x1x32x32xbf16>
    %75 = vector.shape_cast %74 : vector<1x1x32x32xbf16> to vector<32x32xbf16>
    %76 = arith.truncf %72 : vector<32x384xf32> to vector<32x384xbf16>
    %cst_51 = arith.constant dense<0.000000e+00> : vector<32x384xf32>
    %77 = tpu.matmul %75, %76, %cst_51 {dimension_numbers = #tpu.dot_dimension_numbers<[1], [0], [0], [1], [0, 0, 1, 1], [], []>} : vector<32x32xbf16>, vector<32x384xbf16>, vector<32x384xf32> -> vector<32x384xf32>
    %c1_52 = arith.constant 1 : index
    %c1_53 = arith.constant 1 : index
    %c0_54 = arith.constant 0 : index
    %c0_55 = arith.constant 0 : index
    %78 = vector.load %arg5[%c1_52, %c1_53, %c0_54, %c0_55] : memref<3x3x32x32xbf16, #tpu.memory_space<vmem>>, vector<1x1x32x32xbf16>
    %79 = vector.shape_cast %78 : vector<1x1x32x32xbf16> to vector<32x32xbf16>
    %80 = arith.truncf %71 : vector<32x384xf32> to vector<32x384xbf16>
    %cst_56 = arith.constant dense<0.000000e+00> : vector<32x384xf32>
    %81 = tpu.matmul %79, %80, %cst_56 {dimension_numbers = #tpu.dot_dimension_numbers<[1], [0], [0], [1], [0, 0, 1, 1], [], []>} : vector<32x32xbf16>, vector<32x384xbf16>, vector<32x384xf32> -> vector<32x384xf32>
    %82 = arith.addf %77, %81 : vector<32x384xf32>
    %c1_57 = arith.constant 1 : index
    %c2_58 = arith.constant 2 : index
    %c0_59 = arith.constant 0 : index
    %c0_60 = arith.constant 0 : index
    %83 = vector.load %arg5[%c1_57, %c2_58, %c0_59, %c0_60] : memref<3x3x32x32xbf16, #tpu.memory_space<vmem>>, vector<1x1x32x32xbf16>
    %84 = vector.shape_cast %83 : vector<1x1x32x32xbf16> to vector<32x32xbf16>
    %85 = arith.truncf %73 : vector<32x384xf32> to vector<32x384xbf16>
    %cst_61 = arith.constant dense<0.000000e+00> : vector<32x384xf32>
    %86 = tpu.matmul %84, %85, %cst_61 {dimension_numbers = #tpu.dot_dimension_numbers<[1], [0], [0], [1], [0, 0, 1, 1], [], []>} : vector<32x32xbf16>, vector<32x384xbf16>, vector<32x384xf32> -> vector<32x384xf32>
    %87 = arith.addf %82, %86 : vector<32x384xf32>
    %c1_62 = arith.constant 1 : index
    %c0_63 = arith.constant 0 : index
    %c0_64 = arith.constant 0 : index
    %88 = vector.load %arg6[%c1_62, %c0_63, %c0_64] : memref<3x32x1xf32, #tpu.memory_space<vmem>>, vector<1x32x1xf32>
    %89 = vector.shape_cast %88 : vector<1x32x1xf32> to vector<32x1xf32>
    %90 = vector.broadcast %89 : vector<32x1xf32> to vector<32x384xf32>
    %91 = arith.addf %87, %90 : vector<32x384xf32>
    %cst_65 = arith.constant 1.000000e-01 : f32
    %92 = vector.broadcast %cst_65 : f32 to vector<32x384xf32>
    %93 = arith.mulf %92, %91 : vector<32x384xf32>
    %94 = arith.maximumf %91, %93 : vector<32x384xf32>
    %95 = arith.mulf %94, %18 : vector<32x384xf32>
    %c1_i32_66 = arith.constant 1 : i32
    %96 = tpu.dynamic_rotate %95 by %c1_i32_66 dim 1 : vector<32x384xf32>, i32 -> vector<32x384xf32>
    %c383_i32_67 = arith.constant 383 : i32
    %97 = tpu.dynamic_rotate %95 by %c383_i32_67 dim 1 : vector<32x384xf32>, i32 -> vector<32x384xf32>
    %c1_68 = arith.constant 1 : index
    %c0_69 = arith.constant 0 : index
    %c0_70 = arith.constant 0 : index
    %c0_71 = arith.constant 0 : index
    %98 = vector.load %arg7[%c1_68, %c0_69, %c0_70, %c0_71] : memref<3x3x32x32xbf16, #tpu.memory_space<vmem>>, vector<1x1x32x32xbf16>
    %99 = vector.shape_cast %98 : vector<1x1x32x32xbf16> to vector<32x32xbf16>
    %100 = arith.truncf %96 : vector<32x384xf32> to vector<32x384xbf16>
    %cst_72 = arith.constant dense<0.000000e+00> : vector<32x384xf32>
    %101 = tpu.matmul %99, %100, %cst_72 {dimension_numbers = #tpu.dot_dimension_numbers<[1], [0], [0], [1], [0, 0, 1, 1], [], []>} : vector<32x32xbf16>, vector<32x384xbf16>, vector<32x384xf32> -> vector<32x384xf32>
    %c1_73 = arith.constant 1 : index
    %c1_74 = arith.constant 1 : index
    %c0_75 = arith.constant 0 : index
    %c0_76 = arith.constant 0 : index
    %102 = vector.load %arg7[%c1_73, %c1_74, %c0_75, %c0_76] : memref<3x3x32x32xbf16, #tpu.memory_space<vmem>>, vector<1x1x32x32xbf16>
    %103 = vector.shape_cast %102 : vector<1x1x32x32xbf16> to vector<32x32xbf16>
    %104 = arith.truncf %95 : vector<32x384xf32> to vector<32x384xbf16>
    %cst_77 = arith.constant dense<0.000000e+00> : vector<32x384xf32>
    %105 = tpu.matmul %103, %104, %cst_77 {dimension_numbers = #tpu.dot_dimension_numbers<[1], [0], [0], [1], [0, 0, 1, 1], [], []>} : vector<32x32xbf16>, vector<32x384xbf16>, vector<32x384xf32> -> vector<32x384xf32>
    %106 = arith.addf %101, %105 : vector<32x384xf32>
    %c1_78 = arith.constant 1 : index
    %c2_79 = arith.constant 2 : index
    %c0_80 = arith.constant 0 : index
    %c0_81 = arith.constant 0 : index
    %107 = vector.load %arg7[%c1_78, %c2_79, %c0_80, %c0_81] : memref<3x3x32x32xbf16, #tpu.memory_space<vmem>>, vector<1x1x32x32xbf16>
    %108 = vector.shape_cast %107 : vector<1x1x32x32xbf16> to vector<32x32xbf16>
    %109 = arith.truncf %97 : vector<32x384xf32> to vector<32x384xbf16>
    %cst_82 = arith.constant dense<0.000000e+00> : vector<32x384xf32>
    %110 = tpu.matmul %108, %109, %cst_82 {dimension_numbers = #tpu.dot_dimension_numbers<[1], [0], [0], [1], [0, 0, 1, 1], [], []>} : vector<32x32xbf16>, vector<32x384xbf16>, vector<32x384xf32> -> vector<32x384xf32>
    %111 = arith.addf %106, %110 : vector<32x384xf32>
    %c1_83 = arith.constant 1 : index
    %c0_84 = arith.constant 0 : index
    %c0_85 = arith.constant 0 : index
    %112 = vector.load %arg8[%c1_83, %c0_84, %c0_85] : memref<3x32x1xf32, #tpu.memory_space<vmem>>, vector<1x32x1xf32>
    %113 = vector.shape_cast %112 : vector<1x32x1xf32> to vector<32x1xf32>
    %114 = vector.broadcast %113 : vector<32x1xf32> to vector<32x384xf32>
    %115 = arith.addf %111, %114 : vector<32x384xf32>
    %116 = arith.addf %115, %67 : vector<32x384xf32>
    %cst_86 = arith.constant 1.000000e-01 : f32
    %117 = vector.broadcast %cst_86 : f32 to vector<32x384xf32>
    %118 = arith.mulf %117, %116 : vector<32x384xf32>
    %119 = arith.maximumf %116, %118 : vector<32x384xf32>
    %120 = arith.mulf %119, %18 : vector<32x384xf32>
    %c5_i32 = arith.constant 5 : i32
    %121 = tpu.dynamic_rotate %120 by %c5_i32 dim 1 : vector<32x384xf32>, i32 -> vector<32x384xf32>
    %c379_i32 = arith.constant 379 : i32
    %122 = tpu.dynamic_rotate %120 by %c379_i32 dim 1 : vector<32x384xf32>, i32 -> vector<32x384xf32>
    %c2_87 = arith.constant 2 : index
    %c0_88 = arith.constant 0 : index
    %c0_89 = arith.constant 0 : index
    %c0_90 = arith.constant 0 : index
    %123 = vector.load %arg5[%c2_87, %c0_88, %c0_89, %c0_90] : memref<3x3x32x32xbf16, #tpu.memory_space<vmem>>, vector<1x1x32x32xbf16>
    %124 = vector.shape_cast %123 : vector<1x1x32x32xbf16> to vector<32x32xbf16>
    %125 = arith.truncf %121 : vector<32x384xf32> to vector<32x384xbf16>
    %cst_91 = arith.constant dense<0.000000e+00> : vector<32x384xf32>
    %126 = tpu.matmul %124, %125, %cst_91 {dimension_numbers = #tpu.dot_dimension_numbers<[1], [0], [0], [1], [0, 0, 1, 1], [], []>} : vector<32x32xbf16>, vector<32x384xbf16>, vector<32x384xf32> -> vector<32x384xf32>
    %c2_92 = arith.constant 2 : index
    %c1_93 = arith.constant 1 : index
    %c0_94 = arith.constant 0 : index
    %c0_95 = arith.constant 0 : index
    %127 = vector.load %arg5[%c2_92, %c1_93, %c0_94, %c0_95] : memref<3x3x32x32xbf16, #tpu.memory_space<vmem>>, vector<1x1x32x32xbf16>
    %128 = vector.shape_cast %127 : vector<1x1x32x32xbf16> to vector<32x32xbf16>
    %129 = arith.truncf %120 : vector<32x384xf32> to vector<32x384xbf16>
    %cst_96 = arith.constant dense<0.000000e+00> : vector<32x384xf32>
    %130 = tpu.matmul %128, %129, %cst_96 {dimension_numbers = #tpu.dot_dimension_numbers<[1], [0], [0], [1], [0, 0, 1, 1], [], []>} : vector<32x32xbf16>, vector<32x384xbf16>, vector<32x384xf32> -> vector<32x384xf32>
    %131 = arith.addf %126, %130 : vector<32x384xf32>
    %c2_97 = arith.constant 2 : index
    %c2_98 = arith.constant 2 : index
    %c0_99 = arith.constant 0 : index
    %c0_100 = arith.constant 0 : index
    %132 = vector.load %arg5[%c2_97, %c2_98, %c0_99, %c0_100] : memref<3x3x32x32xbf16, #tpu.memory_space<vmem>>, vector<1x1x32x32xbf16>
    %133 = vector.shape_cast %132 : vector<1x1x32x32xbf16> to vector<32x32xbf16>
    %134 = arith.truncf %122 : vector<32x384xf32> to vector<32x384xbf16>
    %cst_101 = arith.constant dense<0.000000e+00> : vector<32x384xf32>
    %135 = tpu.matmul %133, %134, %cst_101 {dimension_numbers = #tpu.dot_dimension_numbers<[1], [0], [0], [1], [0, 0, 1, 1], [], []>} : vector<32x32xbf16>, vector<32x384xbf16>, vector<32x384xf32> -> vector<32x384xf32>
    %136 = arith.addf %131, %135 : vector<32x384xf32>
    %c2_102 = arith.constant 2 : index
    %c0_103 = arith.constant 0 : index
    %c0_104 = arith.constant 0 : index
    %137 = vector.load %arg6[%c2_102, %c0_103, %c0_104] : memref<3x32x1xf32, #tpu.memory_space<vmem>>, vector<1x32x1xf32>
    %138 = vector.shape_cast %137 : vector<1x32x1xf32> to vector<32x1xf32>
    %139 = vector.broadcast %138 : vector<32x1xf32> to vector<32x384xf32>
    %140 = arith.addf %136, %139 : vector<32x384xf32>
    %cst_105 = arith.constant 1.000000e-01 : f32
    %141 = vector.broadcast %cst_105 : f32 to vector<32x384xf32>
    %142 = arith.mulf %141, %140 : vector<32x384xf32>
    %143 = arith.maximumf %140, %142 : vector<32x384xf32>
    %144 = arith.mulf %143, %18 : vector<32x384xf32>
    %c1_i32_106 = arith.constant 1 : i32
    %145 = tpu.dynamic_rotate %144 by %c1_i32_106 dim 1 : vector<32x384xf32>, i32 -> vector<32x384xf32>
    %c383_i32_107 = arith.constant 383 : i32
    %146 = tpu.dynamic_rotate %144 by %c383_i32_107 dim 1 : vector<32x384xf32>, i32 -> vector<32x384xf32>
    %c2_108 = arith.constant 2 : index
    %c0_109 = arith.constant 0 : index
    %c0_110 = arith.constant 0 : index
    %c0_111 = arith.constant 0 : index
    %147 = vector.load %arg7[%c2_108, %c0_109, %c0_110, %c0_111] : memref<3x3x32x32xbf16, #tpu.memory_space<vmem>>, vector<1x1x32x32xbf16>
    %148 = vector.shape_cast %147 : vector<1x1x32x32xbf16> to vector<32x32xbf16>
    %149 = arith.truncf %145 : vector<32x384xf32> to vector<32x384xbf16>
    %cst_112 = arith.constant dense<0.000000e+00> : vector<32x384xf32>
    %150 = tpu.matmul %148, %149, %cst_112 {dimension_numbers = #tpu.dot_dimension_numbers<[1], [0], [0], [1], [0, 0, 1, 1], [], []>} : vector<32x32xbf16>, vector<32x384xbf16>, vector<32x384xf32> -> vector<32x384xf32>
    %c2_113 = arith.constant 2 : index
    %c1_114 = arith.constant 1 : index
    %c0_115 = arith.constant 0 : index
    %c0_116 = arith.constant 0 : index
    %151 = vector.load %arg7[%c2_113, %c1_114, %c0_115, %c0_116] : memref<3x3x32x32xbf16, #tpu.memory_space<vmem>>, vector<1x1x32x32xbf16>
    %152 = vector.shape_cast %151 : vector<1x1x32x32xbf16> to vector<32x32xbf16>
    %153 = arith.truncf %144 : vector<32x384xf32> to vector<32x384xbf16>
    %cst_117 = arith.constant dense<0.000000e+00> : vector<32x384xf32>
    %154 = tpu.matmul %152, %153, %cst_117 {dimension_numbers = #tpu.dot_dimension_numbers<[1], [0], [0], [1], [0, 0, 1, 1], [], []>} : vector<32x32xbf16>, vector<32x384xbf16>, vector<32x384xf32> -> vector<32x384xf32>
    %155 = arith.addf %150, %154 : vector<32x384xf32>
    %c2_118 = arith.constant 2 : index
    %c2_119 = arith.constant 2 : index
    %c0_120 = arith.constant 0 : index
    %c0_121 = arith.constant 0 : index
    %156 = vector.load %arg7[%c2_118, %c2_119, %c0_120, %c0_121] : memref<3x3x32x32xbf16, #tpu.memory_space<vmem>>, vector<1x1x32x32xbf16>
    %157 = vector.shape_cast %156 : vector<1x1x32x32xbf16> to vector<32x32xbf16>
    %158 = arith.truncf %146 : vector<32x384xf32> to vector<32x384xbf16>
    %cst_122 = arith.constant dense<0.000000e+00> : vector<32x384xf32>
    %159 = tpu.matmul %157, %158, %cst_122 {dimension_numbers = #tpu.dot_dimension_numbers<[1], [0], [0], [1], [0, 0, 1, 1], [], []>} : vector<32x32xbf16>, vector<32x384xbf16>, vector<32x384xf32> -> vector<32x384xf32>
    %160 = arith.addf %155, %159 : vector<32x384xf32>
    %c2_123 = arith.constant 2 : index
    %c0_124 = arith.constant 0 : index
    %c0_125 = arith.constant 0 : index
    %161 = vector.load %arg8[%c2_123, %c0_124, %c0_125] : memref<3x32x1xf32, #tpu.memory_space<vmem>>, vector<1x32x1xf32>
    %162 = vector.shape_cast %161 : vector<1x32x1xf32> to vector<32x1xf32>
    %163 = vector.broadcast %162 : vector<32x1xf32> to vector<32x384xf32>
    %164 = arith.addf %160, %163 : vector<32x384xf32>
    %165 = arith.addf %164, %116 : vector<32x384xf32>
    %166 = vector.extract_strided_slice %165 {offsets = [0, 128], sizes = [32, 128], strides = [1, 1]} : vector<32x384xf32> to vector<32x128xf32>
    %c0_126 = arith.constant 0 : index
    %c0_127 = arith.constant 0 : index
    %c0_128 = arith.constant 0 : index
    %167 = vector.load %arg9[%c0_126, %c0_127, %c0_128] : memref<1x32x128xf32, #tpu.memory_space<vmem>>, vector<1x32x128xf32>
    %168 = vector.shape_cast %167 : vector<1x32x128xf32> to vector<32x128xf32>
    %169 = vector.shape_cast %166 : vector<32x128xf32> to vector<1x32x128xf32>
    tpu.vector_store %arg9[%c0_126, %c0_127, %c0_128], %169 {strides = array<i32>} : memref<1x32x128xf32, #tpu.memory_space<vmem>>, vector<1x32x128xf32>,
    return
  }
  func.func @transform_0(%arg0: i32, %arg1: i32) -> (i32, i32, i32) {
    %c1_i32 = arith.constant 1 : i32
    %0 = arith.muli %arg1, %c1_i32 : i32
    %c1_i32_0 = arith.constant 1 : i32
    %1 = arith.subi %0, %c1_i32_0 : i32
    %c0_i32 = arith.constant 0 : i32
    %2 = arith.maxsi %1, %c0_i32 : i32
    %c0_i32_1 = arith.constant 0 : i32
    %c0_i32_2 = arith.constant 0 : i32
    return %arg0, %c0_i32_1, %2 : i32, i32, i32
  }
  func.func @transform_1(%arg0: i32, %arg1: i32) -> (i32, i32, i32) {
    %c0_i32 = arith.constant 0 : i32
    %c0_i32_0 = arith.constant 0 : i32
    return %arg0, %c0_i32, %arg1 : i32, i32, i32
  }
  func.func @transform_2(%arg0: i32, %arg1: i32) -> (i32, i32, i32) {
    %c1_i32 = arith.constant 1 : i32
    %0 = arith.addi %arg1, %c1_i32 : i32
    %c1_i32_0 = arith.constant 1 : i32
    %1 = arith.muli %0, %c1_i32_0 : i32
    %c2_i32 = arith.constant 2 : i32
    %2 = arith.minsi %1, %c2_i32 : i32
    %c0_i32 = arith.constant 0 : i32
    %c0_i32_1 = arith.constant 0 : i32
    return %arg0, %c0_i32, %2 : i32, i32, i32
  }
  func.func @transform_3(%arg0: i32, %arg1: i32) -> (i32, i32, i32, i32) {
    %c0_i32 = arith.constant 0 : i32
    %c0_i32_0 = arith.constant 0 : i32
    %c0_i32_1 = arith.constant 0 : i32
    %c0_i32_2 = arith.constant 0 : i32
    %c0_i32_3 = arith.constant 0 : i32
    return %c0_i32, %c0_i32_0, %c0_i32_1, %c0_i32_2 : i32, i32, i32, i32
  }
  func.func @transform_4(%arg0: i32, %arg1: i32) -> (i32, i32, i32) {
    %c0_i32 = arith.constant 0 : i32
    %c0_i32_0 = arith.constant 0 : i32
    %c0_i32_1 = arith.constant 0 : i32
    %c0_i32_2 = arith.constant 0 : i32
    return %c0_i32, %c0_i32_0, %c0_i32_1 : i32, i32, i32
  }
  func.func @transform_5(%arg0: i32, %arg1: i32) -> (i32, i32, i32, i32) {
    %c0_i32 = arith.constant 0 : i32
    %c0_i32_0 = arith.constant 0 : i32
    %c0_i32_1 = arith.constant 0 : i32
    %c0_i32_2 = arith.constant 0 : i32
    %c0_i32_3 = arith.constant 0 : i32
    return %c0_i32, %c0_i32_0, %c0_i32_1, %c0_i32_2 : i32, i32, i32, i32
  }
  func.func @transform_6(%arg0: i32, %arg1: i32) -> (i32, i32, i32) {
    %c0_i32 = arith.constant 0 : i32
    %c0_i32_0 = arith.constant 0 : i32
    %c0_i32_1 = arith.constant 0 : i32
    %c0_i32_2 = arith.constant 0 : i32
    return %c0_i32, %c0_i32_0, %c0_i32_1 : i32, i32, i32
  }
  func.func @transform_7(%arg0: i32, %arg1: i32) -> (i32, i32, i32) {
    %c0_i32 = arith.constant 0 : i32
    %c0_i32_0 = arith.constant 0 : i32
    return %arg0, %c0_i32, %arg1 : i32, i32, i32
  }
}

</mosaic_0001>

<bundles_post_ra>
// kernel: tpu_custom_call.1
= control target key start
LH: loop header
LB: loop body
LE: loop exit
PB: predicated region body
PF: predicated region fallthrough
CT: control target
= control target key end

     0   :  { %s6534_s0 = inlined_call_operand.hbm [shape: f32[2,32,384], index: 0, kind: input, shape index: {}]   ;;  %s6535_s1 = inlined_call_operand.hbm [shape: f32[2,32,384], index: 1, kind: input, shape index: {}]   ;;  %s6536_s2 = inlined_call_operand.hbm [shape: f32[2,32,384], index: 2, kind: input, shape index: {}]   ;;  %s6537_s3 = inlined_call_operand.hbm [shape: bf16[3,3,32,32], index: 3, kind: input, shape index: {}]   ;;  %s6538_s4 = inlined_call_operand.hbm [shape: f32[3,32,1], index: 4, kind: input, shape index: {}]   ;;  %s6539_s5 = inlined_call_operand.hbm [shape: bf16[3,3,32,32], index: 5, kind: input, shape index: {}]   ;;  %s6540_s6 = inlined_call_operand.hbm [shape: f32[3,32,1], index: 6, kind: input, shape index: {}]   ;;  %s6541_s7 = inlined_call_operand.hbm [shape: f32[2,32,384], index: 7, kind: output, shape index: {}]  }
   0x1   :  { %6577 = sst [smem:[#allocation38_spill]] %s6534_s0 }
   0x2   :  { %6578 = sst [smem:[#allocation39_spill]] %s6535_s1 }
   0x3   :  { %6579 = sst [smem:[#allocation40_spill]] %s6536_s2 }
   0x4   :  { %6580 = sst [smem:[#allocation41_spill]] %s6537_s3 }
   0x5   :  { %6581 = sst [smem:[#allocation42_spill]] %s6538_s4 }
   0x6   :  { %6582 = sst [smem:[#allocation43_spill]] %s6539_s5 }
   0x7   :  { %6583 = sst [smem:[#allocation44_spill]] %s6540_s6 }
   0x8   :  { %6584 = sst [smem:[#allocation45_spill]] %s6541_s7 }
   0x9   :  { %12 = vsyncpa [#allocation3], 0 }
   0xa   :  { %14 = vsyncpa [#allocation3 + $0x1], 0 }
   0xb   :  { %15 = vsyncpa [#allocation6], 0 }
   0xc   :  { %17 = vsyncpa [#allocation6 + $0x1], 0 }
   0xd   :  { %18 = vsyncpa [#allocation9], 0 }
   0xe   :  { %19 = vsyncpa [#allocation12], 0 }
   0xf   :  { %20 = vsyncpa [#allocation4], 0 }
  0x10   :  { %22 = vsyncpa [#allocation4 + $0x1], 0  ;;  %s5287_s24 = smov 0   ;;  %s5289_s25 = smov 0  }
  0x11   :  { %s5291_s26 = smov 0   ;;  %s5293_s27 = smov 0  }
  0x12   :  { %s5295_s28 = smov 0   ;;  %s5297_s29 = smov 0  }
  0x13   :  { %s5299_s30 = smov 0   ;;  %s5301_s8 = smov 0  }
  0x14   :  { %s5303_s9 = smov 0   ;;  %s5305_s10 = smov 0  }
  0x15   :  { %s5307_s11 = smov 0   ;;  %s5309_s12 = smov 0  }
  0x16   :  { %s5311_s13 = smov 0   ;;  %s5313_s14 = smov 0  }
  0x17 LB: > { %6585 = sst [smem:[#allocation21_spill]] %s5169_s24  ;;  %s5358_s15 = sadd.s32 4294967295, %s5221_s14   ;;  %s5221_s14 = sphi %s5313_s14, %s28_s14   ;;  %s5217_s13 = sphi %s5311_s13, %s6673_s13   ;;  %s5213_s12 = sphi %s5309_s12, %s6672_s12   ;;  %s5209_s11 = sphi %s5307_s11, %s6671_s11   ;;  %s5205_s10 = sphi %s5305_s10, %s6670_s10   ;;  %s5201_s9 = sphi %s5303_s9, %s6669_s9   ;;  %s5197_s8 = sphi %s5301_s8, %s6679_s8   ;;  %s5193_s30 = sphi %s5299_s30, %s6678_s30   ;;  %s5189_s29 = sphi %s5297_s29, %s6677_s29   ;;  %s5185_s28 = sphi %s5295_s28, %s6676_s28   ;;  %s5181_s27 = sphi %s5293_s27, %s6666_s27   ;;  %s5177_s26 = sphi %s5291_s26, %s6675_s26   ;;  %s5173_s25 = sphi %s5289_s25, %s6665_s25   ;;  %s5169_s24 = sphi %s5287_s24, %s6674_s24  }
  0x18   : > { %6586 = sst [smem:[#allocation22_spill]] %s5173_s25  ;;  %p3819_p0 = scmp.ge.s32.totalorder %s5221_s14, 1 }
  0x19   : > { %6587 = sst [smem:[#allocation23_spill]] %s5177_s26  ;;  %p6545_p1 = scmp.eq.s32.totalorder %s5358_s15, 0 }
  0x1a   : > { %6588 = sst [smem:[#allocation24_spill]] %s5181_s27  ;;  %p253_p3 = scmp.lt.s32.totalorder %s5221_s14, 7 }
  0x1b   : > { %6589 = sst [smem:[#allocation25_spill]] %s5185_s28  ;;  %s5223_s17 = smov [#allocation8]  }
  0x1c   : > { %6590 = sst [smem:[#allocation26_spill]] %s5201_s9  ;;  %p5364_p4 = pnand %p3819_p0, %p253_p3 }
  0x1d   : > { %6591 = sst [smem:[#allocation27_spill]] %s5205_s10  ;;  %s265_s18 = sshll.u32 %s5223_s17, 4  ;;  %s266_s18 = int_to_ptr.vmem [resolvable:$true] %s265_s18 }
  0x1e   : > { %6592 = sst [smem:[#allocation28_spill]] %s5209_s11  ;;  %p4280_p5 = pneg %p5364_p4 }
  0x1f   : > { %6593 = sst [smem:[#allocation29_spill]] %s5213_s12  ;;  %s5224_s20 = smov [#allocation11]  }
  0x20   : > { %6594 = sst [smem:[#allocation30_spill]] %s5217_s13  ;;  %p5372_p6 = pnand %p4280_p5, %p6545_p1 }
  0x21   : > { %s6595_s16 = scalar_select %p5364_p4, 1, 0 }
  0x22   : > { %s6597_s19 = scalar_select %p5372_p6, 1, 0 }
  0x23   : > { %6596 = sst [smem:[#allocation31_spill]] %s6595_s16  ;;  %s291_s21 = sshll.u32 %s5224_s20, 4  ;;  %s5376_s21 = int_to_ptr.vmem [resolvable:$true] %s291_s21 }
  0x24   : > { %s6598_s3 = sld [smem:[#allocation41_spill]]  ;;  %p5386_p8 = pneg %p5372_p6 }
  0x2a   : > { %s4857_s7 = scalar_lea.hbm %s6598_s3, 2304 }
  0x2b   : > { %p4858_p7 = scmp.ne.s32.totalorder %s6598_s3, %s4857_s7  ;;  %p4864_p11 = scmp.lt.u32.totalorder %s4857_s7, %s6598_s3 }
  0x2d   : > { %p4860_p9 = pnand %p5386_p8, %p4858_p7 }
  0x2f   : > { %p4861_p10 = pneg %p4860_p9 }
  0x31   : > { %p4866_p12 = pnand %p4864_p11, %p4861_p10 }
  0x33   : > { %4869 = shalt.err (!%p4866_p12)
}
  0x34   : > { %s4870_s22 = scalar_lea.vmem %s266_s18, 2304  ;;  %p4878_p5 = scmp.lt.s32.totalorder %s266_s18, %s266_s18 }
  0x35   : > { %p4871_p13 = scmp.ne.s32.totalorder %s266_s18, %s4870_s22  ;;  %p4879_p1 = scmp.lt.s32.totalorder %s4870_s22, %s4870_s22 }
  0x37   : > { %p4873_p0 = pnand %p4871_p13, %p5386_p8  ;;  %p4880_p2 = por %p4879_p1, %p4878_p5 }
  0x39   : > { %p4874_p3 = pneg %p4873_p0 }
  0x3b   : > { %p4881_p4 = pnand %p4880_p2, %p4874_p3 }
  0x3d   : > { %4884 = shalt.err (!%p4881_p4)
}
  0x3e   : > { %s5225_s10 = smov 64   ;;  %s5226_s11 = smov 4  }
  0x3f   : > { %4283 = dma.hbm_to_vmem [thread:$0]  (!%p5372_p6), %s6598_s3, 2304, %s266_s18, [#allocation9], %s5225_s10, %s5225_s10, %s5226_s11  }
  0x40   : > { %s6600_s5 = sld [smem:[#allocation43_spill]] }
  0x46   : > { %s4885_s2 = scalar_lea.hbm %s6600_s5, 2304 }
  0x47   : > { %p4886_p7 = scmp.ne.s32.totalorder %s6600_s5, %s4885_s2  ;;  %p4892_p4 = scmp.lt.u32.totalorder %s4885_s2, %s6600_s5 }
  0x49   : > { %p4888_p1 = pnand %p4886_p7, %p5386_p8 }
  0x4b   : > { %p4889_p2 = pneg %p4888_p1 }
  0x4d   : > { %p4894_p9 = pnand %p4892_p4, %p4889_p2 }
  0x4f   : > { %4897 = shalt.err (!%p4894_p9)
}
  0x50   : > { %s4898_s18 = scalar_lea.vmem %s5376_s21, 2304  ;;  %p4906_p13 = scmp.lt.s32.totalorder %s5376_s21, %s5376_s21 }
  0x51   : > { %p4899_p10 = scmp.ne.s32.totalorder %s5376_s21, %s4898_s18  ;;  %p4907_p0 = scmp.lt.s32.totalorder %s4898_s18, %s4898_s18 }
  0x53   : > { %p4901_p11 = pnand %p4899_p10, %p5386_p8  ;;  %p4908_p3 = por %p4907_p0, %p4906_p13 }
  0x55   : > { %p4902_p12 = pneg %p4901_p11 }
  0x57   : > { %p4909_p5 = pnand %p4908_p3, %p4902_p12 }
  0x59   : > { %4912 = shalt.err (!%p4909_p5)
}
  0x5a   : > { %4289 = dma.hbm_to_vmem [thread:$0]  (!%p5372_p6), %s6600_s5, 2304, %s5376_s21, [#allocation12], %s5225_s10, %s5225_s10, %s5226_s11  }
  0x5b   : > { %s3816_s25 = sadd.s32 4294967294, %s5221_s14   ;;  %s5427_s26 = sadd.s32 1, %s5213_s12 }
  0x5c   : > { %p6558_p7 = scmp.ge.s32.totalorder %s5427_s26, 3  ;;  %p6557_p1 = scmp.eq.s32.totalorder %s5221_s14, 0 }
  0x5d   : > { %p90_p2 = scmp.ne.s32.totalorder %s5189_s29, %s5185_s28  ;;  %p96_p9 = scmp.ne.s32.totalorder %s5185_s28, %s5181_s27 }
  0x5e   : > { %s5438_s23 = scalar_select %p6558_p7, 0, %s5427_s26  }
  0x5f   : > { %p5442_p4 = por %p90_p2, %p6557_p1  ;;  %p6603_p10 = scmp.eq.s32.totalorder %s5358_s15, 5 }
  0x60   : > { %6601 = sst [smem:[#allocation32_spill]] %s5438_s23  ;;  %p6606_p12 = scmp.eq.s32.totalorder %s5358_s15, 0 }
  0x61   : > { %p5452_p11 = por %p6603_p10, %p90_p2  ;;  %p246_p0 = scmp.eq.s32.totalorder %s3816_s25, 5 }
  0x62   : > { %p5458_p13 = por %p96_p9, %p6606_p12  ;;  %p6556_p5 = scmp.lt.s32.totalorder %s5221_s14, 6 }
  0x63   : > { %s6604_s11 = scalar_select %p5452_p11, 1, 0 }
  0x64   : > { %s6607_s20 = scalar_select %p5458_p13, 1, 0 }
  0x65   : > { %6605 = sst [smem:[#allocation33_spill]] %s6604_s11  ;;  %p5462_p3 = por %p246_p0, %p96_p9 }
  0x66   : > { %6608 = sst [smem:[#allocation34_spill]] %s6607_s20  ;;  %s5468_s18 = smul.u32 12, %s5217_s13 }
  0x67   : > { %s6609_s22 = scalar_select %p5462_p3, 1, 0 }
  0x68   : > { %s343_s2 = sand.u32 1, %s5221_s14   ;;  %s345_s24 = sand.u32 1, %s5189_s29  }
  0x69   : > { %6610 = sst [smem:[#allocation35_spill]] %s6609_s22  ;;  %s3828_s7 = sshll.u32 %s345_s24, 5 }
  0x6a   : > { %s352_s10 = sadd.s32 %s5213_s12, %s5468_s18  ;;  %s347_s3 = scalar_lea.vmem [#allocation5], %s3828_s7 }
  0x6b   : > { %s3829_s16 = sshll.u32 %s352_s10, 7  ;;  %s355_s5 = sshll.u32 %s347_s3, 4  ;;  %s5479_s5 = int_to_ptr.vmem [resolvable:$true] %s355_s5 }
  0x6c   : > { %s6611_s1 = sld [smem:[#allocation39_spill]]  ;;  %p5485_p2 = pnand %p6556_p5, %p5442_p4 }
  0x6d   : > { %s5227_s3 = smov [#allocation10]   ;;  %s5491_s27 = scalar_lea.sflag [#allocation6], %s343_s2 }
  0x6e   : > { %s278_s7 = sshll.u32 %s5227_s3, 4  ;;  %p4915_p10 = pneg %p5485_p2  ;;  %s5489_s7 = int_to_ptr.vmem [resolvable:$true] %s278_s7 }
  0x72   : > { %s5477_s20 = scalar_lea.hbm %s6611_s1, %s3829_s16  ;;  %s4918_s11 = scalar_lea.hbm %s6611_s1, 3072 }
  0x73   : > { %s4913_s16 = scalar_lea.hbm %s5477_s20, 512  ;;  %p4919_p4 = scmp.lt.u32.totalorder %s5477_s20, %s6611_s1 }
  0x74   : > { %p4914_p9 = scmp.ne.s32.totalorder %s5477_s20, %s4913_s16  ;;  %p4920_p5 = scmp.lt.u32.totalorder %s4918_s11, %s4913_s16 }
  0x75   : > { %p4922_p7 = scmp.lt.u32.totalorder %s4913_s16, %s5477_s20 }
  0x76   : > { %p4916_p12 = pnand %p4915_p10, %p4914_p9  ;;  %p4921_p1 = por %p4920_p5, %p4919_p4 }
  0x78   : > { %p4917_p0 = pneg %p4916_p12  ;;  %p4923_p3 = por %p4922_p7, %p4921_p1 }
  0x7a   : > { %p4924_p11 = pnand %p4923_p3, %p4917_p0 }
  0x7c   : > { %4927 = shalt.err (!%p4924_p11)
}
  0x7d   : > { %s4928_s2 = scalar_lea.vmem %s5479_s5, 512  ;;  %s5228_s3 = smov [#allocation5]  }
  0x7e   : > { %p4929_p9 = scmp.ne.s32.totalorder %s5479_s5, %s4928_s2  ;;  %s4933_s21 = sshll.u32 %s5228_s3, 4  ;;  %s4934_s21 = int_to_ptr.vmem [resolvable:$false] %s4933_s21 }
  0x7f   : > { %s4935_s22 = scalar_lea.vmem %s4934_s21, 1024  ;;  %p4936_p6 = scmp.lt.s32.totalorder %s5479_s5, %s4934_s21 }
  0x80   : > { %p4931_p12 = pnand %p4929_p9, %p4915_p10  ;;  %p4937_p5 = scmp.lt.s32.totalorder %s4935_s22, %s4928_s2 }
  0x82   : > { %p4932_p13 = pneg %p4931_p12  ;;  %p4938_p4 = por %p4937_p5, %p4936_p6 }
  0x84   : > { %p4939_p7 = pnand %p4938_p4, %p4932_p13 }
  0x86   : > { %4942 = shalt.err (!%p4939_p7)
}
  0x87   : > { %s6565_s16 = smov 384   ;;  %s6567_s10 = smov 128  }
  0x88   : > { %s6569_s11 = smov 8   ;;  %s6613_s4 = sld [smem:[#allocation42_spill]] }
  0x89   : > { %4299 = dma.hbm_to_vmem [thread:$0]  (!%p5485_p2), %s5477_s20, 512, %s5479_s5, %s5491_s27, %s6565_s16, %s6567_s10, %s6569_s11  }
  0x8e   : > { %s4943_s2 = scalar_lea.hbm %s6613_s4, 1536 }
  0x8f   : > { %p4944_p6 = scmp.ne.s32.totalorder %s6613_s4, %s4943_s2  ;;  %p4950_p13 = scmp.lt.u32.totalorder %s4943_s2, %s6613_s4 }
  0x91   : > { %p4946_p1 = pnand %p4944_p6, %p5386_p8 }
  0x93   : > { %p4947_p11 = pneg %p4946_p1 }
  0x95   : > { %p4952_p3 = pnand %p4950_p13, %p4947_p11 }
  0x97   : > { %4955 = shalt.err (!%p4952_p3)
}
  0x98   : > { %s4956_s5 = scalar_lea.vmem %s5489_s7, 1536  ;;  %p4964_p9 = scmp.lt.s32.totalorder %s5489_s7, %s5489_s7 }
  0x99   : > { %p4957_p2 = scmp.ne.s32.totalorder %s5489_s7, %s4956_s5  ;;  %p4965_p12 = scmp.lt.s32.totalorder %s4956_s5, %s4956_s5 }
  0x9b   : > { %p4959_p10 = pnand %p4957_p2, %p5386_p8  ;;  %p4966_p5 = por %p4965_p12, %p4964_p9 }
  0x9d   : > { %p4960_p0 = pneg %p4959_p10 }
  0x9f   : > { %p4967_p4 = pnand %p4966_p5, %p4960_p0 }
  0xa1   : > { %4970 = shalt.err (!%p4967_p4)
}
  0xa2   : > { %p6614_p7 = scmp.ne.s32.totalorder %s6597_s19, 0  ;;  %s5232_s20 = smov [#allocation13]  }
  0xa3   : > { %s304_s25 = sshll.u32 %s5232_s20, 4  ;;  %s6615_s6 = sld [smem:[#allocation44_spill]]  ;;  %s305_s25 = int_to_ptr.vmem [resolvable:$true] %s304_s25 }
  0xa4   : > { %4286 = dma.hbm_to_vmem [thread:$0]  (!%p6614_p7), %s6613_s4, 1536, %s5489_s7, [#allocation9], %s6567_s10, %s6567_s10, %s6569_s11  }
  0xa9   : > { %s4971_s2 = scalar_lea.hbm %s6615_s6, 1536 }
  0xaa   : > { %p4972_p6 = scmp.ne.s32.totalorder %s6615_s6, %s4971_s2  ;;  %p4978_p13 = scmp.lt.u32.totalorder %s4971_s2, %s6615_s6 }
  0xac   : > { %p4974_p1 = pnand %p4972_p6, %p5386_p8 }
  0xae   : > { %p4975_p11 = pneg %p4974_p1 }
  0xb0   : > { %p4980_p3 = pnand %p4978_p13, %p4975_p11 }
  0xb2   : > { %4983 = shalt.err (!%p4980_p3)
}
  0xb3   : > { %s4984_s7 = scalar_lea.vmem %s305_s25, 1536  ;;  %p4992_p9 = scmp.lt.s32.totalorder %s305_s25, %s305_s25 }
  0xb4   : > { %p4985_p2 = scmp.ne.s32.totalorder %s305_s25, %s4984_s7  ;;  %p4993_p12 = scmp.lt.s32.totalorder %s4984_s7, %s4984_s7 }
  0xb6   : > { %p4987_p10 = pnand %p4985_p2, %p5386_p8  ;;  %p4994_p5 = por %p4993_p12, %p4992_p9 }
  0xb8   : > { %p4988_p0 = pneg %p4987_p10 }
  0xba   : > { %p4995_p4 = pnand %p4994_p5, %p4988_p0 }
  0xbc   : > { %4998 = shalt.err (!%p4995_p4)
}
  0xbd   : > { %4292 = dma.hbm_to_vmem [thread:$0]  (!%p6614_p7), %s6615_s6, 1536, %s305_s25, [#allocation12], %s6567_s10, %s6567_s10, %s6569_s11  }
  0xbe   : > { %s6616_s17 = sadd.s32 1, %s5217_s13  ;;  %p6617_p8 = scmp.ge.s32.totalorder %s5427_s26, 3 }
  0xbf   : > { %s3817_s19 = sadd.s32 4294967295, %s5213_s12  ;;  %s3818_s28 = sadd.s32 4294967295, %s5438_s23 }
  0xc0   : > { %s6681_s17 = smov (!%p6617_p8, %s6616_s17), %s5217_s13  ;;  %p45_p1 = scmp.gt.s32.totalorder %s3817_s19, 0 }
  0xc1   : > { %p42_p6 = scmp.ge.s32.totalorder %s6681_s17, 2  ;;  %p48_p11 = scmp.gt.s32.totalorder %s3818_s28, 0 }
  0xc2   : > { %s55_s20 = sadd.s32 1, %s5201_s9  ;;  %s6685_s19 = smov (!%p45_p1, %s3817_s19), 0 }
  0xc3   : > { %s6683_s17 = smov (%p42_p6, %s6681_s17), 0  ;;  %s6687_s28 = smov (!%p48_p11, %s3818_s28), 0 }
  0xc4   : > { %6618 = sst [smem:[#allocation36_spill]] %s6683_s17  ;;  %s5581_s25 = ssub.s32 %s5217_s13, %s6683_s17 }
  0xc5   : > { %p62_p7 = scmp.ne.s32.totalorder %s5201_s9, %s5197_s8  ;;  %s51_s24 = ssub.s32 %s6685_s19, %s6687_s28 }
  0xc6   : > { %p68_p13 = scmp.ne.s32.totalorder %s5197_s8, %s5193_s30  ;;  %s52_s3 = sor.u32 %s51_s24, %s5581_s25 }
  0xc7   : > { %p6619_p3 = scmp.eq.s32.totalorder %s5221_s14, 0  ;;  %p53_p10 = scmp.eq.s32.totalorder %s52_s3, 0 }
  0xc8   : > { %p6621_p0 = scmp.eq.s32.totalorder %s5358_s15, 0  ;;  %s6623_s22 = ssub.s32 %s5213_s12, %s5438_s23 }
  0xc9   : > { %p5590_p2 = por %p6619_p3, %p62_p7  ;;  %s80_s5 = sor.u32 %s6623_s22, %s5581_s25 }
  0xca   : > { %p5596_p9 = por %p6621_p0, %p68_p13  ;;  %s318_s7 = sand.u32 1, %s5201_s9  }
  0xcb   : > { %s5606_s16 = scalar_select %p53_p10, %s5201_s9, %s55_s20  }
  0xcc   : > { %p81_p12 = scmp.eq.s32.totalorder %s80_s5, 0  ;;  %s3825_s30 = sshll.u32 %s318_s7, 5 }
  0xcd   : > { %6624 = sst [smem:[#allocation37_spill]] %s5606_s16  ;;  %s330_s1 = sadd.s32 %s5468_s18, %s6685_s19 }
  0xce   : > { %s6625_s28 = sadd.s32 1, %s5189_s29  ;;  %s3827_s10 = sshll.u32 %s330_s1, 7 }
  0xcf   : > { %s5612_s24 = scalar_select %p81_p12, %s5189_s29, %s6625_s28  }
  0xd0   : > { %s6626_s0 = sld [smem:[#allocation38_spill]]  ;;  %s322_s22 = scalar_lea.vmem [#allocation2], %s3825_s30 }
  0xd1   : > { %s333_s6 = sshll.u32 %s322_s22, 4  ;;  %p6627_p5 = scmp.lt.s32.totalorder %s5221_s14, 6  ;;  %s5619_s6 = int_to_ptr.vmem [resolvable:$true] %s333_s6 }
  0xd2   : > { %s5629_s20 = scalar_lea.sflag [#allocation3], %s318_s7 }
  0xd3   : > { %p5625_p4 = pnand %p6627_p5, %p5590_p2 }
  0xd5   : > { %p5001_p6 = pneg %p5625_p4 }
  0xd6   : > { %s5617_s3 = scalar_lea.hbm %s6626_s0, %s3827_s10  ;;  %s5004_s2 = scalar_lea.hbm %s6626_s0, 3072 }
  0xd7   : > { %s4999_s4 = scalar_lea.hbm %s5617_s3, 512  ;;  %p5005_p7 = scmp.lt.u32.totalorder %s5617_s3, %s6626_s0 }
  0xd8   : > { %p5000_p8 = scmp.ne.s32.totalorder %s5617_s3, %s4999_s4  ;;  %p5006_p13 = scmp.lt.u32.totalorder %s5004_s2, %s4999_s4 }
  0xd9   : > { %p5008_p2 = scmp.lt.u32.totalorder %s4999_s4, %s5617_s3 }
  0xda   : > { %p5002_p1 = pnand %p5001_p6, %p5000_p8  ;;  %p5007_p3 = por %p5006_p13, %p5005_p7 }
  0xdc   : > { %p5003_p11 = pneg %p5002_p1  ;;  %p5009_p10 = por %p5008_p2, %p5007_p3 }
  0xde   : > { %p5010_p0 = pnand %p5009_p10, %p5003_p11 }
  0xe0   : > { %5013 = shalt.err (!%p5010_p0)
}
  0xe1   : > { %s5014_s7 = scalar_lea.vmem %s5619_s6, 512  ;;  %s5233_s1 = smov [#allocation2]  }
  0xe2   : > { %p5015_p12 = scmp.ne.s32.totalorder %s5619_s6, %s5014_s7  ;;  %s5019_s28 = sshll.u32 %s5233_s1, 4  ;;  %s5020_s28 = int_to_ptr.vmem [resolvable:$false] %s5019_s28 }
  0xe3   : > { %s5021_s22 = scalar_lea.vmem %s5020_s28, 1024  ;;  %p5022_p1 = scmp.lt.s32.totalorder %s5619_s6, %s5020_s28 }
  0xe4   : > { %p5017_p5 = pnand %p5015_p12, %p5001_p6  ;;  %p5023_p7 = scmp.lt.s32.totalorder %s5021_s22, %s5014_s7 }
  0xe6   : > { %p5018_p8 = pneg %p5017_p5  ;;  %p5024_p13 = por %p5023_p7, %p5022_p1 }
  0xe8   : > { %p5025_p3 = pnand %p5024_p13, %p5018_p8 }
  0xea   : > { %5028 = shalt.err (!%p5025_p3)
}
  0xeb   : > { %s6629_s4 = smov 8   ;;  %s6630_s10 = smov 128  }
  0xec   : > { %s6631_s11 = smov 384   ;;  %s6632_s2 = sld [smem:[#allocation23_spill]] }
  0xed   : > { %s6633_s5 = sld [smem:[#allocation22_spill]]  ;;  %s6634_s30 = sld [smem:[#allocation21_spill]] }
  0xee   : > { %4296 = dma.hbm_to_vmem [thread:$0]  (!%p5625_p4), %s5617_s3, 512, %s5619_s6, %s5629_s20, %s6631_s11, %s6630_s10, %s6629_s4  }
  0xef   : > { %p107_p6 = scmp.lt.s32.totalorder %s5427_s26, 2  ;;  %s109_s19 = sadd.s32 1, %s5438_s23 }
  0xf0   : > { %p110_p11 = scmp.lt.s32.totalorder %s109_s19, 2  ;;  %p6635_p0 = scmp.eq.s32.totalorder %s5221_s14, 0 }
  0xf1   : > { %s6689_s26 = smov (!%p107_p6, %s5427_s26), 2  ;;  %p6637_p5 = scmp.eq.s32.totalorder %s5358_s15, 0 }
  0xf2   : > { %s117_s7 = sadd.s32 1, %s6632_s2  ;;  %s367_s1 = sand.u32 1, %s6632_s2  }
  0xf3   : > { %p124_p2 = scmp.ne.s32.totalorder %s6632_s2, %s6633_s5  ;;  %p130_p10 = scmp.ne.s32.totalorder %s6633_s5, %s6634_s30 }
  0xf4   : > { %s6691_s19 = smov (!%p110_p11, %s109_s19), 2  ;;  %s3830_s20 = sshll.u32 %s367_s1, 5 }
  0xf5   : > { %p5671_p12 = por %p124_p2, %p6635_p0  ;;  %p5677_p4 = por %p130_p10, %p6637_p5 }
  0xf6   : > { %s113_s3 = ssub.s32 %s6689_s26, %s6691_s19  ;;  %s377_s0 = sadd.s32 %s5468_s18, %s6689_s26 }
  0xf7   : > { %s6638_s6 = scalar_select %p5677_p4, 1, 0 }
  0xf8   : > { %s114_s22 = sor.u32 %s113_s3, %s5581_s25  ;;  %s3831_s5 = sshll.u32 %s377_s0, 7 }
  0xf9   : > { %p115_p8 = scmp.eq.s32.totalorder %s114_s22, 0  ;;  %s369_s30 = scalar_lea.vmem [#allocation7], %s3830_s20 }
  0xfa   : > { %s380_s17 = sshll.u32 %s369_s30, 4  ;;  %s6639_s12 = sld [smem:[#allocation40_spill]]  ;;  %s5691_s17 = int_to_ptr.vmem [resolvable:$true] %s380_s17 }
  0xfb   : > { %s6693_s2 = smov (!%p115_p8, %s6632_s2), %s117_s7  ;;  %p6641_p1 = scmp.lt.s32.totalorder %s5221_s14, 6 }
  0xfd   : > { %p5697_p7 = pnand %p6641_p1, %p5671_p12 }
  0xff   : > { %p5031_p3 = pneg %p5697_p7 }
 0x100   : > { %s6640_s16 = smov %s6639_s12  ;;  %s5689_s9 = scalar_lea.hbm %s6639_s12, %s3831_s5 }
 0x101   : > { %s5029_s0 = scalar_lea.hbm %s5689_s9, 512  ;;  %s5034_s23 = scalar_lea.hbm %s6640_s16, 3072 }
 0x102   : > { %p5030_p13 = scmp.ne.s32.totalorder %s5689_s9, %s5029_s0  ;;  %p5035_p2 = scmp.lt.u32.totalorder %s5689_s9, %s6640_s16 }
 0x103   : > { %p5036_p10 = scmp.lt.u32.totalorder %s5034_s23, %s5029_s0  ;;  %p5038_p12 = scmp.lt.u32.totalorder %s5029_s0, %s5689_s9 }
 0x104   : > { %p5032_p6 = pnand %p5031_p3, %p5030_p13 }
 0x105   : > { %p5037_p0 = por %p5036_p10, %p5035_p2 }
 0x106   : > { %p5033_p11 = pneg %p5032_p6 }
 0x107   : > { %p5039_p5 = por %p5038_p12, %p5037_p0 }
 0x109   : > { %p5040_p8 = pnand %p5039_p5, %p5033_p11 }
 0x10b   : > { %5043 = shalt.err (!%p5040_p8)
}
 0x10c   : > { %s5044_s19 = scalar_lea.vmem %s5691_s17, 512  ;;  %s5234_s7 = smov [#allocation7]  }
 0x10d   : > { %p5045_p1 = scmp.ne.s32.totalorder %s5691_s17, %s5044_s19  ;;  %s5049_s1 = sshll.u32 %s5234_s7, 4  ;;  %s5050_s1 = int_to_ptr.vmem [resolvable:$false] %s5049_s1 }
 0x10e   : > { %s5051_s28 = scalar_lea.vmem %s5050_s1, 1024  ;;  %p5052_p4 = scmp.lt.s32.totalorder %s5691_s17, %s5050_s1 }
 0x10f   : > { %p5047_p13 = pnand %p5045_p1, %p5031_p3  ;;  %p5053_p2 = scmp.lt.s32.totalorder %s5051_s28, %s5044_s19 }
 0x111   : > { %p5048_p6 = pneg %p5047_p13  ;;  %p5054_p10 = por %p5053_p2, %p5052_p4 }
 0x113   : > { %p5055_p0 = pnand %p5054_p10, %p5048_p6 }
 0x115   : > { %5058 = shalt.err (!%p5055_p0)
}
 0x116   : > { %4302 = dma.hbm_to_vmem [thread:$0]  (!%p5697_p7), %s5689_s9, 512, %s5691_s17, %s5491_s27, %s6631_s11, %s6630_s10, %s6629_s4  }
 0x117   : > { %s6643_s3 = sld [smem:[#allocation31_spill]] }
 0x11d   : > { %p6644_p3 = scmp.ne.s32.totalorder %s6643_s3, 0 }
 0x11e   : > { %s394_s20 = sand.u32 (!%p6644_p3), 1, %s5197_s8  }
 0x11f   : > { %392 = sbr.rel (%p6644_p3) target bundleno = 2674 (0xa72), region = 48  ;;  %s3833_s22 = sshll.u32 (!%p6644_p3), %s394_s20, 5 }
 0x120   : > { %s395_s5 = scalar_lea.sflag (!%p6644_p3), [#allocation3], %s394_s20  ;;  %s5733_s30 = scalar_lea.vmem (!%p6644_p3), [#allocation2], %s3833_s22 }
 0x126   : > { %5144 = dma.done.wait (%p5596_p9), %s395_s5, 512  }
 0x127   : > { %5146 = vsyncadd (%p5596_p9), %s395_s5, 4294966784  ;;  %s6645_s26 = sld [smem:[#allocation25_spill]]  ;;  %s6646_s0 = sld [smem:[#allocation34_spill]] }
 0x128   : > { %s403_s9 = sand.u32 1, %s5358_s15  }
 0x129   : > { %s404_s4 = scalar_lea.sflag [#allocation6], %s403_s9 }
 0x12d   : > { %s405_s27 = sand.u32 1, %s6645_s26   ;;  %p6647_p4 = scmp.ne.s32.totalorder %s6646_s0, 0 }
 0x12e   : > { %s5743_s17 = sshll.u32 %s405_s27, 5 }
 0x12f   : > { %s5746_s10 = scalar_lea.vmem [#allocation5], %s5743_s17 }
 0x130   : > { %5148 = dma.done.wait (%p6647_p4), %s404_s4, 512  }
 0x131   : > { %5150 = vsyncadd (%p6647_p4), %s404_s4, 4294966784  ;;  %s6648_s21 = sld [smem:[#allocation22_spill]]  ;;  %p6649_p9 = scmp.ne.s32.totalorder %s6638_s6, 0 }
 0x137   : > { %s414_s11 = sand.u32 1, %s6648_s21  }
 0x138   : > { %s3835_s12 = sshll.u32 %s414_s11, 5 }
 0x139   : > { %s5753_s13 = scalar_lea.vmem [#allocation7], %s3835_s12 }
 0x13a   : > { %5152 = dma.done.wait (%p6649_p9), %s404_s4, 512  }
 0x13b   : > { %5154 = vsyncadd (%p6649_p9), %s404_s4, 4294966784  ;;  %p6650_p7 = scmp.eq.s32.totalorder %s5358_s15, 0 }
 0x13d   : > { %5156 = dma.done.wait (%p6650_p7), [#allocation9], 3840   ;;  %p6651_p11 = pmov %p6650_p7 }
 0x13e   : > { %p6652_p12 = pmov %p6650_p7 }
 0x13f   : > { %5158 = vsyncadd (%p6651_p11), [#allocation9], 4294963456 }
 0x140   : > { %5160 = dma.done.wait (%p6652_p12), [#allocation12], 3840   ;;  %p6653_p5 = pmov %p6650_p7 }
 0x141   : > { %s6654_s23 = sld [smem:[#allocation27_spill]]  ;;  %v492_v0 = vlaneseq  ;;  %v5235_v7 = vmov 0   ;;  %v488_v8 = vld [vmem:[%s5753_s13] sm:$0xff]  ;;  %v489_v9 = vld [vmem:[%s5753_s13 + $0x8] sm:$0xff]  ;;  %vm658_vm2 = vcmask 261120   ;;  %v5236_v15 = vmov 0.0  }
 0x142   : > { %5162 = vsyncadd (%p6653_p5), [#allocation12], 4294963456  ;;  %697 = vmatprep.mubr.bf16.mxu0 %v5235_v7  ;;  %4510 = vset.pattern.permute.xlu1 %v5235_v7  ;;  %v480_v10 = vld [vmem:[%s5733_s30] sm:$0xff]  ;;  %v519_v12 = vmul.f32 0.1, %v488_v8  ;;  %v481_v14 = vld [vmem:[%s5733_s30 + $0x8] sm:$0xff] }
 0x143   : > { %v5768_v1 = vand.u32 127, %v492_v0  ;;  %4509 = vset.pattern.permute.xlu0 %v5235_v7  ;;  %v522_v13 = vmul.f32 0.1, %v489_v9  ;;  %v517_v17 = vmul.f32 0.1, %v480_v10  ;;  %v482_v18 = vld [vmem:[%s5733_s30 + $0x10] sm:$0xff] }
 0x144   : > { %v531_v20 = vmax.f32 %v488_v8, %v519_v12  ;;  %v520_v22 = vmul.f32 0.1, %v481_v14  ;;  %v483_v23 = vld [vmem:[%s5733_s30 + $0x18] sm:$0xff]  ;;  %v5788_v24 = vld [vmem:[%s5746_s10] sm:$0xff]  ;;  %v523_v26 = vmul.f32 0.1, %v482_v18 }
 0x145   : > { %v495_v3 = vadd.s32 256, %v5768_v1  ;;  %v494_v5 = vadd.s32 128, %v5768_v1  ;;  %v534_v21 = vmax.f32 %v489_v9, %v522_v13  ;;  %v529_v25 = vmax.f32 %v480_v10, %v517_v17  ;;  %v5791_v28 = vld [vmem:[%s5746_s10 + $0x8] sm:$0xff]  ;;  %v490_v33 = vld [vmem:[%s5753_s13 + $0x10] sm:$0xff]  ;;  %v491_v34 = vld [vmem:[%s5753_s13 + $0x18] sm:$0xff]  ;;  %s5237_s15 = smov 1  }
 0x146   : > { %v526_v27 = vmul.f32 0.1, %v483_v23  ;;  %v532_v31 = vmax.f32 %v481_v14, %v520_v22  ;;  %v518_v32 = vmul.f32 0.1, %v5788_v24  ;;  %v535_v36 = vmax.f32 %v482_v18, %v523_v26  ;;  %v486_v39 = vld [vmem:[%s5746_s10 + $0x10] sm:$0xff]  ;;  %v487_v44 = vld [vmem:[%s5746_s10 + $0x18] sm:$0xff] }
 0x147   : > { %s3841_s18 = sshll.u32 %s6654_s23, 7  ;;  %v521_v42 = vmul.f32 0.1, %v5791_v28  ;;  %v4811_v45 = vld [vmem:[#allocation8 + $0x10] sm:$0xff]   ;;  %v525_v48 = vmul.f32 0.1, %v490_v33 }
 0x148   : > { %s3842_s6 = sadd.s32 4294967168, %s3841_s18  ;;  %v538_v37 = vmax.f32 %v483_v23, %v526_v27  ;;  %v530_v43 = vmax.f32 %v5788_v24, %v518_v32  ;;  %v528_v49 = vmul.f32 0.1, %v491_v34  ;;  %v524_v53 = vmul.f32 0.1, %v486_v39  ;;  %4016 = vmatprep.mubr.msk.bf16.mxu1 %vm658_vm2, %v4811_v45  ;;  %v4812_v12 = vld [vmem:[#allocation8 + $0x18] sm:$0xff]  }
 0x149   : > { %v498_v2 = vstv %s3842_s6  ;;  %v533_v51 = vmax.f32 %v5791_v28, %v521_v42  ;;  %v537_v55 = vmax.f32 %v490_v33, %v525_v48  ;;  %v527_v57 = vmul.f32 0.1, %v487_v44  ;;  %v5823_v13 = vld [vmem:[#allocation8] sm:$0xff]   ;;  %s5238_s25 = smov 127   ;;  %v1027_v14 = vld [vmem:[#allocation10 + $0x8] sm:$0xff]  ;;  %v1029_v18 = vld [vmem:[#allocation10 + $0x18] sm:$0xff] }
 0x14a   : > { %v499_v4 = vadd.s32 %v498_v2, %v5768_v1  ;;  %v501_v6 = vadd.s32 %v498_v2, %v495_v3  ;;  %v500_v11 = vadd.s32 %v498_v2, %v494_v5  ;;  %v540_v56 = vmax.f32 %v491_v34, %v528_v49  ;;  %v1028_v17 = vld [vmem:[#allocation10 + $0x10] sm:$0xff]  ;;  %s5239_s19 = smov 3   ;;  %s5240_s7 = smov 125  }
 0x14b   : > { %v536_v59 = vmax.f32 %v486_v39, %v524_v53  ;;  %v539_v62 = vmax.f32 %v487_v44, %v527_v57  ;;  %vm577_vm10 = vcmp.lt.s32.totalorder %v5768_v1, 1  ;;  %vm614_vm11 = vcmp.lt.s32.totalorder %v5768_v1, 127  ;;  %s5241_s1 = smov 5   ;;  %s5242_s28 = smov 123  }
 0x14c   : > { %vm502_vm0 = vcmp.ge.s32.totalorder %v499_v4, 0  ;;  %vm505_vm1 = vcmp.lt.s32.totalorder %v499_v4, 384  ;;  %vm504_vm3 = vcmp.ge.s32.totalorder %v501_v6, 0  ;;  %vm507_vm4 = vcmp.lt.s32.totalorder %v501_v6, 384  ;;  %s6655_s3 = sld [smem:[#allocation28_spill]]  ;;  %s472_s22 = scalar_lea.vmem [#allocation14], %s5743_s17 }
 0x14d   : > { %vm508_vm5 = vmand %vm502_vm0, %vm505_vm1  ;;  %vm503_vm7 = vcmp.ge.s32.totalorder %v500_v11, 0  ;;  %vm506_vm8 = vcmp.lt.s32.totalorder %v500_v11, 384  ;;  %vm1676_vm12 = vcmp.lt.s32.totalorder %v5768_v1, 3  ;;  %vm1713_vm13 = vcmp.lt.s32.totalorder %v5768_v1, 125  ;;  %s6656_s0 = sld [smem:[#allocation33_spill]]  ;;  %s6458_s12 = scalar_lea.sflag [#allocation4], %s405_s27 }
 0x14e   : > { %vm510_vm6 = vmand %vm504_vm3, %vm507_vm4  ;;  %v5781_v16 = vsel %vm508_vm5, 1.0, %v5236_v15  ;;  %vm2778_vm14 = vcmp.lt.s32.totalorder %v5768_v1, 5  ;;  %vm2815_vm15 = vcmp.lt.s32.totalorder %v5768_v1, 123 }
 0x14f   : > { %v5784_v19 = vsel %vm510_vm6, 1.0, %v5236_v15  ;;  %vm509_vm9 = vmand %vm503_vm7, %vm506_vm8  ;;  %v541_v35 = vmul.f32 %v5781_v16, %v529_v25  ;;  %v544_v41 = vmul.f32 %v5781_v16, %v532_v31  ;;  %v547_v46 = vmul.f32 %v5781_v16, %v535_v36 }
 0x150   : > { %v543_v29 = vmul.f32 %v5784_v19, %v531_v20  ;;  %v546_v30 = vmul.f32 %v5784_v19, %v534_v21  ;;  %v5800_v38 = vsel %vm509_vm9, 1.0, %v5236_v15  ;;  %v550_v47 = vmul.f32 %v5781_v16, %v538_v37  ;;  %v1026_v15 = vld [vmem:[#allocation10] sm:$0xff] }
 0x151   : > { %v4449_v50 = vpack.i.bf16 %v544_v41, %v541_v35  ;;  %v542_v52 = vmul.f32 %v5800_v38, %v530_v43  ;;  %v545_v58 = vmul.f32 %v5800_v38, %v533_v51  ;;  %v549_v60 = vmul.f32 %v5784_v19, %v537_v55 }
 0x152   : > { %v4459_v40 = vpack.i.bf16 %v546_v30, %v543_v29  ;;  %v4464_v54 = vpack.i.bf16 %v550_v47, %v547_v46  ;;  %v552_v61 = vmul.f32 %v5784_v19, %v540_v56  ;;  %v548_v0 = vmul.f32 %v5800_v38, %v536_v59  ;;  %s4255_s20 = smul.u32 12, %s6655_s3 }
 0x153   : > { %4450 = vrot.lane.b32.xlu0 %v4449_v50, %s5237_s15  ;;  %v4454_v63 = vpack.i.bf16 %v545_v58, %v542_v52  ;;  %v643_v2 = vpack.c.bf16 %v545_v58, %v542_v52  ;;  %v551_v4 = vmul.f32 %v5800_v38, %v539_v62  ;;  %v642_v5 = vpack.c.bf16 %v544_v41, %v541_v35  ;;  %p6659_p1 = scmp.ne.s32.totalorder %s6656_s0, 0 }
 0x154   : > { %4460 = vrot.lane.b32.xlu1 %v4459_v40, %s5237_s15  ;;  %v4474_v3 = vpack.i.bf16 %v552_v61, %v549_v60  ;;  %v644_v6 = vpack.c.bf16 %v546_v30, %v543_v29  ;;  %v647_v8 = vpack.c.bf16 %v552_v61, %v549_v60  ;;  %v645_v11 = vpack.c.bf16 %v550_v47, %v547_v46  ;;  %s3639_s5 = sadd.s32 %s6654_s23, %s4255_s20  ;;  %s5243_s23 = smov [#allocation14]  }
 0x155   : > { %665 = vmatprep.subr.bf16.mxu0 %v643_v2  ;;  %v4469_v9 = vpack.i.bf16 %v551_v4, %v548_v0  ;;  %v646_v10 = vpack.c.bf16 %v551_v4, %v548_v0  ;;  %s3949_s9 = sshll.u32 %s3639_s5, 7  ;;  %s5063_s18 = sshll.u32 %s5243_s23, 4  ;;  %s5064_s18 = int_to_ptr.vmem [resolvable:$false] %s5063_s18 }
 0x156   : > { %666 = vmatpush1.bf16.msra.mxu0 %v642_v5  ;;  %4012 = vmatprep.subr.bf16.mxu1 %v644_v6  ;;  %s5065_s6 = scalar_lea.vmem %s5064_s18, 1024 }
 0x157   : > { %4455 = vrot.lane.b32.xlu0 %v4454_v63, %s5237_s15  ;;  %667 = vmatprep.subr.bf16.mxu0 %v646_v10 }
 0x158   : > { %4465 = vrot.lane.b32.xlu1 %v4464_v54, %s5237_s15  ;;  %4013 = vmatpush3.bf16.msra.mxu1 %v644_v6  ;;  %v4814_v6 = vld [vmem:[#allocation8 + $0x8] sm:$0xff]  }
 0x159   : > { %4014 = vmatprep.subr.bf16.mxu1 %v647_v8 }
 0x15a   : > { %668 = vmatpush1.bf16.msra.mxu0 %v645_v11 }
 0x15b   : > { %4470 = vrot.lane.b32.xlu0 %v4469_v9, %s5237_s15 }
 0x15c   : > { %4475 = vrot.lane.b32.xlu1 %v4474_v3, %s5237_s15  ;;  %4015 = vmatpush3.bf16.msra.mxu1 %v647_v8 }
 0x15d   : > { %3848 = vmatmul.mubr.msk.bf16.vlgmr.msra.gmra.mrb[0].mxu0 %vm658_vm2, %v4811_v45 }
 0x15e   : > { %707 = vmatprep.mubr.bf16.mxu0 %v5235_v7 }
 0x15f   : > { %4480 = vrot.lane.b32.xlu0 %v4454_v63, %s5238_s25  ;;  %4017 = vmatmul.mubr.msk.bf16.vlgmr.msra.gmra.mrb[0].mxu1 %vm658_vm2, %v4812_v12 }
 0x160   : > { %4485 = vrot.lane.b32.xlu1 %v4459_v40, %s5238_s25  ;;  %4024 = vmatprep.mubr.msk.bf16.mxu1 %vm658_vm2, %v5823_v13 }
 0x163   : > { %4490 = vrot.lane.b32.xlu0 %v4449_v50, %s5238_s25 }
 0x164   : > { %4495 = vrot.lane.b32.xlu1 %v4469_v9, %s5238_s25 }
 0x165   : > { %3849 = vmatmul.mubr.msk.bf16.gmra.mrb[4].mxu0 %vm658_vm2, %v4812_v12 }
 0x166   : > { %815 = vmatprep.mubr.bf16.mxu0 %v5235_v7 }
 0x167   : > { %4500 = vrot.lane.b32.xlu0 %v4474_v3, %s5238_s25 }
 0x168   : > { %4505 = vrot.lane.b32.xlu1 %v4464_v54, %s5238_s25 }
 0x16b   : > { %1032 = vperm.xlu0 %4509, %v1026_v15  }
 0x16c   : > { %1037 = vperm.xlu1 %4510, %v1027_v14   ;;  %v4815_v14 = vld [vmem:[#allocation8 + $0x20] sm:$0xff]  }
 0x16f   : > { %1047 = vperm.xlu0 %4509, %v1029_v18  }
 0x170   : > { %1042 = vperm.xlu1 %4510, %v1028_v17  }
 0x1c5   : > { %v4451_v21 = vpop.permute.xlu0 %4450 }
 0x1c6   : > { %v4461_v20 = vpop.permute.xlu1 %4460  ;;  %v4453_v25 = vunpack.i.h.bf16 %v4451_v21  ;;  %v4452_v26 = vunpack.i.l.bf16 %v4451_v21 }
 0x1c7   : > { %v4463_v22 = vunpack.i.h.bf16 %v4461_v20  ;;  %v4462_v23 = vunpack.i.l.bf16 %v4461_v20 }
 0x1c9   : > { %v4456_v29 = vpop.permute.xlu0 %4455  ;;  %v587_v30 = vsel %vm577_vm10, %v4463_v22, %v4453_v25  ;;  %v586_v31 = vsel %vm577_vm10, %v4462_v23, %v4452_v26 }
 0x1ca   : > { %v4466_v27 = vpop.permute.xlu1 %4465  ;;  %v4458_v32 = vunpack.i.h.bf16 %v4456_v29  ;;  %v4457_v33 = vunpack.i.l.bf16 %v4456_v29  ;;  %v631_v42 = vpack.c.bf16 %v587_v30, %v586_v31 }
 0x1cb   : > { %v4468_v34 = vunpack.i.h.bf16 %v4466_v27  ;;  %v4467_v35 = vunpack.i.l.bf16 %v4466_v27 }
 0x1cc   : > { %v582_v40 = vsel %vm577_vm10, %v4452_v26, %v4457_v33  ;;  %v583_v41 = vsel %vm577_vm10, %v4453_v25, %v4458_v32  ;;  %v578_v45 = vsel %vm577_vm10, %v4457_v33, %v4462_v23  ;;  %v579_v46 = vsel %vm577_vm10, %v4458_v32, %v4463_v22 }
 0x1cd   : > { %v4471_v43 = vpop.permute.xlu0 %4470  ;;  %v632_v44 = vpack.c.bf16 %v583_v41, %v582_v40  ;;  %v633_v52 = vpack.c.bf16 %v579_v46, %v578_v45  ;;  %v4816_v40 = vld [vmem:[#allocation8 + $0x28] sm:$0xff]  }
 0x1ce   : > { %v4476_v36 = vpop.permute.xlu1 %4475  ;;  %v4473_v49 = vunpack.i.h.bf16 %v4471_v43  ;;  %v4472_v50 = vunpack.i.l.bf16 %v4471_v43 }
 0x1cf   : > { %v4478_v37 = vunpack.i.h.bf16 %v4476_v36  ;;  %v4477_v39 = vunpack.i.l.bf16 %v4476_v36  ;;  %783 = vmatprep.subr.bf16.mxu0 %v632_v44  ;;  %4020 = vmatprep.subr.bf16.mxu1 %v633_v52 }
 0x1d0   : > { %784 = vmatpush1.bf16.msra.mxu0 %v631_v42  ;;  %v584_v56 = vsel %vm577_vm10, %v4467_v35, %v4472_v50  ;;  %v585_v57 = vsel %vm577_vm10, %v4468_v34, %v4473_v49  ;;  %4021 = vmatpush3.bf16.msra.mxu1 %v633_v52 }
 0x1d1   : > { %v588_v47 = vsel %vm577_vm10, %v4477_v39, %v4467_v35  ;;  %v589_v48 = vsel %vm577_vm10, %v4478_v37, %v4468_v34  ;;  %v4481_v58 = vpop.permute.xlu0 %4480  ;;  %v635_v59 = vpack.c.bf16 %v585_v57, %v584_v56  ;;  %v580_v60 = vsel %vm577_vm10, %v4472_v50, %v4477_v39 }
 0x1d2   : > { %v634_v51 = vpack.c.bf16 %v589_v48, %v588_v47  ;;  %v4486_v53 = vpop.permute.xlu1 %4485  ;;  %v581_v61 = vsel %vm577_vm10, %v4473_v49, %v4478_v37  ;;  %v4483_v62 = vunpack.i.h.bf16 %v4481_v58  ;;  %v4482_v63 = vunpack.i.l.bf16 %v4481_v58 }
 0x1d3   : > { %v4488_v54 = vunpack.i.h.bf16 %v4486_v53  ;;  %v4487_v55 = vunpack.i.l.bf16 %v4486_v53  ;;  %v636_v0 = vpack.c.bf16 %v581_v61, %v580_v60  ;;  %785 = vmatprep.subr.bf16.mxu0 %v635_v59 }
 0x1d4   : > { %786 = vmatpush1.bf16.msra.mxu0 %v634_v51 }
 0x1d5   : > { %4022 = vmatprep.subr.bf16.mxu1 %v636_v0  ;;  %v615_v3 = vsel %vm614_vm11, %v4482_v63, %v4487_v55  ;;  %v616_v4 = vsel %vm614_vm11, %v4483_v62, %v4488_v54  ;;  %v4491_v5 = vpop.permute.xlu0 %4490 }
 0x1d6   : > { %v4496_v2 = vpop.permute.xlu1 %4495  ;;  %v891_v8 = vpack.c.bf16 %v616_v4, %v615_v3  ;;  %4023 = vmatpush3.bf16.msra.mxu1 %v636_v0  ;;  %v4493_v11 = vunpack.i.h.bf16 %v4491_v5  ;;  %v4492_v12 = vunpack.i.l.bf16 %v4491_v5 }
 0x1d7   : > { %v4498_v9 = vunpack.i.h.bf16 %v4496_v2  ;;  %v4497_v10 = vunpack.i.l.bf16 %v4496_v2  ;;  %3854 = vmatmul.mubr.msk.bf16.vlgmr.msra.gmra.mrb[0].mxu0 %vm658_vm2, %v5823_v13 }
 0x1d8   : > { %912 = vmatprep.subr.bf16.mxu0 %v891_v8  ;;  %v619_v17 = vsel %vm614_vm11, %v4492_v12, %v4482_v63  ;;  %v620_v18 = vsel %vm614_vm11, %v4493_v11, %v4483_v62  ;;  %825 = vmatprep.mubr.bf16.mxu0 %v5235_v7  ;;  %v623_v25 = vsel %vm614_vm11, %v4487_v55, %v4492_v12 }
 0x1d9   : > { %v890_v22 = vpack.c.bf16 %v620_v18, %v619_v17  ;;  %4025 = vmatmul.mubr.msk.bf16.vlgmr.msra.gmra.mrb[0].mxu1 %vm658_vm2, %v4814_v6  ;;  %v4501_v23 = vpop.permute.xlu0 %4500  ;;  %v624_v13 = vsel %vm614_vm11, %v4488_v54, %v4493_v11 }
 0x1da   : > { %v4506_v15 = vpop.permute.xlu1 %4505  ;;  %v4503_v29 = vunpack.i.h.bf16 %v4501_v23  ;;  %v4502_v30 = vunpack.i.l.bf16 %v4501_v23  ;;  %4032 = vmatprep.mubr.msk.bf16.mxu1 %vm658_vm2, %v4815_v14  ;;  %v892_v31 = vpack.c.bf16 %v624_v13, %v623_v25 }
 0x1db   : > { %v4508_v20 = vunpack.i.h.bf16 %v4506_v15  ;;  %v4507_v21 = vunpack.i.l.bf16 %v4506_v15  ;;  %913 = vmatpush1.bf16.msra.mxu0 %v890_v22 }
 0x1dc   : > { %v617_v34 = vsel %vm614_vm11, %v4497_v10, %v4502_v30  ;;  %v618_v35 = vsel %vm614_vm11, %v4498_v9, %v4503_v29  ;;  %4028 = vmatprep.subr.bf16.mxu1 %v892_v31 }
 0x1dd   : > { %v621_v26 = vsel %vm614_vm11, %v4507_v21, %v4497_v10  ;;  %v622_v27 = vsel %vm614_vm11, %v4508_v20, %v4498_v9  ;;  %v625_v32 = vsel %vm614_vm11, %v4502_v30, %v4507_v21  ;;  %v626_v33 = vsel %vm614_vm11, %v4503_v29, %v4508_v20  ;;  %4029 = vmatpush3.bf16.msra.mxu1 %v892_v31 }
 0x1de   : > { %v893_v36 = vpack.c.bf16 %v622_v27, %v621_v26  ;;  %v895_v37 = vpack.c.bf16 %v626_v33, %v625_v32  ;;  %v894_v39 = vpack.c.bf16 %v618_v35, %v617_v34 }
 0x1df   : > { %3855 = vmatmul.mubr.msk.bf16.gmra.mrb[4].mxu0 %vm658_vm2, %v4814_v6 }
 0x1e0   : > { %4030 = vmatprep.subr.bf16.mxu1 %v895_v37  ;;  %914 = vmatprep.subr.bf16.mxu0 %v894_v39 }
 0x1e1   : > { %944 = vmatprep.mubr.bf16.mxu0 %v5235_v7  ;;  %915 = vmatpush1.bf16.msra.mxu0 %v893_v36 }
 0x1e2   : > { %4031 = vmatpush3.bf16.msra.mxu1 %v895_v37 }
 0x1e5   : > { %4033 = vmatmul.mubr.msk.bf16.vlgmr.msra.gmra.mrb[0].mxu1 %vm658_vm2, %v4816_v40 }
 0x1e6   : > { %1239 = vmatprep.mubr.bf16.mxu1 %v5235_v7 }
 0x1e7   : > { %3860 = vmatmul.mubr.msk.bf16.vlgmr.msra.gmra.mrb[0].mxu0 %vm658_vm2, %v4815_v14 }
 0x1e8   : > { %954 = vmatprep.mubr.bf16.mxu0 %v5235_v7 }
 0x1ea   : > { %v1033_v42 = vpop.permute.xlu0 %1032 }
 0x1eb   : > { %v1038_v41 = vpop.permute.xlu1 %1037 }
 0x1ee   : > { %v1048_v45 = vpop.permute.xlu0 %1047 }
 0x1ef   : > { %3861 = vmatmul.mubr.msk.bf16.gmra.mrb[4].mxu0 %vm658_vm2, %v4816_v40  ;;  %v1043_v43 = vpop.permute.xlu1 %1042 }
 0x1f0   : > { %1796 = vmatprep.mubr.bf16.mxu0 %v5235_v7 }
 0x2b8   : > { %v4034_v44 = vpop.f32.mrb[0].mxu1 }
 0x2b9   : > { %v1058_v46 = vadd.f32 %v4034_v44, %v1043_v43  ;;  %v999_v47 = vpop.f32.mrb[1].mxu1 }
 0x2ba   : > { %v1052_v48 = vadd.f32 %v1033_v42, %v999_v47  ;;  %v4035_v49 = vpop.f32.mrb[2].mxu1  ;;  %v946_v50 = vpop.f32.mrb[0].mxu0 }
 0x2bb   : > { %v1070_v51 = vmul.f32 0.1, %v1058_v46  ;;  %v1061_v52 = vadd.f32 %v4035_v49, %v1048_v45  ;;  %v1002_v53 = vpop.f32.mrb[3].mxu1  ;;  %v1050_v54 = vadd.f32 %v1033_v42, %v946_v50  ;;  %v948_v55 = vpop.f32.mrb[1].mxu0 }
 0x2bc   : > { %v1064_v56 = vmul.f32 0.1, %v1052_v48  ;;  %v1055_v57 = vadd.f32 %v1038_v41, %v1002_v53  ;;  %v1051_v58 = vadd.f32 %v1033_v42, %v948_v55  ;;  %v950_v59 = vpop.f32.mrb[2].mxu0 }
 0x2bd   : > { %v1082_v60 = vmax.f32 %v1058_v46, %v1070_v51  ;;  %v1073_v61 = vmul.f32 0.1, %v1061_v52  ;;  %v1062_v62 = vmul.f32 0.1, %v1050_v54  ;;  %v1053_v63 = vadd.f32 %v1038_v41, %v950_v59  ;;  %v952_v0 = vpop.f32.mrb[3].mxu0 }
 0x2be   : > { %v1076_v2 = vmax.f32 %v1052_v48, %v1064_v56  ;;  %v1067_v3 = vmul.f32 0.1, %v1055_v57  ;;  %v1063_v4 = vmul.f32 0.1, %v1051_v58  ;;  %v1054_v5 = vadd.f32 %v1038_v41, %v952_v0  ;;  %v1570_v0 = vld [vmem:[#allocation13 + $0x10] sm:$0xff] }
 0x2bf   : > { %v1085_v6 = vmax.f32 %v1061_v52, %v1073_v61  ;;  %v1074_v8 = vmax.f32 %v1050_v54, %v1062_v62  ;;  %v1065_v9 = vmul.f32 0.1, %v1053_v63  ;;  %v1094_v14 = vmul.f32 %v5784_v19, %v1082_v60  ;;  %v4817_v60 = vld [vmem:[#allocation11 + $0x10] sm:$0xff]   ;;  %v4818_v61 = vld [vmem:[#allocation11 + $0x18] sm:$0xff]  }
 0x2c0   : > { %v1079_v10 = vmax.f32 %v1055_v57, %v1067_v3  ;;  %v1075_v11 = vmax.f32 %v1051_v58, %v1063_v4  ;;  %v1066_v12 = vmul.f32 0.1, %v1054_v5  ;;  %v1088_v15 = vmul.f32 %v5784_v19, %v1076_v2  ;;  %v1568_v62 = vld [vmem:[#allocation13] sm:$0xff]  ;;  %v1571_v2 = vld [vmem:[#allocation13 + $0x18] sm:$0xff] }
 0x2c1   : > { %v1097_v17 = vmul.f32 %v5784_v19, %v1085_v6  ;;  %v1077_v18 = vmax.f32 %v1053_v63, %v1065_v9  ;;  %v1086_v21 = vmul.f32 %v5781_v16, %v1074_v8  ;;  %v1569_v63 = vld [vmem:[#allocation13 + $0x8] sm:$0xff] }
 0x2c2   : > { %v1091_v20 = vmul.f32 %v5784_v19, %v1079_v10  ;;  %v1087_v22 = vmul.f32 %v5800_v38, %v1075_v11  ;;  %v1078_v23 = vmax.f32 %v1054_v5, %v1066_v12  ;;  %v956_v25 = vpop.f32.mrb[4].mxu0 }
 0x2c3   : > { %v1089_v13 = vmul.f32 %v5781_v16, %v1077_v18  ;;  %v1056_v26 = vadd.f32 %v1043_v43, %v956_v25  ;;  %v958_v27 = vpop.f32.mrb[5].mxu0  ;;  %v4536_v29 = vpack.i.bf16 %v1097_v17, %v1094_v14  ;;  %v1190_v30 = vpack.c.bf16 %v1097_v17, %v1094_v14 }
 0x2c4   : > { %v1090_v31 = vmul.f32 %v5800_v38, %v1078_v23  ;;  %v1057_v32 = vadd.f32 %v1043_v43, %v958_v27  ;;  %v4511_v33 = vpack.i.bf16 %v1091_v20, %v1088_v15  ;;  %v960_v34 = vpop.f32.mrb[6].mxu0  ;;  %v1187_v35 = vpack.c.bf16 %v1091_v20, %v1088_v15 }
 0x2c5   : > { %v1068_v36 = vmul.f32 0.1, %v1056_v26  ;;  %v1059_v37 = vadd.f32 %v1048_v45, %v960_v34  ;;  %v962_v39 = vpop.f32.mrb[7].mxu0  ;;  %v4516_v40 = vpack.i.bf16 %v1089_v13, %v1086_v21  ;;  %v1185_v41 = vpack.c.bf16 %v1089_v13, %v1086_v21 }
 0x2c6   : > { %v1069_v42 = vmul.f32 0.1, %v1057_v32  ;;  %4512 = vrot.lane.b32.xlu1 %v4511_v33, %s5237_s15  ;;  %v1060_v44 = vadd.f32 %v1048_v45, %v962_v39  ;;  %v4521_v46 = vpack.i.bf16 %v1090_v31, %v1087_v22  ;;  %v1186_v47 = vpack.c.bf16 %v1090_v31, %v1087_v22 }
 0x2c7   : > { %v1080_v48 = vmax.f32 %v1056_v26, %v1068_v36  ;;  %v1071_v49 = vmul.f32 0.1, %v1059_v37 }
 0x2c8   : > { %v1081_v50 = vmax.f32 %v1057_v32, %v1069_v42  ;;  %v1072_v51 = vmul.f32 0.1, %v1060_v44  ;;  %4522 = vrot.lane.b32.xlu0 %v4521_v46, %s5237_s15  ;;  %1207 = vmatprep.subr.bf16.mxu1 %v1186_v47 }
 0x2c9   : > { %v1083_v43 = vmax.f32 %v1059_v37, %v1071_v49  ;;  %1208 = vmatpush1.bf16.msra.mxu1 %v1185_v41  ;;  %v1092_v53 = vmul.f32 %v5781_v16, %v1080_v48 }
 0x2ca   : > { %v1084_v52 = vmax.f32 %v1060_v44, %v1072_v51  ;;  %4517 = vrot.lane.b32.xlu1 %v4516_v40, %s5237_s15  ;;  %v1093_v45 = vmul.f32 %v5800_v38, %v1081_v50 }
 0x2cb   : > { %v1095_v54 = vmul.f32 %v5781_v16, %v1083_v43 }
 0x2cc   : > { %v1096_v55 = vmul.f32 %v5800_v38, %v1084_v52 }
 0x2cd   : > { %v4526_v56 = vpack.i.bf16 %v1095_v54, %v1092_v53  ;;  %v1188_v57 = vpack.c.bf16 %v1095_v54, %v1092_v53 }
 0x2ce   : > { %v4531_v58 = vpack.i.bf16 %v1096_v55, %v1093_v45  ;;  %v1189_v59 = vpack.c.bf16 %v1096_v55, %v1093_v45 }
 0x2cf   : > { %4527 = vrot.lane.b32.xlu0 %v4526_v56, %s5237_s15 }
 0x2d0   : > { %4532 = vrot.lane.b32.xlu1 %v4531_v58, %s5237_s15  ;;  %1209 = vmatprep.subr.bf16.mxu1 %v1189_v59 }
 0x2d1   : > { %1210 = vmatpush1.bf16.msra.mxu1 %v1188_v57  ;;  %v4820_v57 = vld [vmem:[#allocation11 + $0x8] sm:$0xff]  }
 0x2d2   : > { %4036 = vmatprep.subr.bf16.mxu1 %v1187_v35 }
 0x2d3   : > { %4537 = vrot.lane.b32.xlu0 %v4536_v29, %s5237_s15 }
 0x2d4   : > { %4542 = vrot.lane.b32.xlu1 %v4521_v46, %s5238_s25  ;;  %3866 = vmatmul.mubr.msk.bf16.vlgmr.msra.gmra.mrb[4].mxu1 %vm658_vm2, %v4817_v60  ;;  %v4819_v46 = vld [vmem:[#allocation11] sm:$0xff]  }
 0x2d5   : > { %4037 = vmatpush3.bf16.msra.mxu1 %v1187_v35  ;;  %1249 = vmatprep.mubr.bf16.mxu1 %v5235_v7 }
 0x2d6   : > { %4038 = vmatprep.subr.bf16.mxu1 %v1190_v30 }
 0x2d7   : > { %4547 = vrot.lane.b32.xlu0 %v4511_v33, %s5238_s25 }
 0x2d8   : > { %4552 = vrot.lane.b32.xlu1 %v4516_v40, %s5238_s25 }
 0x2d9   : > { %4039 = vmatpush3.bf16.msra.mxu1 %v1190_v30 }
 0x2db   : > { %4562 = vrot.lane.b32.xlu0 %v4531_v58, %s5238_s25 }
 0x2dc   : > { %4557 = vrot.lane.b32.xlu1 %v4536_v29, %s5238_s25  ;;  %3867 = vmatmul.mubr.msk.bf16.gmra.mrb[8].mxu1 %vm658_vm2, %v4818_v61 }
 0x2dd   : > { %4040 = vmatprep.mubr.msk.bf16.mxu1 %vm658_vm2, %v4817_v60 }
 0x2df   : > { %4567 = vrot.lane.b32.xlu0 %v4526_v56, %s5238_s25 }
 0x2e0   : > { %1574 = vperm.xlu1 %4510, %v1568_v62  }
 0x2e3   : > { %1579 = vperm.xlu0 %4509, %v1569_v63  }
 0x2e4   : > { %1584 = vperm.xlu1 %4510, %v1570_v0   ;;  %4041 = vmatmul.mubr.msk.bf16.vlgmr.msra.gmra.mrb[12].mxu1 %vm658_vm2, %v4818_v61 }
 0x2e5   : > { %1357 = vmatprep.mubr.bf16.mxu1 %v5235_v7 }
 0x2e7   : > { %1589 = vperm.xlu0 %4509, %v1571_v2  }
 0x338   : > { %v4513_v3 = vpop.permute.xlu1 %4512 }
 0x339   : > { %v4515_v9 = vunpack.i.h.bf16 %v4513_v3  ;;  %v4514_v10 = vunpack.i.l.bf16 %v4513_v3 }
 0x33a   : > { %v4523_v4 = vpop.permute.xlu0 %4522 }
 0x33b   : > { %v4525_v5 = vunpack.i.h.bf16 %v4523_v4  ;;  %v4524_v6 = vunpack.i.l.bf16 %v4523_v4 }
 0x33c   : > { %v4518_v8 = vpop.permute.xlu1 %4517 }
 0x33d   : > { %v4520_v11 = vunpack.i.h.bf16 %v4518_v8  ;;  %v4519_v12 = vunpack.i.l.bf16 %v4518_v8  ;;  %v1122_v35 = vsel %vm577_vm10, %v4524_v6, %v4514_v10  ;;  %v1123_v36 = vsel %vm577_vm10, %v4525_v5, %v4515_v9 }
 0x33e   : > { %v1176_v44 = vpack.c.bf16 %v1123_v36, %v1122_v35 }
 0x33f   : > { %v1131_v14 = vsel %vm577_vm10, %v4515_v9, %v4520_v11  ;;  %v1130_v15 = vsel %vm577_vm10, %v4514_v10, %v4519_v12  ;;  %v1126_v17 = vsel %vm577_vm10, %v4519_v12, %v4524_v6  ;;  %v1127_v18 = vsel %vm577_vm10, %v4520_v11, %v4525_v5 }
 0x340   : > { %v1174_v20 = vpack.c.bf16 %v1131_v14, %v1130_v15  ;;  %v1175_v21 = vpack.c.bf16 %v1127_v18, %v1126_v17 }
 0x341   : > { %v4528_v22 = vpop.permute.xlu0 %4527 }
 0x342   : > { %1325 = vmatprep.subr.bf16.mxu1 %v1175_v21  ;;  %v4530_v23 = vunpack.i.h.bf16 %v4528_v22  ;;  %v4529_v25 = vunpack.i.l.bf16 %v4528_v22  ;;  %v4533_v13 = vpop.permute.xlu1 %4532  ;;  %v4821_v21 = vld [vmem:[#allocation11 + $0x20] sm:$0xff]  }
 0x343   : > { %1326 = vmatpush1.bf16.msra.mxu1 %v1174_v20  ;;  %v4535_v26 = vunpack.i.h.bf16 %v4533_v13  ;;  %v4534_v27 = vunpack.i.l.bf16 %v4533_v13  ;;  %v4822_v13 = vld [vmem:[#allocation11 + $0x28] sm:$0xff]  }
 0x345   : > { %v4538_v29 = vpop.permute.xlu0 %4537  ;;  %v1128_v30 = vsel %vm577_vm10, %v4529_v25, %v4534_v27  ;;  %v1129_v31 = vsel %vm577_vm10, %v4530_v23, %v4535_v26 }
 0x346   : > { %v4540_v32 = vunpack.i.h.bf16 %v4538_v29  ;;  %v4539_v33 = vunpack.i.l.bf16 %v4538_v29  ;;  %v1178_v34 = vpack.c.bf16 %v1129_v31, %v1128_v30  ;;  %v4543_v40 = vpop.permute.xlu1 %4542 }
 0x347   : > { %v4545_v51 = vunpack.i.h.bf16 %v4543_v40  ;;  %v4544_v43 = vunpack.i.l.bf16 %v4543_v40 }
 0x348   : > { %v1132_v37 = vsel %vm577_vm10, %v4539_v33, %v4529_v25  ;;  %v1133_v39 = vsel %vm577_vm10, %v4540_v32, %v4530_v23  ;;  %1327 = vmatprep.subr.bf16.mxu1 %v1178_v34  ;;  %v1124_v49 = vsel %vm577_vm10, %v4534_v27, %v4539_v33  ;;  %v1125_v50 = vsel %vm577_vm10, %v4535_v26, %v4540_v32  ;;  %v4847_v34 = vld [vmem:[%s5733_s30] sm:$0xff] }
 0x349   : > { %v1177_v41 = vpack.c.bf16 %v1133_v39, %v1132_v37  ;;  %v4548_v42 = vpop.permute.xlu0 %4547  ;;  %v1179_v53 = vpack.c.bf16 %v1125_v50, %v1124_v49 }
 0x34a   : > { %v4550_v47 = vunpack.i.h.bf16 %v4548_v42  ;;  %v4549_v48 = vunpack.i.l.bf16 %v4548_v42  ;;  %v4553_v52 = vpop.permute.xlu1 %4552  ;;  %v4848_v42 = vld [vmem:[%s5733_s30 + $0x8] sm:$0xff] }
 0x34b   : > { %1328 = vmatpush1.bf16.msra.mxu1 %v1177_v41  ;;  %v4555_v59 = vunpack.i.h.bf16 %v4553_v52  ;;  %v4554_v60 = vunpack.i.l.bf16 %v4553_v52 }
 0x34c   : > { %4044 = vmatprep.subr.bf16.mxu1 %v1176_v44  ;;  %v1158_v54 = vsel %vm614_vm11, %v4544_v43, %v4549_v48  ;;  %v1159_v45 = vsel %vm614_vm11, %v4545_v51, %v4550_v47 }
 0x34d   : > { %v4563_v55 = vpop.permute.xlu0 %4562  ;;  %v1433_v56 = vpack.c.bf16 %v1159_v45, %v1158_v54  ;;  %v1162_v3 = vsel %vm614_vm11, %v4554_v60, %v4544_v43  ;;  %v1163_v4 = vsel %vm614_vm11, %v4555_v59, %v4545_v51  ;;  %v1166_v15 = vsel %vm614_vm11, %v4549_v48, %v4554_v60 }
 0x34e   : > { %3872 = vmatmul.mubr.msk.bf16.vlgmr.msra.gmra.mrb[4].mxu1 %vm658_vm2, %v4819_v46  ;;  %v4558_v58 = vpop.permute.xlu1 %4557  ;;  %v4565_v61 = vunpack.i.h.bf16 %v4563_v55  ;;  %v4564_v62 = vunpack.i.l.bf16 %v4563_v55  ;;  %v1432_v10 = vpack.c.bf16 %v1163_v4, %v1162_v3  ;;  %v1167_v17 = vsel %vm614_vm11, %v4550_v47, %v4555_v59 }
 0x34f   : > { %4045 = vmatpush3.bf16.msra.mxu1 %v1176_v44  ;;  %1367 = vmatprep.mubr.bf16.mxu1 %v5235_v7  ;;  %v4560_v63 = vunpack.i.h.bf16 %v4558_v58  ;;  %v4559_v0 = vunpack.i.l.bf16 %v4558_v58  ;;  %v1434_v20 = vpack.c.bf16 %v1167_v17, %v1166_v15 }
 0x350   : > { %4046 = vmatprep.subr.bf16.mxu1 %v1179_v53 }
 0x351   : > { %v4568_v2 = vpop.permute.xlu0 %4567  ;;  %v1160_v8 = vsel %vm614_vm11, %v4564_v62, %v4559_v0  ;;  %v1161_v9 = vsel %vm614_vm11, %v4565_v61, %v4560_v63 }
 0x352   : > { %v4570_v5 = vunpack.i.h.bf16 %v4568_v2  ;;  %v4569_v6 = vunpack.i.l.bf16 %v4568_v2  ;;  %v1436_v14 = vpack.c.bf16 %v1161_v9, %v1160_v8 }
 0x353   : > { %4047 = vmatpush3.bf16.msra.mxu1 %v1179_v53 }
 0x354   : > { %1454 = vmatprep.subr.bf16.mxu1 %v1433_v56  ;;  %v1164_v11 = vsel %vm614_vm11, %v4569_v6, %v4564_v62  ;;  %v1165_v12 = vsel %vm614_vm11, %v4570_v5, %v4565_v61  ;;  %v1168_v22 = vsel %vm614_vm11, %v4559_v0, %v4569_v6  ;;  %v1169_v23 = vsel %vm614_vm11, %v4560_v63, %v4570_v5  ;;  %v4850_v63 = vld [vmem:[%s5746_s10 + $0x10] sm:$0xff]  ;;  %v4851_v6 = vld [vmem:[%s5733_s30 + $0x18] sm:$0xff] }
 0x355   : > { %v1435_v18 = vpack.c.bf16 %v1165_v12, %v1164_v11  ;;  %v1437_v25 = vpack.c.bf16 %v1169_v23, %v1168_v22  ;;  %v4852_v11 = vld [vmem:[%s5746_s10 + $0x18] sm:$0xff]  ;;  %s6657_s10 = sld [smem:[#allocation45_spill]] }
 0x356   : > { %3873 = vmatmul.mubr.msk.bf16.gmra.mrb[8].mxu1 %vm658_vm2, %v4820_v57 }
 0x357   : > { %4048 = vmatprep.mubr.msk.bf16.mxu1 %vm658_vm2, %v4819_v46 }
 0x35b   : > { %s6658_s21 = smov %s6657_s10  ;;  %s6454_s11 = scalar_lea.hbm %s6657_s10, %s3949_s9 }
 0x35e   : > { %4049 = vmatmul.mubr.msk.bf16.vlgmr.msra.gmra.mrb[12].mxu1 %vm658_vm2, %v4820_v57  ;;  %v4849_v57 = vld [vmem:[%s5733_s30 + $0x10] sm:$0xff]  ;;  %s3642_s30 = sshll.u32 %s472_s22, 4  ;;  %s6447_s30 = int_to_ptr.vmem [resolvable:$true] %s3642_s30 }
 0x35f   : > { %1455 = vmatpush1.bf16.msra.mxu1 %v1432_v10  ;;  %1486 = vmatprep.mubr.bf16.mxu1 %v5235_v7  ;;  %v5991_v26 = vpop.permute.xlu1 %1574  ;;  %p5066_p2 = scmp.lt.s32.totalorder %s6447_s30, %s5064_s18 }
 0x360   : > { %1456 = vmatprep.subr.bf16.mxu1 %v1436_v14 }
 0x362   : > { %v5994_v31 = vpop.permute.xlu0 %1579 }
 0x363   : > { %1457 = vmatpush1.bf16.msra.mxu1 %v1435_v18  ;;  %v1585_v50 = vpop.permute.xlu1 %1584 }
 0x364   : > { %4052 = vmatprep.subr.bf16.mxu1 %v1434_v20 }
 0x366   : > { %3878 = vmatmul.mubr.msk.bf16.vlgmr.msra.gmra.mrb[4].mxu1 %vm658_vm2, %v4821_v21  ;;  %v1590_v45 = vpop.permute.xlu0 %1589 }
 0x367   : > { %4053 = vmatpush3.bf16.msra.mxu1 %v1434_v20  ;;  %1496 = vmatprep.mubr.bf16.mxu1 %v5235_v7 }
 0x368   : > { %4054 = vmatprep.subr.bf16.mxu1 %v1437_v25 }
 0x36b   : > { %4055 = vmatpush3.bf16.msra.mxu1 %v1437_v25 }
 0x36e   : > { %3879 = vmatmul.mubr.msk.bf16.gmra.mrb[8].mxu1 %vm658_vm2, %v4822_v13 }
 0x36f   : > { %4056 = vmatprep.mubr.msk.bf16.mxu1 %vm658_vm2, %v4821_v21 }
 0x376   : > { %4057 = vmatmul.mubr.msk.bf16.vlgmr.msra.gmra.mrb[12].mxu1 %vm658_vm2, %v4822_v13 }
 0x377   : > { %2340 = vmatprep.mubr.bf16.mxu1 %v5235_v7 }
 0x439   : > { %v1488_v27 = vpop.f32.mrb[4].mxu1 }
 0x43a   : > { %v1592_v29 = vadd.f32 %v5991_v26, %v1488_v27  ;;  %v1490_v30 = vpop.f32.mrb[5].mxu1 }
 0x43b   : > { %v1593_v32 = vadd.f32 %v5991_v26, %v1490_v30  ;;  %v1492_v33 = vpop.f32.mrb[6].mxu1 }
 0x43c   : > { %v5998_v35 = vadd.f32 %v4847_v34, %v1592_v29  ;;  %v1595_v36 = vadd.f32 %v5994_v31, %v1492_v33  ;;  %v1494_v37 = vpop.f32.mrb[7].mxu1  ;;  %v4853_v33 = vld [vmem:[%s5753_s13 + $0x10] sm:$0xff] }
 0x43d   : > { %v6002_v39 = vadd.f32 %v1593_v32, %v5788_v24  ;;  %v1596_v40 = vadd.f32 %v5994_v31, %v1494_v37 }
 0x43e   : > { %v1616_v41 = vmul.f32 0.1, %v5998_v35  ;;  %v6007_v44 = vadd.f32 %v4848_v42, %v1595_v36  ;;  %v4854_v42 = vld [vmem:[%s5753_s13] sm:$0xff] }
 0x43f   : > { %v1617_v46 = vmul.f32 0.1, %v6002_v39  ;;  %v6011_v47 = vadd.f32 %v1596_v40, %v5791_v28 }
 0x440   : > { %v1628_v48 = vmax.f32 %v5998_v35, %v1616_v41  ;;  %v1619_v49 = vmul.f32 0.1, %v6007_v44 }
 0x441   : > { %v1629_v24 = vmax.f32 %v6002_v39, %v1617_v46  ;;  %v1620_v51 = vmul.f32 0.1, %v6011_v47  ;;  %v1498_v43 = vpop.f32.mrb[8].mxu1 }
 0x442   : > { %v1631_v52 = vmax.f32 %v6007_v44, %v1619_v49  ;;  %v1598_v53 = vadd.f32 %v1585_v50, %v1498_v43  ;;  %v1500_v54 = vpop.f32.mrb[9].mxu1  ;;  %v1640_v61 = vmul.f32 %v5781_v16, %v1628_v48 }
 0x443   : > { %v1632_v28 = vmax.f32 %v6011_v47, %v1620_v51  ;;  %v1599_v55 = vadd.f32 %v1585_v50, %v1500_v54  ;;  %v1502_v56 = vpop.f32.mrb[10].mxu1  ;;  %v1641_v3 = vmul.f32 %v5800_v38, %v1629_v24  ;;  %v4855_v24 = vld [vmem:[%s5753_s13 + $0x18] sm:$0xff] }
 0x444   : > { %v6020_v58 = vadd.f32 %v4849_v57, %v1598_v53  ;;  %v1601_v59 = vadd.f32 %v1590_v45, %v1502_v56  ;;  %v1504_v60 = vpop.f32.mrb[11].mxu1  ;;  %v1643_v62 = vmul.f32 %v5781_v16, %v1631_v52  ;;  %v4856_v53 = vld [vmem:[%s5753_s13 + $0x8] sm:$0xff]  ;;  %s5059_s13 = scalar_lea.vmem %s6447_s30, 512 }
 0x445   : > { %v6025_v0 = vadd.f32 %v4850_v63, %v1599_v55  ;;  %v1602_v2 = vadd.f32 %v1590_v45, %v1504_v60  ;;  %v1644_v4 = vmul.f32 %v5800_v38, %v1632_v28  ;;  %p5060_p8 = scmp.ne.s32.totalorder %s6447_s30, %s5059_s13  ;;  %p5067_p10 = scmp.lt.s32.totalorder %s5065_s6, %s5059_s13 }
 0x446   : > { %v1622_v5 = vmul.f32 0.1, %v6020_v58  ;;  %v6031_v8 = vadd.f32 %v4851_v6, %v1601_v59  ;;  %v6033_v9 = vpack.i.bf16 %v1643_v62, %v1640_v61  ;;  %v1742_v20 = vpack.c.bf16 %v1643_v62, %v1640_v61  ;;  %v4823_v59 = vld [vmem:[#allocation8 + $0x40] sm:$0xff]  }
 0x447   : > { %v1623_v10 = vmul.f32 0.1, %v6025_v0  ;;  %v6037_v12 = vadd.f32 %v4852_v11, %v1602_v2  ;;  %v6039_v14 = vpack.i.bf16 %v1644_v4, %v1641_v3  ;;  %v1743_v15 = vpack.c.bf16 %v1644_v4, %v1641_v3  ;;  %v4824_v11 = vld [vmem:[#allocation8 + $0x48] sm:$0xff]   ;;  %p5061_p13 = pnand %p5060_p8, %p6659_p1  ;;  %p5068_p0 = por %p5067_p10, %p5066_p2 }
 0x448   : > { %v1634_v17 = vmax.f32 %v6020_v58, %v1622_v5  ;;  %v1625_v18 = vmul.f32 0.1, %v6031_v8  ;;  %4572 = vrot.lane.b32.xlu1 %v6033_v9, %s5239_s19 }
 0x449   : > { %v1635_v21 = vmax.f32 %v6025_v0, %v1623_v10  ;;  %v1626_v22 = vmul.f32 0.1, %v6037_v12  ;;  %4577 = vrot.lane.b32.xlu0 %v6039_v14, %s5239_s19  ;;  %v4058_v23 = vpop.f32.mrb[12].mxu1  ;;  %1764 = vmatprep.subr.bf16.mxu0 %v1743_v15  ;;  %p5062_p6 = pneg %p5061_p13 }
 0x44a   : > { %v1637_v25 = vmax.f32 %v6031_v8, %v1625_v18  ;;  %v1600_v13 = vadd.f32 %v4058_v23, %v1585_v50  ;;  %v1541_v27 = vpop.f32.mrb[13].mxu1  ;;  %1765 = vmatpush1.bf16.msra.mxu0 %v1742_v20  ;;  %v1646_v40 = vmul.f32 %v5781_v16, %v1634_v17  ;;  %v2127_v17 = vld [vmem:[#allocation10 + $0x28] sm:$0xff]  ;;  %v2129_v18 = vld [vmem:[#allocation10 + $0x38] sm:$0xff]  ;;  %v2126_v20 = vld [vmem:[#allocation10 + $0x20] sm:$0xff] }
 0x44b   : > { %v1638_v29 = vmax.f32 %v6037_v12, %v1626_v22  ;;  %v1594_v30 = vadd.f32 %v5991_v26, %v1541_v27  ;;  %v4059_v32 = vpop.f32.mrb[14].mxu1  ;;  %v1647_v49 = vmul.f32 %v5800_v38, %v1635_v21  ;;  %v2128_v21 = vld [vmem:[#allocation10 + $0x30] sm:$0xff]  ;;  %p5069_p3 = pnand %p5068_p0, %p5062_p6 }
 0x44c   : > { %v6053_v34 = vadd.f32 %v4853_v33, %v1600_v13  ;;  %v1603_v36 = vadd.f32 %v4059_v32, %v1590_v45  ;;  %v1544_v37 = vpop.f32.mrb[15].mxu1  ;;  %v1649_v41 = vmul.f32 %v5781_v16, %v1637_v25 }
 0x44d   : > { %v6058_v46 = vadd.f32 %v4854_v42, %v1594_v30  ;;  %v1597_v48 = vadd.f32 %v5994_v31, %v1544_v37  ;;  %v1650_v26 = vmul.f32 %v5800_v38, %v1638_v29 }
 0x44e   : > { %v1624_v50 = vmul.f32 0.1, %v6053_v34  ;;  %v6065_v51 = vadd.f32 %v4855_v24, %v1603_v36  ;;  %v4581_v43 = vpack.i.bf16 %v1649_v41, %v1646_v40  ;;  %v1745_v55 = vpack.c.bf16 %v1649_v41, %v1646_v40 }
 0x44f   : > { %v1618_v52 = vmul.f32 0.1, %v6058_v46  ;;  %v6069_v54 = vadd.f32 %v4856_v53, %v1597_v48  ;;  %v1746_v45 = vpack.c.bf16 %v1650_v26, %v1647_v49  ;;  %v4591_v15 = vpack.i.bf16 %v1650_v26, %v1647_v49 }
 0x450   : > { %v1636_v28 = vmax.f32 %v6053_v34, %v1624_v50  ;;  %v1627_v31 = vmul.f32 0.1, %v6065_v51  ;;  %4582 = vrot.lane.b32.xlu0 %v4581_v43, %s5239_s19 }
 0x451   : > { %v1630_v56 = vmax.f32 %v6058_v46, %v1618_v52  ;;  %v1621_v57 = vmul.f32 0.1, %v6069_v54  ;;  %1766 = vmatprep.subr.bf16.mxu0 %v1746_v45 }
 0x452   : > { %v1639_v60 = vmax.f32 %v6065_v51, %v1627_v31  ;;  %1767 = vmatpush1.bf16.msra.mxu0 %v1745_v55  ;;  %v1648_v62 = vmul.f32 %v5784_v19, %v1636_v28 }
 0x453   : > { %v1633_v61 = vmax.f32 %v6069_v54, %v1621_v57  ;;  %v1642_v2 = vmul.f32 %v5784_v19, %v1630_v56 }
 0x454   : > { %v1651_v63 = vmul.f32 %v5784_v19, %v1639_v60 }
 0x455   : > { %v1645_v3 = vmul.f32 %v5784_v19, %v1633_v61  ;;  %3884 = vmatmul.mubr.msk.bf16.vlgmr.msra.gmra.mrb[8].mxu0 %vm658_vm2, %v4823_v59 }
 0x456   : > { %v4596_v4 = vpack.i.bf16 %v1651_v63, %v1648_v62  ;;  %1806 = vmatprep.mubr.bf16.mxu0 %v5235_v7  ;;  %v1747_v10 = vpack.c.bf16 %v1651_v63, %v1648_v62 }
 0x457   : > { %v4586_v5 = vpack.i.bf16 %v1645_v3, %v1642_v2  ;;  %v1744_v6 = vpack.c.bf16 %v1645_v3, %v1642_v2  ;;  %v4825_v2 = vld [vmem:[#allocation8 + $0x30] sm:$0xff]  }
 0x458   : > { %4597 = vrot.lane.b32.xlu0 %v4596_v4, %s5239_s19 }
 0x459   : > { %4587 = vrot.lane.b32.xlu1 %v4586_v5, %s5239_s19  ;;  %4060 = vmatprep.subr.bf16.mxu0 %v1744_v6 }
 0x45a   : > { %4061 = vmatpush3.bf16.msra.mxu0 %v1744_v6 }
 0x45b   : > { %4062 = vmatprep.subr.bf16.mxu0 %v1747_v10 }
 0x45c   : > { %4612 = vrot.lane.b32.xlu0 %v4586_v5, %s5240_s7 }
 0x45d   : > { %4592 = vrot.lane.b32.xlu1 %v4591_v15, %s5239_s19  ;;  %3885 = vmatmul.mubr.msk.bf16.gmra.mrb[12].mxu0 %vm658_vm2, %v4824_v11 }
 0x45e   : > { %4063 = vmatpush3.bf16.msra.mxu0 %v1747_v10  ;;  %4064 = vmatprep.mubr.msk.bf16.mxu0 %vm658_vm2, %v4823_v59 }
 0x460   : > { %4617 = vrot.lane.b32.xlu0 %v4591_v15, %s5240_s7 }
 0x461   : > { %4602 = vrot.lane.b32.xlu1 %v6039_v14, %s5240_s7 }
 0x464   : > { %4627 = vrot.lane.b32.xlu0 %v4581_v43, %s5240_s7 }
 0x465   : > { %4607 = vrot.lane.b32.xlu1 %v6033_v9, %s5240_s7  ;;  %4065 = vmatmul.mubr.msk.bf16.vlgmr.msra.gmra.mrb[16].mxu0 %vm658_vm2, %v4824_v11 }
 0x466   : > { %1914 = vmatprep.mubr.bf16.mxu0 %v5235_v7 }
 0x468   : > { %2137 = vperm.xlu0 %4509, %v2127_v17  }
 0x469   : > { %4622 = vrot.lane.b32.xlu1 %v4596_v4, %s5240_s7 }
 0x46c   : > { %2147 = vperm.xlu0 %4509, %v2129_v18  }
 0x46d   : > { %2132 = vperm.xlu1 %4510, %v2126_v20  }
 0x471   : > { %2142 = vperm.xlu1 %4510, %v2128_v21  }
 0x4ba   : > { %v4573_v22 = vpop.permute.xlu1 %4572 }
 0x4bb   : > { %v4575_v23 = vunpack.i.h.bf16 %v4573_v22  ;;  %v4574_v25 = vunpack.i.l.bf16 %v4573_v22  ;;  %v4578_v14 = vpop.permute.xlu0 %4577 }
 0x4bc   : > { %v4580_v9 = vunpack.i.h.bf16 %v4578_v14  ;;  %v4579_v13 = vunpack.i.l.bf16 %v4578_v14 }
 0x4be   : > { %v1681_v27 = vsel %vm1676_vm12, %v4574_v25, %v4579_v13  ;;  %v1682_v29 = vsel %vm1676_vm12, %v4575_v23, %v4580_v9 }
 0x4bf   : > { %v1732_v30 = vpack.c.bf16 %v1682_v29, %v1681_v27 }
 0x4c1   : > { %1882 = vmatprep.subr.bf16.mxu0 %v1732_v30 }
 0x4c2   : > { %v4583_v32 = vpop.permute.xlu0 %4582 }
 0x4c3   : > { %v4585_v26 = vunpack.i.h.bf16 %v4583_v32  ;;  %v4584_v50 = vunpack.i.l.bf16 %v4583_v32 }
 0x4ca   : > { %v4598_v33 = vpop.permute.xlu0 %4597 }
 0x4cb   : > { %v4588_v36 = vpop.permute.xlu1 %4587  ;;  %v4600_v41 = vunpack.i.h.bf16 %v4598_v33  ;;  %v4599_v42 = vunpack.i.l.bf16 %v4598_v33 }
 0x4cc   : > { %v4590_v37 = vunpack.i.h.bf16 %v4588_v36  ;;  %v4589_v40 = vunpack.i.l.bf16 %v4588_v36 }
 0x4cd   : > { %v1688_v45 = vsel %vm1676_vm12, %v4600_v41, %v4585_v26  ;;  %v1687_v28 = vsel %vm1676_vm12, %v4599_v42, %v4584_v50 }
 0x4ce   : > { %v1686_v48 = vsel %vm1676_vm12, %v4590_v37, %v4575_v23  ;;  %v1685_v49 = vsel %vm1676_vm12, %v4589_v40, %v4574_v25  ;;  %v1677_v56 = vsel %vm1676_vm12, %v4579_v13, %v4589_v40  ;;  %v1678_v57 = vsel %vm1676_vm12, %v4580_v9, %v4590_v37  ;;  %v4613_v62 = vpop.permute.xlu0 %4612  ;;  %v4826_v23 = vld [vmem:[#allocation8 + $0x38] sm:$0xff]  }
 0x4cf   : > { %v1731_v24 = vpack.c.bf16 %v1686_v48, %v1685_v49  ;;  %v4593_v43 = vpop.permute.xlu1 %4592  ;;  %v1734_v61 = vpack.c.bf16 %v1688_v45, %v1687_v28  ;;  %v1733_v63 = vpack.c.bf16 %v1678_v57, %v1677_v56  ;;  %v4615_v10 = vunpack.i.h.bf16 %v4613_v62  ;;  %v4827_v45 = vld [vmem:[#allocation8 + $0x50] sm:$0xff]   ;;  %v4828_v56 = vld [vmem:[#allocation8 + $0x58] sm:$0xff]  }
 0x4d0   : > { %v4595_v52 = vunpack.i.h.bf16 %v4593_v43  ;;  %v4594_v53 = vunpack.i.l.bf16 %v4593_v43  ;;  %v4614_v11 = vunpack.i.l.bf16 %v4613_v62 }
 0x4d1   : > { %1883 = vmatpush1.bf16.msra.mxu0 %v1731_v24 }
 0x4d2   : > { %v1683_v31 = vsel %vm1676_vm12, %v4584_v50, %v4594_v53  ;;  %v1684_v55 = vsel %vm1676_vm12, %v4585_v26, %v4595_v52  ;;  %v1679_v5 = vsel %vm1676_vm12, %v4594_v53, %v4599_v42  ;;  %v1680_v6 = vsel %vm1676_vm12, %v4595_v52, %v4600_v41  ;;  %v4618_v21 = vpop.permute.xlu0 %4617 }
 0x4d3   : > { %v4603_v59 = vpop.permute.xlu1 %4602  ;;  %v1735_v60 = vpack.c.bf16 %v1684_v55, %v1683_v31  ;;  %v1736_v17 = vpack.c.bf16 %v1680_v6, %v1679_v5  ;;  %v4620_v30 = vunpack.i.h.bf16 %v4618_v21  ;;  %v4619_v32 = vunpack.i.l.bf16 %v4618_v21 }
 0x4d4   : > { %v4605_v3 = vunpack.i.h.bf16 %v4603_v59  ;;  %v4604_v4 = vunpack.i.l.bf16 %v4603_v59 }
 0x4d5   : > { %1884 = vmatprep.subr.bf16.mxu0 %v1735_v60 }
 0x4d6   : > { %1885 = vmatpush1.bf16.msra.mxu0 %v1734_v61  ;;  %v1714_v18 = vsel %vm1713_vm13, %v4604_v4, %v4614_v11  ;;  %v1715_v20 = vsel %vm1713_vm13, %v4605_v3, %v4615_v10  ;;  %v4628_v13 = vpop.permute.xlu0 %4627 }
 0x4d7   : > { %4068 = vmatprep.subr.bf16.mxu0 %v1733_v63  ;;  %v4608_v15 = vpop.permute.xlu1 %4607  ;;  %v1990_v22 = vpack.c.bf16 %v1715_v20, %v1714_v18  ;;  %v4630_v33 = vunpack.i.h.bf16 %v4628_v13  ;;  %v4629_v36 = vunpack.i.l.bf16 %v4628_v13 }
 0x4d8   : > { %v4610_v14 = vunpack.i.h.bf16 %v4608_v15  ;;  %v4609_v9 = vunpack.i.l.bf16 %v4608_v15 }
 0x4d9   : > { %3890 = vmatmul.mubr.msk.bf16.vlgmr.msra.gmra.mrb[8].mxu0 %vm658_vm2, %v4825_v2  ;;  %v1720_v49 = vsel %vm1713_vm13, %v4629_v36, %v4619_v32  ;;  %v1721_v26 = vsel %vm1713_vm13, %v4630_v33, %v4620_v30 }
 0x4da   : > { %4069 = vmatpush3.bf16.msra.mxu0 %v1733_v63  ;;  %1924 = vmatprep.mubr.bf16.mxu0 %v5235_v7  ;;  %v1718_v37 = vsel %vm1713_vm13, %v4609_v9, %v4604_v4  ;;  %v1719_v40 = vsel %vm1713_vm13, %v4610_v14, %v4605_v3  ;;  %v1722_v24 = vsel %vm1713_vm13, %v4614_v11, %v4609_v9 }
 0x4db   : > { %4070 = vmatprep.subr.bf16.mxu0 %v1736_v17  ;;  %v4623_v25 = vpop.permute.xlu1 %4622  ;;  %v1989_v48 = vpack.c.bf16 %v1719_v40, %v1718_v37  ;;  %v1723_v43 = vsel %vm1713_vm13, %v4615_v10, %v4610_v14  ;;  %v1992_v52 = vpack.c.bf16 %v1721_v26, %v1720_v49 }
 0x4dc   : > { %v4625_v27 = vunpack.i.h.bf16 %v4623_v25  ;;  %v4624_v29 = vunpack.i.l.bf16 %v4623_v25  ;;  %v1991_v53 = vpack.c.bf16 %v1723_v43, %v1722_v24 }
 0x4de   : > { %4071 = vmatpush3.bf16.msra.mxu0 %v1736_v17  ;;  %v1716_v41 = vsel %vm1713_vm13, %v4619_v32, %v4624_v29  ;;  %v1717_v42 = vsel %vm1713_vm13, %v4620_v30, %v4625_v27  ;;  %v1724_v28 = vsel %vm1713_vm13, %v4624_v29, %v4629_v36  ;;  %v1725_v31 = vsel %vm1713_vm13, %v4625_v27, %v4630_v33 }
 0x4df   : > { %2011 = vmatprep.subr.bf16.mxu0 %v1990_v22  ;;  %v1993_v50 = vpack.c.bf16 %v1717_v42, %v1716_v41  ;;  %v1994_v55 = vpack.c.bf16 %v1725_v31, %v1724_v28 }
 0x4e1   : > { %3891 = vmatmul.mubr.msk.bf16.gmra.mrb[12].mxu0 %vm658_vm2, %v4826_v23 }
 0x4e2   : > { %4072 = vmatprep.mubr.msk.bf16.mxu0 %vm658_vm2, %v4825_v2 }
 0x4e7   : > { %v2138_v62 = vpop.permute.xlu0 %2137 }
 0x4e9   : > { %4073 = vmatmul.mubr.msk.bf16.vlgmr.msra.gmra.mrb[16].mxu0 %vm658_vm2, %v4826_v23 }
 0x4ea   : > { %2012 = vmatpush1.bf16.msra.mxu0 %v1989_v48  ;;  %2043 = vmatprep.mubr.bf16.mxu0 %v5235_v7 }
 0x4eb   : > { %2013 = vmatprep.subr.bf16.mxu0 %v1993_v50  ;;  %v2148_v27 = vpop.permute.xlu0 %2147 }
 0x4ec   : > { %v2133_v57 = vpop.permute.xlu1 %2132 }
 0x4ee   : > { %2014 = vmatpush1.bf16.msra.mxu0 %v1992_v52 }
 0x4ef   : > { %4076 = vmatprep.subr.bf16.mxu0 %v1991_v53 }
 0x4f0   : > { %v2143_v21 = vpop.permute.xlu1 %2142 }
 0x4f1   : > { %3896 = vmatmul.mubr.msk.bf16.vlgmr.msra.gmra.mrb[8].mxu0 %vm658_vm2, %v4827_v45 }
 0x4f2   : > { %4077 = vmatpush3.bf16.msra.mxu0 %v1991_v53  ;;  %2053 = vmatprep.mubr.bf16.mxu0 %v5235_v7 }
 0x4f3   : > { %4078 = vmatprep.subr.bf16.mxu0 %v1994_v55 }
 0x4f6   : > { %4079 = vmatpush3.bf16.msra.mxu0 %v1994_v55 }
 0x4f9   : > { %3897 = vmatmul.mubr.msk.bf16.gmra.mrb[12].mxu0 %vm658_vm2, %v4828_v56 }
 0x4fa   : > { %4080 = vmatprep.mubr.msk.bf16.mxu0 %vm658_vm2, %v4827_v45 }
 0x501   : > { %4081 = vmatmul.mubr.msk.bf16.vlgmr.msra.gmra.mrb[16].mxu0 %vm658_vm2, %v4828_v56 }
 0x502   : > { %2898 = vmatprep.mubr.bf16.mxu0 %v5235_v7 }
 0x5c4   : > { %v2045_v59 = vpop.f32.mrb[8].mxu0 }
 0x5c5   : > { %v2150_v60 = vadd.f32 %v2133_v57, %v2045_v59  ;;  %v2047_v61 = vpop.f32.mrb[9].mxu0 }
 0x5c6   : > { %v2151_v63 = vadd.f32 %v2133_v57, %v2047_v61  ;;  %v2049_v2 = vpop.f32.mrb[10].mxu0 }
 0x5c7   : > { %v2162_v3 = vmul.f32 0.1, %v2150_v60  ;;  %v2153_v4 = vadd.f32 %v2138_v62, %v2049_v2  ;;  %v2051_v5 = vpop.f32.mrb[11].mxu0 }
 0x5c8   : > { %v2163_v6 = vmul.f32 0.1, %v2151_v63  ;;  %v2154_v10 = vadd.f32 %v2138_v62, %v2051_v5 }
 0x5c9   : > { %v2174_v11 = vmax.f32 %v2150_v60, %v2162_v3  ;;  %v2165_v15 = vmul.f32 0.1, %v2153_v4 }
 0x5ca   : > { %v2175_v17 = vmax.f32 %v2151_v63, %v2163_v6  ;;  %v2166_v18 = vmul.f32 0.1, %v2154_v10 }
 0x5cb   : > { %v2177_v20 = vmax.f32 %v2153_v4, %v2165_v15  ;;  %v2186_v25 = vmul.f32 %v5781_v16, %v2174_v11 }
 0x5cc   : > { %v2178_v22 = vmax.f32 %v2154_v10, %v2166_v18  ;;  %v2055_v23 = vpop.f32.mrb[12].mxu0  ;;  %v2187_v29 = vmul.f32 %v5800_v38, %v2175_v17 }
 0x5cd   : > { %v2189_v14 = vmul.f32 %v5781_v16, %v2177_v20  ;;  %v2156_v9 = vadd.f32 %v2143_v21, %v2055_v23  ;;  %v2057_v13 = vpop.f32.mrb[13].mxu0 }
 0x5ce   : > { %v2190_v30 = vmul.f32 %v5800_v38, %v2178_v22  ;;  %v2157_v32 = vadd.f32 %v2143_v21, %v2057_v13  ;;  %v2059_v33 = vpop.f32.mrb[14].mxu0 }
 0x5cf   : > { %v2168_v36 = vmul.f32 0.1, %v2156_v9  ;;  %v2159_v37 = vadd.f32 %v2148_v27, %v2059_v33  ;;  %v2061_v40 = vpop.f32.mrb[15].mxu0  ;;  %v6159_v41 = vpack.i.bf16 %v2189_v14, %v2186_v25  ;;  %v2286_v42 = vpack.c.bf16 %v2189_v14, %v2186_v25  ;;  %v4829_v14 = vld [vmem:[#allocation11 + $0x40] sm:$0xff]  }
 0x5d0   : > { %v2169_v48 = vmul.f32 0.1, %v2157_v32  ;;  %v2160_v49 = vadd.f32 %v2148_v27, %v2061_v40  ;;  %v4636_v26 = vpack.i.bf16 %v2190_v30, %v2187_v29  ;;  %v2287_v50 = vpack.c.bf16 %v2190_v30, %v2187_v29  ;;  %v2671_v40 = vld [vmem:[#allocation13 + $0x28] sm:$0xff] }
 0x5d1   : > { %v2180_v24 = vmax.f32 %v2156_v9, %v2168_v36  ;;  %v2171_v43 = vmul.f32 0.1, %v2159_v37  ;;  %4632 = vrot.lane.b32.xlu1 %v6159_v41, %s5237_s15 }
 0x5d2   : > { %v2181_v52 = vmax.f32 %v2157_v32, %v2169_v48  ;;  %v2172_v53 = vmul.f32 0.1, %v2160_v49  ;;  %4637 = vrot.lane.b32.xlu0 %v4636_v26, %s5237_s15  ;;  %2308 = vmatprep.subr.bf16.mxu1 %v2287_v50  ;;  %v2670_v48 = vld [vmem:[#allocation13 + $0x20] sm:$0xff] }
 0x5d3   : > { %v2183_v45 = vmax.f32 %v2159_v37, %v2171_v43  ;;  %2309 = vmatpush1.bf16.msra.mxu1 %v2286_v42  ;;  %v2192_v55 = vmul.f32 %v5781_v16, %v2180_v24  ;;  %v4830_v37 = vld [vmem:[#allocation11 + $0x48] sm:$0xff]  }
 0x5d4   : > { %v2184_v28 = vmax.f32 %v2160_v49, %v2172_v53  ;;  %v4082_v31 = vpop.f32.mrb[16].mxu0  ;;  %v2193_v61 = vmul.f32 %v5800_v38, %v2181_v52  ;;  %v2673_v42 = vld [vmem:[#allocation13 + $0x38] sm:$0xff]  ;;  %v2672_v49 = vld [vmem:[#allocation13 + $0x30] sm:$0xff] }
 0x5d5   : > { %v2195_v56 = vmul.f32 %v5781_v16, %v2183_v45  ;;  %v2158_v59 = vadd.f32 %v4082_v31, %v2143_v21  ;;  %v2098_v60 = vpop.f32.mrb[17].mxu0 }
 0x5d6   : > { %v2196_v63 = vmul.f32 %v5800_v38, %v2184_v28  ;;  %v2152_v2 = vadd.f32 %v2133_v57, %v2098_v60  ;;  %v4083_v3 = vpop.f32.mrb[18].mxu0 }
 0x5d7   : > { %v2170_v4 = vmul.f32 0.1, %v2158_v59  ;;  %v2161_v5 = vadd.f32 %v4083_v3, %v2148_v27  ;;  %v2101_v6 = vpop.f32.mrb[19].mxu0  ;;  %v4641_v10 = vpack.i.bf16 %v2195_v56, %v2192_v55  ;;  %v2289_v11 = vpack.c.bf16 %v2195_v56, %v2192_v55 }
 0x5d8   : > { %v2164_v15 = vmul.f32 0.1, %v2152_v2  ;;  %v2155_v17 = vadd.f32 %v2138_v62, %v2101_v6  ;;  %v2290_v18 = vpack.c.bf16 %v2196_v63, %v2193_v61  ;;  %v4651_v20 = vpack.i.bf16 %v2196_v63, %v2193_v61 }
 0x5d9   : > { %v2182_v22 = vmax.f32 %v2158_v59, %v2170_v4  ;;  %v2173_v23 = vmul.f32 0.1, %v2161_v5  ;;  %4642 = vrot.lane.b32.xlu0 %v4641_v10, %s5237_s15 }
 0x5da   : > { %v2176_v21 = vmax.f32 %v2152_v2, %v2164_v15  ;;  %v2167_v25 = vmul.f32 0.1, %v2155_v17  ;;  %2310 = vmatprep.subr.bf16.mxu1 %v2290_v18 }
 0x5db   : > { %v2185_v9 = vmax.f32 %v2161_v5, %v2173_v23  ;;  %2311 = vmatpush1.bf16.msra.mxu1 %v2289_v11  ;;  %v2194_v13 = vmul.f32 %v5784_v19, %v2182_v22 }
 0x5dc   : > { %v2179_v57 = vmax.f32 %v2155_v17, %v2167_v25  ;;  %v2188_v29 = vmul.f32 %v5784_v19, %v2176_v21 }
 0x5dd   : > { %v2197_v27 = vmul.f32 %v5784_v19, %v2185_v9 }
 0x5de   : > { %v2191_v62 = vmul.f32 %v5784_v19, %v2179_v57  ;;  %3902 = vmatmul.mubr.msk.bf16.vlgmr.msra.gmra.mrb[16].mxu1 %vm658_vm2, %v4829_v14 }
 0x5df   : > { %v4656_v30 = vpack.i.bf16 %v2197_v27, %v2194_v13  ;;  %v2291_v32 = vpack.c.bf16 %v2197_v27, %v2194_v13  ;;  %2350 = vmatprep.mubr.bf16.mxu1 %v5235_v7  ;;  %v4831_v27 = vld [vmem:[#allocation11 + $0x30] sm:$0xff]  }
 0x5e0   : > { %v4646_v33 = vpack.i.bf16 %v2191_v62, %v2188_v29  ;;  %v2288_v36 = vpack.c.bf16 %v2191_v62, %v2188_v29 }
 0x5e1   : > { %4657 = vrot.lane.b32.xlu0 %v4656_v30, %s5237_s15 }
 0x5e2   : > { %4647 = vrot.lane.b32.xlu1 %v4646_v33, %s5237_s15  ;;  %4084 = vmatprep.subr.bf16.mxu1 %v2288_v36 }
 0x5e3   : > { %4085 = vmatpush3.bf16.msra.mxu1 %v2288_v36 }
 0x5e4   : > { %4086 = vmatprep.subr.bf16.mxu1 %v2291_v32 }
 0x5e5   : > { %4672 = vrot.lane.b32.xlu0 %v4646_v33, %s5238_s25 }
 0x5e6   : > { %4652 = vrot.lane.b32.xlu1 %v4651_v20, %s5237_s15  ;;  %3903 = vmatmul.mubr.msk.bf16.gmra.mrb[20].mxu1 %vm658_vm2, %v4830_v37 }
 0x5e7   : > { %4087 = vmatpush3.bf16.msra.mxu1 %v2291_v32  ;;  %4088 = vmatprep.mubr.msk.bf16.mxu1 %vm658_vm2, %v4829_v14 }
 0x5e9   : > { %4677 = vrot.lane.b32.xlu0 %v4651_v20, %s5238_s25 }
 0x5ea   : > { %4662 = vrot.lane.b32.xlu1 %v4636_v26, %s5238_s25 }
 0x5ed   : > { %4687 = vrot.lane.b32.xlu0 %v4641_v10, %s5238_s25 }
 0x5ee   : > { %4667 = vrot.lane.b32.xlu1 %v6159_v41, %s5238_s25  ;;  %4089 = vmatmul.mubr.msk.bf16.vlgmr.msra.gmra.mrb[24].mxu1 %vm658_vm2, %v4830_v37 }
 0x5ef   : > { %2458 = vmatprep.mubr.bf16.mxu1 %v5235_v7 }
 0x5f1   : > { %2681 = vperm.xlu0 %4509, %v2671_v40  }
 0x5f2   : > { %4682 = vrot.lane.b32.xlu1 %v4656_v30, %s5238_s25 }
 0x5f5   : > { %2691 = vperm.xlu0 %4509, %v2673_v42  }
 0x5f6   : > { %2676 = vperm.xlu1 %4510, %v2670_v48  }
 0x5fa   : > { %2686 = vperm.xlu1 %4510, %v2672_v49  }
 0x643   : > { %v4633_v26 = vpop.permute.xlu1 %4632 }
 0x644   : > { %v4635_v50 = vunpack.i.h.bf16 %v4633_v26  ;;  %v4634_v24 = vunpack.i.l.bf16 %v4633_v26  ;;  %v4638_v43 = vpop.permute.xlu0 %4637 }
 0x645   : > { %v4640_v52 = vunpack.i.h.bf16 %v4638_v43  ;;  %v4639_v41 = vunpack.i.l.bf16 %v4638_v43 }
 0x647   : > { %v2226_v53 = vsel %vm577_vm10, %v4634_v24, %v4639_v41  ;;  %v2227_v45 = vsel %vm577_vm10, %v4635_v50, %v4640_v52 }
 0x648   : > { %v2276_v28 = vpack.c.bf16 %v2227_v45, %v2226_v53 }
 0x64a   : > { %2426 = vmatprep.subr.bf16.mxu1 %v2276_v28 }
 0x64b   : > { %v4643_v31 = vpop.permute.xlu0 %4642 }
 0x64c   : > { %v4645_v4 = vunpack.i.h.bf16 %v4643_v31  ;;  %v4644_v5 = vunpack.i.l.bf16 %v4643_v31 }
 0x653   : > { %v4658_v55 = vpop.permute.xlu0 %4657 }
 0x654   : > { %v4648_v56 = vpop.permute.xlu1 %4647  ;;  %v4660_v61 = vunpack.i.h.bf16 %v4658_v55  ;;  %v4659_v63 = vunpack.i.l.bf16 %v4658_v55 }
 0x655   : > { %v4650_v59 = vunpack.i.h.bf16 %v4648_v56  ;;  %v4649_v60 = vunpack.i.l.bf16 %v4648_v56 }
 0x656   : > { %v2233_v17 = vsel %vm577_vm10, %v4660_v61, %v4645_v4  ;;  %v2232_v18 = vsel %vm577_vm10, %v4659_v63, %v4644_v5 }
 0x657   : > { %v2231_v2 = vsel %vm577_vm10, %v4650_v59, %v4635_v50  ;;  %v2230_v3 = vsel %vm577_vm10, %v4649_v60, %v4634_v24  ;;  %v2222_v23 = vsel %vm577_vm10, %v4639_v41, %v4649_v60  ;;  %v2223_v21 = vsel %vm577_vm10, %v4640_v52, %v4650_v59  ;;  %v4673_v57 = vpop.permute.xlu0 %4672  ;;  %v4832_v50 = vld [vmem:[#allocation11 + $0x38] sm:$0xff]  }
 0x658   : > { %v2275_v6 = vpack.c.bf16 %v2231_v2, %v2230_v3  ;;  %v4653_v10 = vpop.permute.xlu1 %4652  ;;  %v2278_v9 = vpack.c.bf16 %v2233_v17, %v2232_v18  ;;  %v2277_v13 = vpack.c.bf16 %v2223_v21, %v2222_v23  ;;  %v4675_v33 = vunpack.i.h.bf16 %v4673_v57  ;;  %v4833_v17 = vld [vmem:[#allocation11 + $0x50] sm:$0xff]   ;;  %v4834_v23 = vld [vmem:[#allocation11 + $0x58] sm:$0xff]  }
 0x659   : > { %v4655_v11 = vunpack.i.h.bf16 %v4653_v10  ;;  %v4654_v15 = vunpack.i.l.bf16 %v4653_v10  ;;  %v4674_v36 = vunpack.i.l.bf16 %v4673_v57 }
 0x65a   : > { %2427 = vmatpush1.bf16.msra.mxu1 %v2275_v6 }
 0x65b   : > { %v2228_v20 = vsel %vm577_vm10, %v4644_v5, %v4654_v15  ;;  %v2229_v22 = vsel %vm577_vm10, %v4645_v4, %v4655_v11  ;;  %v2224_v30 = vsel %vm577_vm10, %v4654_v15, %v4659_v63  ;;  %v2225_v32 = vsel %vm577_vm10, %v4655_v11, %v4660_v61  ;;  %v4678_v49 = vpop.permute.xlu0 %4677 }
 0x65c   : > { %v4663_v25 = vpop.permute.xlu1 %4662  ;;  %v2279_v14 = vpack.c.bf16 %v2229_v22, %v2228_v20  ;;  %v2280_v40 = vpack.c.bf16 %v2225_v32, %v2224_v30  ;;  %v4680_v28 = vunpack.i.h.bf16 %v4678_v49  ;;  %v4679_v31 = vunpack.i.l.bf16 %v4678_v49 }
 0x65d   : > { %v4665_v29 = vunpack.i.h.bf16 %v4663_v25  ;;  %v4664_v62 = vunpack.i.l.bf16 %v4663_v25 }
 0x65e   : > { %2428 = vmatprep.subr.bf16.mxu1 %v2279_v14 }
 0x65f   : > { %2429 = vmatpush1.bf16.msra.mxu1 %v2278_v9  ;;  %v2258_v42 = vsel %vm614_vm11, %v4664_v62, %v4674_v36  ;;  %v2259_v48 = vsel %vm614_vm11, %v4665_v29, %v4675_v33  ;;  %v4688_v41 = vpop.permute.xlu0 %4687 }
 0x660   : > { %4092 = vmatprep.subr.bf16.mxu1 %v2277_v13  ;;  %v4668_v37 = vpop.permute.xlu1 %4667  ;;  %v2534_v26 = vpack.c.bf16 %v2259_v48, %v2258_v42  ;;  %v4690_v55 = vunpack.i.h.bf16 %v4688_v41  ;;  %v4689_v56 = vunpack.i.l.bf16 %v4688_v41 }
 0x661   : > { %v4670_v43 = vunpack.i.h.bf16 %v4668_v37  ;;  %v4669_v52 = vunpack.i.l.bf16 %v4668_v37 }
 0x662   : > { %3908 = vmatmul.mubr.msk.bf16.vlgmr.msra.gmra.mrb[16].mxu1 %vm658_vm2, %v4831_v27  ;;  %v2264_v3 = vsel %vm614_vm11, %v4689_v56, %v4679_v31  ;;  %v2265_v4 = vsel %vm614_vm11, %v4690_v55, %v4680_v28 }
 0x663   : > { %4093 = vmatpush3.bf16.msra.mxu1 %v2277_v13  ;;  %2468 = vmatprep.mubr.bf16.mxu1 %v5235_v7  ;;  %v2262_v59 = vsel %vm614_vm11, %v4669_v52, %v4664_v62  ;;  %v2263_v60 = vsel %vm614_vm11, %v4670_v43, %v4665_v29  ;;  %v2266_v6 = vsel %vm614_vm11, %v4674_v36, %v4669_v52 }
 0x664   : > { %4094 = vmatprep.subr.bf16.mxu1 %v2280_v40  ;;  %v4683_v24 = vpop.permute.xlu1 %4682  ;;  %v2533_v2 = vpack.c.bf16 %v2263_v60, %v2262_v59  ;;  %v2267_v10 = vsel %vm614_vm11, %v4675_v33, %v4670_v43  ;;  %v2536_v11 = vpack.c.bf16 %v2265_v4, %v2264_v3 }
 0x665   : > { %v4685_v53 = vunpack.i.h.bf16 %v4683_v24  ;;  %v4684_v45 = vunpack.i.l.bf16 %v4683_v24  ;;  %v2535_v15 = vpack.c.bf16 %v2267_v10, %v2266_v6 }
 0x667   : > { %4095 = vmatpush3.bf16.msra.mxu1 %v2280_v40  ;;  %v2260_v61 = vsel %vm614_vm11, %v4679_v31, %v4684_v45  ;;  %v2261_v63 = vsel %vm614_vm11, %v4680_v28, %v4685_v53  ;;  %v2268_v18 = vsel %vm614_vm11, %v4684_v45, %v4689_v56  ;;  %v2269_v20 = vsel %vm614_vm11, %v4685_v53, %v4690_v55 }
 0x668   : > { %2555 = vmatprep.subr.bf16.mxu1 %v2534_v26  ;;  %v2537_v5 = vpack.c.bf16 %v2261_v63, %v2260_v61  ;;  %v2538_v22 = vpack.c.bf16 %v2269_v20, %v2268_v18 }
 0x66a   : > { %3909 = vmatmul.mubr.msk.bf16.gmra.mrb[20].mxu1 %vm658_vm2, %v4832_v50 }
 0x66b   : > { %4096 = vmatprep.mubr.msk.bf16.mxu1 %vm658_vm2, %v4831_v27 }
 0x670   : > { %v6249_v57 = vpop.permute.xlu0 %2681 }
 0x672   : > { %4097 = vmatmul.mubr.msk.bf16.vlgmr.msra.gmra.mrb[24].mxu1 %vm658_vm2, %v4832_v50 }
 0x673   : > { %2556 = vmatpush1.bf16.msra.mxu1 %v2533_v2  ;;  %2587 = vmatprep.mubr.bf16.mxu1 %v5235_v7 }
 0x674   : > { %2557 = vmatprep.subr.bf16.mxu1 %v2537_v5  ;;  %v2692_v41 = vpop.permute.xlu0 %2691 }
 0x675   : > { %v2677_v21 = vpop.permute.xlu1 %2676 }
 0x677   : > { %2558 = vmatpush1.bf16.msra.mxu1 %v2536_v11 }
 0x678   : > { %4100 = vmatprep.subr.bf16.mxu1 %v2535_v15 }
 0x679   : > { %v2687_v26 = vpop.permute.xlu1 %2686 }
 0x67a   : > { %3914 = vmatmul.mubr.msk.bf16.vlgmr.msra.gmra.mrb[16].mxu1 %vm658_vm2, %v4833_v17 }
 0x67b   : > { %4101 = vmatpush3.bf16.msra.mxu1 %v2535_v15  ;;  %2597 = vmatprep.mubr.bf16.mxu1 %v5235_v7 }
 0x67c   : > { %4102 = vmatprep.subr.bf16.mxu1 %v2538_v22 }
 0x67f   : > { %4103 = vmatpush3.bf16.msra.mxu1 %v2538_v22 }
 0x682   : > { %3915 = vmatmul.mubr.msk.bf16.gmra.mrb[20].mxu1 %vm658_vm2, %v4834_v23 }
 0x683   : > { %4104 = vmatprep.mubr.msk.bf16.mxu1 %vm658_vm2, %v4833_v17 }
 0x68a   : > { %4105 = vmatmul.mubr.msk.bf16.vlgmr.msra.gmra.mrb[24].mxu1 %vm658_vm2, %v4834_v23 }
 0x68b   : > { %3430 = vmatprep.mubr.bf16.mxu1 %v5235_v7 }
 0x74d   : > { %v2589_v25 = vpop.f32.mrb[16].mxu1 }
 0x74e   : > { %v2694_v14 = vadd.f32 %v2677_v21, %v2589_v25  ;;  %v2591_v9 = vpop.f32.mrb[17].mxu1 }
 0x74f   : > { %v2695_v13 = vadd.f32 %v2677_v21, %v2591_v9  ;;  %v2593_v27 = vpop.f32.mrb[18].mxu1 }
 0x750   : > { %v2706_v29 = vadd.f32 %v2694_v14, %v5998_v35  ;;  %v2697_v62 = vadd.f32 %v6249_v57, %v2593_v27  ;;  %v2595_v30 = vpop.f32.mrb[19].mxu1 }
 0x751   : > { %v6254_v32 = vadd.f32 %v2695_v13, %v6002_v39  ;;  %v2698_v33 = vadd.f32 %v6249_v57, %v2595_v30 }
 0x752   : > { %v2718_v36 = vmul.f32 0.1, %v2706_v29  ;;  %v2709_v37 = vadd.f32 %v2697_v62, %v6007_v44 }
 0x753   : > { %v2719_v40 = vmul.f32 0.1, %v6254_v32  ;;  %v6260_v42 = vadd.f32 %v2698_v33, %v6011_v47 }
 0x754   : > { %v2730_v48 = vmax.f32 %v2706_v29, %v2718_v36  ;;  %v2721_v49 = vmul.f32 0.1, %v2709_v37 }
 0x755   : > { %v2731_v35 = vmax.f32 %v6254_v32, %v2719_v40  ;;  %v2722_v50 = vmul.f32 0.1, %v6260_v42  ;;  %v2599_v24 = vpop.f32.mrb[20].mxu1 }
 0x756   : > { %v2733_v39 = vmax.f32 %v2709_v37, %v2721_v49  ;;  %v2700_v43 = vadd.f32 %v2687_v26, %v2599_v24  ;;  %v2601_v52 = vpop.f32.mrb[21].mxu1  ;;  %v2742_v28 = vmul.f32 %v5781_v16, %v2730_v48 }
 0x757   : > { %v2734_v53 = vmax.f32 %v6260_v42, %v2722_v50  ;;  %v2701_v44 = vadd.f32 %v2687_v26, %v2601_v52  ;;  %v2603_v45 = vpop.f32.mrb[22].mxu1  ;;  %v2743_v61 = vmul.f32 %v5800_v38, %v2731_v35 }
 0x758   : > { %v2745_v47 = vmul.f32 %v5781_v16, %v2733_v39  ;;  %v2712_v31 = vadd.f32 %v2700_v43, %v6020_v58  ;;  %v2703_v55 = vadd.f32 %v2692_v41, %v2603_v45  ;;  %v2605_v56 = vpop.f32.mrb[23].mxu1 }
 0x759   : > { %v6269_v59 = vadd.f32 %v2701_v44, %v6025_v0  ;;  %v2704_v60 = vadd.f32 %v2692_v41, %v2605_v56  ;;  %v2746_v63 = vmul.f32 %v5800_v38, %v2734_v53  ;;  %v3229_v56 = vld [vmem:[#allocation10 + $0x48] sm:$0xff] }
 0x75a   : > { %v2724_v2 = vmul.f32 0.1, %v2712_v31  ;;  %v2715_v3 = vadd.f32 %v2703_v55, %v6031_v8  ;;  %v6274_v4 = vpack.i.bf16 %v2745_v47, %v2742_v28  ;;  %v2844_v5 = vpack.c.bf16 %v2745_v47, %v2742_v28 }
 0x75b   : > { %v2725_v6 = vmul.f32 0.1, %v6269_v59  ;;  %v6278_v58 = vadd.f32 %v2704_v60, %v6037_v12  ;;  %v6280_v10 = vpack.i.bf16 %v2746_v63, %v2743_v61  ;;  %v2845_v0 = vpack.c.bf16 %v2746_v63, %v2743_v61  ;;  %v3231_v60 = vld [vmem:[#allocation10 + $0x58] sm:$0xff]  ;;  %v3228_v61 = vld [vmem:[#allocation10 + $0x40] sm:$0xff]  ;;  %v3230_v63 = vld [vmem:[#allocation10 + $0x50] sm:$0xff] }
 0x75c   : > { %v2736_v11 = vmax.f32 %v2712_v31, %v2724_v2  ;;  %v2727_v15 = vmul.f32 0.1, %v2715_v3  ;;  %4692 = vrot.lane.b32.xlu1 %v6274_v4, %s5241_s1  ;;  %v4836_v31 = vld [vmem:[#allocation8 + $0x78] sm:$0xff]  }
 0x75d   : > { %v2737_v17 = vmax.f32 %v6269_v59, %v2725_v6  ;;  %v2728_v8 = vmul.f32 0.1, %v6278_v58  ;;  %4697 = vrot.lane.b32.xlu0 %v6280_v10, %s5241_s1  ;;  %v4106_v18 = vpop.f32.mrb[24].mxu1  ;;  %2866 = vmatprep.subr.bf16.mxu0 %v2845_v0 }
 0x75e   : > { %v2739_v12 = vmax.f32 %v2715_v3, %v2727_v15  ;;  %v2702_v20 = vadd.f32 %v4106_v18, %v2687_v26  ;;  %v2642_v22 = vpop.f32.mrb[25].mxu1  ;;  %2867 = vmatpush1.bf16.msra.mxu0 %v2844_v5  ;;  %v2748_v9 = vmul.f32 %v5781_v16, %v2736_v11 }
 0x75f   : > { %v2740_v23 = vmax.f32 %v6278_v58, %v2728_v8  ;;  %v2696_v25 = vadd.f32 %v2677_v21, %v2642_v22  ;;  %v4107_v14 = vpop.f32.mrb[26].mxu1  ;;  %v2749_v36 = vmul.f32 %v5800_v38, %v2737_v17 }
 0x760   : > { %v2751_v13 = vmul.f32 %v5781_v16, %v2739_v12  ;;  %v2714_v27 = vadd.f32 %v2702_v20, %v6053_v34  ;;  %v2705_v29 = vadd.f32 %v4107_v14, %v2692_v41  ;;  %v2645_v62 = vpop.f32.mrb[27].mxu1 }
 0x761   : > { %v2708_v30 = vadd.f32 %v2696_v25, %v6058_v46  ;;  %v2699_v33 = vadd.f32 %v6249_v57, %v2645_v62  ;;  %v2752_v37 = vmul.f32 %v5800_v38, %v2740_v23  ;;  %v4835_v57 = vld [vmem:[#allocation8 + $0x70] sm:$0xff]  }
 0x762   : > { %v2726_v40 = vmul.f32 0.1, %v2714_v27  ;;  %v2717_v21 = vadd.f32 %v2705_v29, %v6065_v51  ;;  %v4701_v48 = vpack.i.bf16 %v2751_v13, %v2748_v9  ;;  %v2847_v49 = vpack.c.bf16 %v2751_v13, %v2748_v9 }
 0x763   : > { %v2720_v26 = vmul.f32 0.1, %v2708_v30  ;;  %v2711_v35 = vadd.f32 %v2699_v33, %v6069_v54  ;;  %v2848_v50 = vpack.c.bf16 %v2752_v37, %v2749_v36  ;;  %v4711_v55 = vpack.i.bf16 %v2752_v37, %v2749_v36 }
 0x764   : > { %v2738_v34 = vmax.f32 %v2714_v27, %v2726_v40  ;;  %v2729_v24 = vmul.f32 0.1, %v2717_v21  ;;  %4702 = vrot.lane.b32.xlu0 %v4701_v48, %s5241_s1 }
 0x765   : > { %v2732_v46 = vmax.f32 %v2708_v30, %v2720_v26  ;;  %v2723_v39 = vmul.f32 0.1, %v2711_v35  ;;  %2868 = vmatprep.subr.bf16.mxu0 %v2848_v50 }
 0x766   : > { %v2741_v43 = vmax.f32 %v2717_v21, %v2729_v24  ;;  %2869 = vmatpush1.bf16.msra.mxu0 %v2847_v49  ;;  %v2750_v41 = vmul.f32 %v5784_v19, %v2738_v34  ;;  %v4837_v24 = vld [vmem:[#allocation8 + $0x60] sm:$0xff]  }
 0x767   : > { %v2735_v52 = vmax.f32 %v2711_v35, %v2723_v39  ;;  %v2744_v53 = vmul.f32 %v5784_v19, %v2732_v46 }
 0x768   : > { %v2753_v51 = vmul.f32 %v5784_v19, %v2741_v43 }
 0x769   : > { %v2747_v54 = vmul.f32 %v5784_v19, %v2735_v52  ;;  %3920 = vmatmul.mubr.msk.bf16.vlgmr.msra.gmra.mrb[20].mxu0 %vm658_vm2, %v4835_v57 }
 0x76a   : > { %v4716_v44 = vpack.i.bf16 %v2753_v51, %v2750_v41  ;;  %v2849_v45 = vpack.c.bf16 %v2753_v51, %v2750_v41  ;;  %2908 = vmatprep.mubr.bf16.mxu0 %v5235_v7 }
 0x76b   : > { %v4706_v28 = vpack.i.bf16 %v2747_v54, %v2744_v53  ;;  %v2846_v47 = vpack.c.bf16 %v2747_v54, %v2744_v53 }
 0x76c   : > { %4717 = vrot.lane.b32.xlu0 %v4716_v44, %s5241_s1 }
 0x76d   : > { %4707 = vrot.lane.b32.xlu1 %v4706_v28, %s5241_s1  ;;  %4108 = vmatprep.subr.bf16.mxu0 %v2846_v47 }
 0x76e   : > { %4109 = vmatpush3.bf16.msra.mxu0 %v2846_v47  ;;  %v4838_v47 = vld [vmem:[#allocation8 + $0x68] sm:$0xff]  }
 0x76f   : > { %4110 = vmatprep.subr.bf16.mxu0 %v2849_v45 }
 0x770   : > { %4732 = vrot.lane.b32.xlu0 %v4706_v28, %s5242_s28 }
 0x771   : > { %4712 = vrot.lane.b32.xlu1 %v4711_v55, %s5241_s1  ;;  %3921 = vmatmul.mubr.msk.bf16.gmra.mrb[24].mxu0 %vm658_vm2, %v4836_v31 }
 0x772   : > { %4111 = vmatpush3.bf16.msra.mxu0 %v2849_v45  ;;  %4112 = vmatprep.mubr.msk.bf16.mxu0 %vm658_vm2, %v4835_v57 }
 0x774   : > { %4737 = vrot.lane.b32.xlu0 %v4711_v55, %s5242_s28 }
 0x775   : > { %4722 = vrot.lane.b32.xlu1 %v6280_v10, %s5242_s28 }
 0x778   : > { %4747 = vrot.lane.b32.xlu0 %v4701_v48, %s5242_s28 }
 0x779   : > { %4727 = vrot.lane.b32.xlu1 %v6274_v4, %s5242_s28  ;;  %4113 = vmatmul.mubr.msk.bf16.vlgmr.msra.gmra.mrb[28].mxu0 %vm658_vm2, %v4836_v31 }
 0x77a   : > { %3016 = vmatprep.mubr.bf16.mxu0 %v5235_v7 }
 0x77c   : > { %3239 = vperm.xlu0 %4509, %v3229_v56  }
 0x77d   : > { %4742 = vrot.lane.b32.xlu1 %v4716_v44, %s5242_s28 }
 0x780   : > { %3249 = vperm.xlu0 %4509, %v3231_v60  }
 0x781   : > { %3234 = vperm.xlu1 %4510, %v3228_v61  }
 0x785   : > { %3244 = vperm.xlu1 %4510, %v3230_v63  }
 0x7ce   : > { %v4693_v2 = vpop.permute.xlu1 %4692 }
 0x7cf   : > { %v4695_v3 = vunpack.i.h.bf16 %v4693_v2  ;;  %v4694_v5 = vunpack.i.l.bf16 %v4693_v2  ;;  %v4698_v6 = vpop.permute.xlu0 %4697 }
 0x7d0   : > { %v4700_v4 = vunpack.i.h.bf16 %v4698_v6  ;;  %v4699_v10 = vunpack.i.l.bf16 %v4698_v6 }
 0x7d2   : > { %v2783_v0 = vsel %vm2778_vm14, %v4694_v5, %v4699_v10  ;;  %v2784_v11 = vsel %vm2778_vm14, %v4695_v3, %v4700_v4 }
 0x7d3   : > { %v2834_v15 = vpack.c.bf16 %v2784_v11, %v2783_v0 }
 0x7d5   : > { %2984 = vmatprep.subr.bf16.mxu0 %v2834_v15 }
 0x7d6   : > { %v4703_v17 = vpop.permute.xlu0 %4702 }
 0x7d7   : > { %v4705_v9 = vunpack.i.h.bf16 %v4703_v17  ;;  %v4704_v13 = vunpack.i.l.bf16 %v4703_v17 }
 0x7de   : > { %v4718_v8 = vpop.permute.xlu0 %4717 }
 0x7df   : > { %v4708_v18 = vpop.permute.xlu1 %4707  ;;  %v4720_v22 = vunpack.i.h.bf16 %v4718_v8  ;;  %v4719_v23 = vunpack.i.l.bf16 %v4718_v8 }
 0x7e0   : > { %v4710_v12 = vunpack.i.h.bf16 %v4708_v18  ;;  %v4709_v20 = vunpack.i.l.bf16 %v4708_v18 }
 0x7e1   : > { %v2790_v33 = vsel %vm2778_vm14, %v4720_v22, %v4705_v9  ;;  %v2789_v36 = vsel %vm2778_vm14, %v4719_v23, %v4704_v13 }
 0x7e2   : > { %v2788_v25 = vsel %vm2778_vm14, %v4710_v12, %v4695_v3  ;;  %v2787_v14 = vsel %vm2778_vm14, %v4709_v20, %v4694_v5  ;;  %v2779_v21 = vsel %vm2778_vm14, %v4699_v10, %v4709_v20  ;;  %v2780_v48 = vsel %vm2778_vm14, %v4700_v4, %v4710_v12  ;;  %v4733_v50 = vpop.permute.xlu0 %4732 }
 0x7e3   : > { %v2833_v27 = vpack.c.bf16 %v2788_v25, %v2787_v14  ;;  %v4713_v29 = vpop.permute.xlu1 %4712  ;;  %v2836_v35 = vpack.c.bf16 %v2790_v33, %v2789_v36  ;;  %v2835_v34 = vpack.c.bf16 %v2780_v48, %v2779_v21  ;;  %v4735_v52 = vunpack.i.h.bf16 %v4733_v50  ;;  %v4839_v25 = vld [vmem:[#allocation8 + $0x80] sm:$0xff]  }
 0x7e4   : > { %v4715_v62 = vunpack.i.h.bf16 %v4713_v29  ;;  %v4714_v30 = vunpack.i.l.bf16 %v4713_v29  ;;  %v4734_v41 = vunpack.i.l.bf16 %v4733_v50 }
 0x7e5   : > { %2985 = vmatpush1.bf16.msra.mxu0 %v2833_v27  ;;  %v4840_v27 = vld [vmem:[#allocation8 + $0x88] sm:$0xff]  }
 0x7e6   : > { %v2785_v37 = vsel %vm2778_vm14, %v4704_v13, %v4714_v30  ;;  %v2786_v40 = vsel %vm2778_vm14, %v4705_v9, %v4715_v62  ;;  %v2781_v57 = vsel %vm2778_vm14, %v4714_v30, %v4719_v23  ;;  %v2782_v43 = vsel %vm2778_vm14, %v4715_v62, %v4720_v22  ;;  %v4738_v45 = vpop.permute.xlu0 %4737 }
 0x7e7   : > { %v4723_v49 = vpop.permute.xlu1 %4722  ;;  %v2837_v26 = vpack.c.bf16 %v2786_v40, %v2785_v37  ;;  %v2838_v53 = vpack.c.bf16 %v2782_v43, %v2781_v57  ;;  %v4740_v2 = vunpack.i.h.bf16 %v4738_v45  ;;  %v4739_v3 = vunpack.i.l.bf16 %v4738_v45 }
 0x7e8   : > { %v4725_v46 = vunpack.i.h.bf16 %v4723_v49  ;;  %v4724_v39 = vunpack.i.l.bf16 %v4723_v49 }
 0x7e9   : > { %2986 = vmatprep.subr.bf16.mxu0 %v2837_v26 }
 0x7ea   : > { %2987 = vmatpush1.bf16.msra.mxu0 %v2836_v35  ;;  %v2816_v54 = vsel %vm2815_vm15, %v4724_v39, %v4734_v41  ;;  %v2817_v44 = vsel %vm2815_vm15, %v4725_v46, %v4735_v52  ;;  %v4748_v60 = vpop.permute.xlu0 %4747 }
 0x7eb   : > { %4116 = vmatprep.subr.bf16.mxu0 %v2835_v34  ;;  %v4728_v51 = vpop.permute.xlu1 %4727  ;;  %v3092_v28 = vpack.c.bf16 %v2817_v44, %v2816_v54  ;;  %v4750_v5 = vunpack.i.h.bf16 %v4748_v60  ;;  %v4749_v6 = vunpack.i.l.bf16 %v4748_v60 }
 0x7ec   : > { %v4730_v55 = vunpack.i.h.bf16 %v4728_v51  ;;  %v4729_v56 = vunpack.i.l.bf16 %v4728_v51 }
 0x7ed   : > { %3926 = vmatmul.mubr.msk.bf16.vlgmr.msra.gmra.mrb[20].mxu0 %vm658_vm2, %v4837_v24  ;;  %v2822_v17 = vsel %vm2815_vm15, %v4749_v6, %v4739_v3  ;;  %v2823_v8 = vsel %vm2815_vm15, %v4750_v5, %v4740_v2 }
 0x7ee   : > { %4117 = vmatpush3.bf16.msra.mxu0 %v2835_v34  ;;  %3026 = vmatprep.mubr.bf16.mxu0 %v5235_v7  ;;  %v2820_v4 = vsel %vm2815_vm15, %v4729_v56, %v4724_v39  ;;  %v2821_v10 = vsel %vm2815_vm15, %v4730_v55, %v4725_v46  ;;  %v2824_v12 = vsel %vm2815_vm15, %v4734_v41, %v4729_v56 }
 0x7ef   : > { %4118 = vmatprep.subr.bf16.mxu0 %v2838_v53  ;;  %v4743_v31 = vpop.permute.xlu1 %4742  ;;  %v3091_v15 = vpack.c.bf16 %v2821_v10, %v2820_v4  ;;  %v2825_v20 = vsel %vm2815_vm15, %v4735_v52, %v4730_v55  ;;  %v3094_v22 = vpack.c.bf16 %v2823_v8, %v2822_v17 }
 0x7f0   : > { %v4745_v61 = vunpack.i.h.bf16 %v4743_v31  ;;  %v4744_v63 = vunpack.i.l.bf16 %v4743_v31  ;;  %v3093_v23 = vpack.c.bf16 %v2825_v20, %v2824_v12 }
 0x7f2   : > { %4119 = vmatpush3.bf16.msra.mxu0 %v2838_v53  ;;  %v2818_v0 = vsel %vm2815_vm15, %v4739_v3, %v4744_v63  ;;  %v2819_v11 = vsel %vm2815_vm15, %v4740_v2, %v4745_v61  ;;  %v2826_v14 = vsel %vm2815_vm15, %v4744_v63, %v4749_v6  ;;  %v2827_v9 = vsel %vm2815_vm15, %v4745_v61, %v4750_v5 }
 0x7f3   : > { %3113 = vmatprep.subr.bf16.mxu0 %v3092_v28  ;;  %v3095_v18 = vpack.c.bf16 %v2819_v11, %v2818_v0  ;;  %v3096_v13 = vpack.c.bf16 %v2827_v9, %v2826_v14 }
 0x7f5   : > { %3927 = vmatmul.mubr.msk.bf16.gmra.mrb[24].mxu0 %vm658_vm2, %v4838_v47 }
 0x7f6   : > { %4120 = vmatprep.mubr.msk.bf16.mxu0 %vm658_vm2, %v4837_v24 }
 0x7fb   : > { %v3240_v36 = vpop.permute.xlu0 %3239 }
 0x7fd   : > { %4121 = vmatmul.mubr.msk.bf16.vlgmr.msra.gmra.mrb[28].mxu0 %vm658_vm2, %v4838_v47 }
 0x7fe   : > { %3114 = vmatpush1.bf16.msra.mxu0 %v3091_v15  ;;  %3145 = vmatprep.mubr.bf16.mxu0 %v5235_v7 }
 0x7ff   : > { %3115 = vmatprep.subr.bf16.mxu0 %v3095_v18  ;;  %v3250_v44 = vpop.permute.xlu0 %3249 }
 0x800   : > { %v3235_v29 = vpop.permute.xlu1 %3234 }
 0x802   : > { %3116 = vmatpush1.bf16.msra.mxu0 %v3094_v22 }
 0x803   : > { %4124 = vmatprep.subr.bf16.mxu0 %v3093_v23 }
 0x804   : > { %v3245_v57 = vpop.permute.xlu1 %3244 }
 0x805   : > { %3932 = vmatmul.mubr.msk.bf16.vlgmr.msra.gmra.mrb[20].mxu0 %vm658_vm2, %v4839_v25 }
 0x806   : > { %4125 = vmatpush3.bf16.msra.mxu0 %v3093_v23  ;;  %3155 = vmatprep.mubr.bf16.mxu0 %v5235_v7 }
 0x807   : > { %4126 = vmatprep.subr.bf16.mxu0 %v3096_v13 }
 0x80a   : > { %4127 = vmatpush3.bf16.msra.mxu0 %v3096_v13 }
 0x80d   : > { %3933 = vmatmul.mubr.msk.bf16.gmra.mrb[24].mxu0 %vm658_vm2, %v4840_v27 }
 0x80e   : > { %4128 = vmatprep.mubr.msk.bf16.mxu0 %vm658_vm2, %v4839_v25 }
 0x815   : > { %4129 = vmatmul.mubr.msk.bf16.vlgmr.msra.gmra.mrb[28].mxu0 %vm658_vm2, %v4840_v27 }
 0x816   : > { %3569 = vmatprep.mubr.bf16.mxu0 %v5235_v7 }
 0x8d8   : > { %v3147_v62 = vpop.f32.mrb[20].mxu0 }
 0x8d9   : > { %v3252_v30 = vadd.f32 %v3235_v29, %v3147_v62  ;;  %v3149_v33 = vpop.f32.mrb[21].mxu0 }
 0x8da   : > { %v3253_v37 = vadd.f32 %v3235_v29, %v3149_v33  ;;  %v3151_v40 = vpop.f32.mrb[22].mxu0 }
 0x8db   : > { %v3264_v21 = vmul.f32 0.1, %v3252_v30  ;;  %v3255_v48 = vadd.f32 %v3240_v36, %v3151_v40  ;;  %v3153_v49 = vpop.f32.mrb[23].mxu0 }
 0x8dc   : > { %v3265_v26 = vmul.f32 0.1, %v3253_v37  ;;  %v3256_v35 = vadd.f32 %v3240_v36, %v3153_v49 }
 0x8dd   : > { %v3276_v50 = vmax.f32 %v3252_v30, %v3264_v21  ;;  %v3267_v34 = vmul.f32 0.1, %v3255_v48 }
 0x8de   : > { %v3277_v24 = vmax.f32 %v3253_v37, %v3265_v26  ;;  %v3268_v46 = vmul.f32 0.1, %v3256_v35 }
 0x8df   : > { %v3279_v39 = vmax.f32 %v3255_v48, %v3267_v34  ;;  %v3288_v41 = vmul.f32 %v5781_v16, %v3276_v50 }
 0x8e0   : > { %v3280_v43 = vmax.f32 %v3256_v35, %v3268_v46  ;;  %v3157_v52 = vpop.f32.mrb[24].mxu0  ;;  %v3289_v45 = vmul.f32 %v5800_v38, %v3277_v24 }
 0x8e1   : > { %v3291_v51 = vmul.f32 %v5781_v16, %v3279_v39  ;;  %v3258_v53 = vadd.f32 %v3245_v57, %v3157_v52  ;;  %v3159_v54 = vpop.f32.mrb[25].mxu0  ;;  %v3592_v52 = vld [vmem:[#allocation13 + $0x48] sm:$0xff] }
 0x8e2   : > { %v3292_v28 = vmul.f32 %v5800_v38, %v3280_v43  ;;  %v3259_v47 = vadd.f32 %v3245_v57, %v3159_v54  ;;  %v3161_v31 = vpop.f32.mrb[26].mxu0  ;;  %v4842_v43 = vld [vmem:[#allocation11 + $0x78] sm:$0xff]  }
 0x8e3   : > { %v3270_v55 = vmul.f32 0.1, %v3258_v53  ;;  %v3261_v56 = vadd.f32 %v3250_v44, %v3161_v31  ;;  %v3163_v60 = vpop.f32.mrb[27].mxu0  ;;  %v4756_v61 = vpack.i.bf16 %v3291_v51, %v3288_v41  ;;  %v3378_v5 = vpack.c.bf16 %v3291_v51, %v3288_v41  ;;  %v3591_v41 = vld [vmem:[#allocation13 + $0x40] sm:$0xff]  ;;  %v3593_v51 = vld [vmem:[#allocation13 + $0x50] sm:$0xff] }
 0x8e4   : > { %v3271_v63 = vmul.f32 0.1, %v3259_v47  ;;  %v3262_v2 = vadd.f32 %v3250_v44, %v3163_v60  ;;  %v3379_v3 = vpack.c.bf16 %v3292_v28, %v3289_v45  ;;  %v4761_v10 = vpack.i.bf16 %v3292_v28, %v3289_v45 }
 0x8e5   : > { %v3282_v6 = vmax.f32 %v3258_v53, %v3270_v55  ;;  %v3273_v4 = vmul.f32 0.1, %v3261_v56  ;;  %4757 = vrot.lane.b32.xlu0 %v4756_v61, %s5238_s25  ;;  %4752 = vrot.lane.b32.xlu1 %v4756_v61, %s5237_s15 }
 0x8e6   : > { %v3283_v0 = vmax.f32 %v3259_v47, %v3271_v63  ;;  %v3274_v11 = vmul.f32 0.1, %v3262_v2  ;;  %3398 = vmatprep.subr.bf16.mxu1 %v3379_v3 }
 0x8e7   : > { %v3285_v15 = vmax.f32 %v3261_v56, %v3273_v4  ;;  %3399 = vmatpush1.bf16.msra.mxu1 %v3378_v5  ;;  %v3294_v18 = vmul.f32 %v5781_v16, %v3282_v6 }
 0x8e8   : > { %v3286_v17 = vmax.f32 %v3262_v2, %v3274_v11  ;;  %v4130_v8 = vpop.f32.mrb[28].mxu0  ;;  %v3295_v23 = vmul.f32 %v5800_v38, %v3283_v0 }
 0x8e9   : > { %v3297_v12 = vmul.f32 %v5781_v16, %v3285_v15  ;;  %v3260_v20 = vadd.f32 %v4130_v8, %v3245_v57  ;;  %4762 = vrot.lane.b32.xlu0 %v4761_v10, %s5237_s15  ;;  %v3200_v22 = vpop.f32.mrb[29].mxu0 }
 0x8ea   : > { %v3298_v25 = vmul.f32 %v5800_v38, %v3286_v17  ;;  %v3254_v14 = vadd.f32 %v3235_v29, %v3200_v22  ;;  %v4131_v9 = vpop.f32.mrb[30].mxu0  ;;  %v4841_v38 = vld [vmem:[#allocation11 + $0x70] sm:$0xff]  }
 0x8eb   : > { %v3272_v13 = vmul.f32 0.1, %v3260_v20  ;;  %v3263_v27 = vadd.f32 %v4131_v9, %v3250_v44  ;;  %v3203_v62 = vpop.f32.mrb[31].mxu0  ;;  %v4771_v30 = vpack.i.bf16 %v3297_v12, %v3294_v18  ;;  %v3380_v33 = vpack.c.bf16 %v3297_v12, %v3294_v18 }
 0x8ec   : > { %v3266_v37 = vmul.f32 0.1, %v3254_v14  ;;  %v3257_v40 = vadd.f32 %v3240_v36, %v3203_v62  ;;  %v3381_v21 = vpack.c.bf16 %v3298_v25, %v3295_v23  ;;  %v4776_v48 = vpack.i.bf16 %v3298_v25, %v3295_v23 }
 0x8ed   : > { %v3284_v16 = vmax.f32 %v3260_v20, %v3272_v13  ;;  %v3275_v49 = vmul.f32 0.1, %v3263_v27  ;;  %4767 = vrot.lane.b32.xlu0 %v4761_v10, %s5238_s25  ;;  %4772 = vrot.lane.b32.xlu1 %v4771_v30, %s5237_s15 }
 0x8ee   : > { %v3278_v26 = vmax.f32 %v3254_v14, %v3266_v37  ;;  %v3269_v35 = vmul.f32 0.1, %v3257_v40  ;;  %3400 = vmatprep.subr.bf16.mxu1 %v3381_v21 }
 0x8ef   : > { %v3287_v29 = vmax.f32 %v3263_v27, %v3275_v49  ;;  %3401 = vmatpush1.bf16.msra.mxu1 %v3380_v33  ;;  %v3296_v34 = vmul.f32 %v5784_v19, %v3284_v16 }
 0x8f0   : > { %v3281_v50 = vmax.f32 %v3257_v40, %v3269_v35  ;;  %v3290_v36 = vmul.f32 %v5784_v19, %v3278_v26 }
 0x8f1   : > { %v3299_v24 = vmul.f32 %v5784_v19, %v3287_v29  ;;  %4777 = vrot.lane.b32.xlu0 %v4776_v48, %s5237_s15 }
 0x8f2   : > { %v3293_v46 = vmul.f32 %v5784_v19, %v3281_v50  ;;  %3938 = vmatmul.mubr.msk.bf16.vlgmr.msra.gmra.mrb[28].mxu1 %vm658_vm2, %v4841_v38  ;;  %v3594_v19 = vld [vmem:[#allocation13 + $0x58] sm:$0xff] }
 0x8f3   : > { %v4786_v39 = vpack.i.bf16 %v3299_v24, %v3296_v34  ;;  %3438 = vmatprep.mubr.bf16.mxu1 %v5235_v7 }
 0x8f4   : > { %v4791_v57 = vpack.i.bf16 %v3293_v46, %v3290_v36 }
 0x8f5   : > { %4782 = vrot.lane.b32.xlu0 %v4776_v48, %s5238_s25  ;;  %4787 = vrot.lane.b32.xlu1 %v4786_v39, %s5237_s15 }
 0x8f9   : > { %4807 = vrot.lane.b32.xlu0 %v4771_v30, %s5238_s25  ;;  %4792 = vrot.lane.b32.xlu1 %v4791_v57, %s5237_s15 }
 0x8fa   : > { %3939 = vmatmul.mubr.msk.bf16.gmra.mrb[32].mxu1 %vm658_vm2, %v4842_v43 }
 0x8fb   : > { %3495 = vmatprep.mubr.bf16.mxu1 %v5235_v7 }
 0x8fd   : > { %3602 = vperm.xlu0 %4509, %v3592_v52   ;;  %4797 = vrot.lane.b32.xlu1 %v4791_v57, %s5238_s25  ;;  %v4843_v52 = vld [vmem:[#allocation11 + $0x60] sm:$0xff]  }
 0x901   : > { %3612 = vperm.xlu0 %4509, %v3594_v19   ;;  %4802 = vrot.lane.b32.xlu1 %v4786_v39, %s5238_s25 }
 0x905   : > { %3597 = vperm.xlu1 %4510, %v3591_v41  }
 0x909   : > { %3607 = vperm.xlu1 %4510, %v3593_v51  }
 0x957   : > { %v4758_v53 = vpop.permute.xlu0 %4757  ;;  %v4753_v54 = vpop.permute.xlu1 %4752 }
 0x958   : > { %v4755_v45 = vunpack.i.h.bf16 %v4753_v54  ;;  %v4754_v28 = vunpack.i.l.bf16 %v4753_v54  ;;  %v4760_v13 = vunpack.i.h.bf16 %v4758_v53  ;;  %v4759_v27 = vunpack.i.l.bf16 %v4758_v53 }
 0x95b   : > { %v4763_v44 = vpop.permute.xlu0 %4762 }
 0x95c   : > { %v4765_v47 = vunpack.i.h.bf16 %v4763_v44  ;;  %v4764_v31 = vunpack.i.l.bf16 %v4763_v44 }
 0x95e   : > { %v3324_v55 = vsel %vm577_vm10, %v4754_v28, %v4764_v31  ;;  %v3325_v56 = vsel %vm577_vm10, %v4755_v45, %v4765_v47  ;;  %v4846_v47 = vld [vmem:[#allocation11 + $0x88] sm:$0xff]  }
 0x95f   : > { %v4768_v60 = vpop.permute.xlu0 %4767  ;;  %v3370_v61 = vpack.c.bf16 %v3325_v56, %v3324_v55  ;;  %v4773_v63 = vpop.permute.xlu1 %4772 }
 0x960   : > { %v4775_v10 = vunpack.i.h.bf16 %v4773_v63  ;;  %v4774_v0 = vunpack.i.l.bf16 %v4773_v63  ;;  %v4770_v22 = vunpack.i.h.bf16 %v4768_v60  ;;  %v4769_v23 = vunpack.i.l.bf16 %v4768_v60 }
 0x961   : > { %3463 = vmatprep.subr.bf16.mxu1 %v3370_v61 }
 0x962   : > { %v3361_v16 = vsel %vm614_vm11, %v4760_v13, %v4770_v22  ;;  %v3360_v49 = vsel %vm614_vm11, %v4759_v27, %v4769_v23 }
 0x963   : > { %v4778_v2 = vpop.permute.xlu0 %4777  ;;  %v3517_v39 = vpack.c.bf16 %v3361_v16, %v3360_v49 }
 0x964   : > { %v4780_v3 = vunpack.i.h.bf16 %v4778_v2  ;;  %v4779_v5 = vunpack.i.l.bf16 %v4778_v2 }
 0x966   : > { %v3326_v15 = vsel %vm577_vm10, %v4774_v0, %v4779_v5  ;;  %v3327_v17 = vsel %vm577_vm10, %v4775_v10, %v4780_v3 }
 0x967   : > { %v4788_v6 = vpop.permute.xlu1 %4787  ;;  %v4783_v4 = vpop.permute.xlu0 %4782  ;;  %v3372_v33 = vpack.c.bf16 %v3327_v17, %v3326_v15 }
 0x968   : > { %v4790_v8 = vunpack.i.h.bf16 %v4788_v6  ;;  %v4789_v18 = vunpack.i.l.bf16 %v4788_v6  ;;  %v4785_v50 = vunpack.i.h.bf16 %v4783_v4  ;;  %v4784_v34 = vunpack.i.l.bf16 %v4783_v4 }
 0x96a   : > { %v3331_v37 = vsel %vm577_vm10, %v4790_v8, %v4775_v10  ;;  %v3330_v40 = vsel %vm577_vm10, %v4789_v18, %v4774_v0 }
 0x96b   : > { %v4793_v11 = vpop.permute.xlu1 %4792  ;;  %v4808_v25 = vpop.permute.xlu0 %4807  ;;  %v3371_v24 = vpack.c.bf16 %v3331_v37, %v3330_v40 }
 0x96c   : > { %v4795_v12 = vunpack.i.h.bf16 %v4793_v11  ;;  %v4794_v20 = vunpack.i.l.bf16 %v4793_v11  ;;  %v4810_v26 = vunpack.i.h.bf16 %v4808_v25  ;;  %v4809_v35 = vunpack.i.l.bf16 %v4808_v25 }
 0x96e   : > { %v3329_v14 = vsel %vm577_vm10, %v4795_v12, %v4755_v45  ;;  %v3328_v9 = vsel %vm577_vm10, %v4794_v20, %v4754_v28  ;;  %v3362_v19 = vsel %vm614_vm11, %v4809_v35, %v4784_v34  ;;  %v3363_v41 = vsel %vm614_vm11, %v4810_v26, %v4785_v50  ;;  %v4844_v45 = vld [vmem:[#allocation11 + $0x80] sm:$0xff]   ;;  %v4845_v28 = vld [vmem:[#allocation11 + $0x68] sm:$0xff]  }
 0x96f   : > { %v3369_v62 = vpack.c.bf16 %v3329_v14, %v3328_v9  ;;  %v4798_v30 = vpop.permute.xlu1 %4797  ;;  %v3519_v44 = vpack.c.bf16 %v3363_v41, %v3362_v19 }
 0x970   : > { %v4800_v21 = vunpack.i.h.bf16 %v4798_v30  ;;  %v4799_v48 = vunpack.i.l.bf16 %v4798_v30 }
 0x971   : > { %3464 = vmatpush1.bf16.msra.mxu1 %v3369_v62 }
 0x972   : > { %3465 = vmatprep.subr.bf16.mxu1 %v3372_v33  ;;  %v3356_v38 = vsel %vm614_vm11, %v4769_v23, %v4799_v48  ;;  %v3357_v29 = vsel %vm614_vm11, %v4770_v22, %v4800_v21 }
 0x973   : > { %v4803_v36 = vpop.permute.xlu1 %4802  ;;  %v3518_v46 = vpack.c.bf16 %v3357_v29, %v3356_v38 }
 0x974   : > { %v4805_v57 = vunpack.i.h.bf16 %v4803_v36  ;;  %v4804_v43 = vunpack.i.l.bf16 %v4803_v36 }
 0x975   : > { %3466 = vmatpush1.bf16.msra.mxu1 %v3371_v24  ;;  %3537 = vmatprep.subr.bf16.mxu0 %v3518_v46 }
 0x976   : > { %3538 = vmatpush1.bf16.msra.mxu0 %v3517_v39  ;;  %v3358_v51 = vsel %vm614_vm11, %v4784_v34, %v4804_v43  ;;  %v3359_v53 = vsel %vm614_vm11, %v4785_v50, %v4805_v57 }
 0x977   : > { %v3520_v54 = vpack.c.bf16 %v3359_v53, %v3358_v51 }
 0x978   : > { %3942 = vmatmul.mubr.msk.bf16.vlgmr.msra.gmra.mrb[36].mxu1 %vm658_vm2, %v4843_v52 }
 0x979   : > { %3539 = vmatprep.subr.bf16.mxu0 %v3520_v54  ;;  %3503 = vmatprep.mubr.bf16.mxu1 %v5235_v7 }
 0x97a   : > { %3540 = vmatpush1.bf16.msra.mxu0 %v3519_v44 }
 0x97c   : > { %v3603_v25 = vpop.permute.xlu0 %3602 }
 0x97d   : > { %3946 = vmatmul.mubr.msk.bf16.vlgmr.msra.gmra.mrb[32].mxu0 %vm658_vm2, %v4844_v45 }
 0x97e   : > { %3577 = vmatprep.mubr.bf16.mxu0 %v5235_v7 }
 0x980   : > { %3943 = vmatmul.mubr.msk.bf16.gmra.mrb[40].mxu1 %vm658_vm2, %v4845_v28  ;;  %v3613_v35 = vpop.permute.xlu0 %3612 }
 0x984   : > { %v3598_v15 = vpop.permute.xlu1 %3597 }
 0x985   : > { %3947 = vmatmul.mubr.msk.bf16.gmra.mrb[36].mxu0 %vm658_vm2, %v4846_v47 }
 0x988   : > { %v3608_v16 = vpop.permute.xlu1 %3607 }
 0x9c5   : > { %v3432_v1 = vpop.f32.mrb[28].mxu1 }
 0x9c6   : > { %v3433_v31 = vpop.f32.mrb[29].mxu1 }
 0x9c7   : > { %v3435_v55 = vpop.f32.mrb[30].mxu1 }
 0x9c8   : > { %v3436_v56 = vpop.f32.mrb[31].mxu1 }
 0x9cd   : > { %v3440_v60 = vpop.f32.mrb[32].mxu1 }
 0x9ce   : > { %v3441_v61 = vpop.f32.mrb[33].mxu1 }
 0x9cf   : > { %v3443_v63 = vpop.f32.mrb[34].mxu1 }
 0x9d0   : > { %v3444_v2 = vpop.f32.mrb[35].mxu1 }
 0xa4b   : > { %v3497_v3 = vpop.f32.mrb[36].mxu1 }
 0xa4c   : > { %v3498_v5 = vpop.f32.mrb[37].mxu1 }
 0xa4d   : > { %v3499_v6 = vadd.f32 %v3498_v5, %v3433_v31  ;;  %v3500_v4 = vpop.f32.mrb[38].mxu1 }
 0xa4e   : > { %v3501_v10 = vpop.f32.mrb[39].mxu1 }
 0xa4f   : > { %v3502_v0 = vadd.f32 %v3501_v10, %v3436_v56 }
 0xa50   : > { %v3571_v7 = vpop.f32.mrb[32].mxu0 }
 0xa51   : > { %v3572_v11 = vpop.f32.mrb[33].mxu0 }
 0xa52   : > { %v3586_v17 = vadd.f32 %v3572_v11, %v3499_v6  ;;  %v3574_v8 = vpop.f32.mrb[34].mxu0 }
 0xa53   : > { %v3505_v18 = vpop.f32.mrb[40].mxu1  ;;  %v3575_v12 = vpop.f32.mrb[35].mxu0 }
 0xa54   : > { %v3615_v20 = vadd.f32 %v3598_v15, %v3586_v17  ;;  %v3587_v22 = vadd.f32 %v3575_v12, %v3502_v0  ;;  %v3506_v23 = vpop.f32.mrb[41].mxu1 }
 0xa55   : > { %v3507_v14 = vadd.f32 %v3506_v23, %v3441_v61  ;;  %v3508_v9 = vpop.f32.mrb[42].mxu1 }
 0xa56   : > { %v3619_v13 = vadd.f32 %v3615_v20, %v6254_v32  ;;  %v3616_v27 = vadd.f32 %v3603_v25, %v3587_v22  ;;  %v3509_v62 = vpop.f32.mrb[43].mxu1 }
 0xa57   : > { %v3510_v30 = vadd.f32 %v3509_v62, %v3444_v2 }
 0xa58   : > { %3623 = vst [vmem:[%s472_s22] sm:$0xff] %v3619_v13  ;;  %v3620_v33 = vadd.f32 %v3616_v27, %v6260_v42  ;;  %v3579_v37 = vpop.f32.mrb[36].mxu0 }
 0xa59   : > { %v3580_v40 = vpop.f32.mrb[37].mxu0 }
 0xa5a   : > { %3624 = vst [vmem:[%s472_s22 + $0x8] sm:$0xff] %v3620_v33  ;;  %v3588_v21 = vadd.f32 %v3580_v40, %v3507_v14  ;;  %v3582_v48 = vpop.f32.mrb[38].mxu0 }
 0xa5b   : > { %v3583_v49 = vpop.f32.mrb[39].mxu0 }
 0xa5c   : > { %v3617_v32 = vadd.f32 %v3608_v16, %v3588_v21  ;;  %v3589_v26 = vadd.f32 %v3583_v49, %v3510_v30 }
 0xa5e   : > { %v3621_v42 = vadd.f32 %v3617_v32, %v6269_v59  ;;  %v3618_v38 = vadd.f32 %v3613_v35, %v3589_v26 }
 0xa60   : > { %3625 = vst [vmem:[%s472_s22 + $0x10] sm:$0xff] %v3621_v42  ;;  %v3622_v29 = vadd.f32 %v3618_v38, %v6278_v58 }
 0xa62   : > { %3626 = vst [vmem:[%s472_s22 + $0x18] sm:$0xff] %v3622_v29 }
 0xa63   : > { %5072 = shalt.err (!%p5069_p3)
}
 0xa64   : > { %s5073_s26 = scalar_lea.hbm %s6454_s11, 512  ;;  %s5077_s25 = scalar_lea.hbm %s6658_s21, 3072 }
 0xa65   : > { %p5074_p4 = scmp.ne.s32.totalorder %s6454_s11, %s5073_s26  ;;  %p5078_p11 = scmp.lt.u32.totalorder %s6454_s11, %s6658_s21 }
 0xa66   : > { %p5079_p12 = scmp.lt.u32.totalorder %s5077_s25, %s5073_s26  ;;  %p5081_p8 = scmp.lt.u32.totalorder %s5073_s26, %s6454_s11 }
 0xa67   : > { %p5075_p9 = pnand %p5074_p4, %p6659_p1 }
 0xa68   : > { %p5080_p5 = por %p5079_p12, %p5078_p11 }
 0xa69   : > { %p5076_p7 = pneg %p5075_p9 }
 0xa6a   : > { %p5082_p13 = por %p5081_p8, %p5080_p5 }
 0xa6c   : > { %p5083_p6 = pnand %p5082_p13, %p5076_p7 }
 0xa6e   : > { %5086 = shalt.err (!%p5083_p6)
}
 0xa6f   : > { %s5244_s1 = smov 128   ;;  %s5245_s28 = smov 384  }
 0xa70   : > { %s5246_s3 = smov 8  }
 0xa71   : > { %4278 = dma.vmem_to_hbm [thread:$0]  (%p6659_p1), %s6447_s30, 512, %s6454_s11, %s6458_s12, %s5244_s1, %s5245_s28, %s5246_s3  }
 0xa72 PF: > { %s6660_s20 = sld [smem:[#allocation24_spill]]  ;;  %s6661_s22 = sld [smem:[#allocation35_spill]] }
 0xa73   : > { %p4316_p2 = scmp.ge.s32.totalorder %s5221_s14, 2 }
 0xa78   : > { %s3657_s5 = sand.u32 1, %s6660_s20   ;;  %p6662_p10 = scmp.ne.s32.totalorder %s6661_s22, 0 }
 0xa79   : > { %s3658_s9 = scalar_lea.sflag [#allocation4], %s3657_s5 }
 0xa7a   : > { %p4304_p0 = pnand %p4316_p2, %p6662_p10 }
 0xa7c   : > { %5164 = dma.done.wait (!%p4304_p0), %s3658_s9, 512  }
 0xa7d   : > { %5166 = vsyncadd (!%p4304_p0), %s3658_s9, 4294966784  ;;  %s28_s14 = sadd.s32 1, %s5221_s14   ;;  %s6664_s4 = sld [smem:[#allocation22_spill]] }
 0xa7e   : > { %p6487_p3 = scmp.ge.s32.totalorder %s28_s14, 8   ;;  %s6665_s25 = sld [smem:[#allocation23_spill]] }
 0xa7f   : > { %s6666_s27 = sld [smem:[#allocation25_spill]]  ;;  %s6667_s30 = smov %s5612_s24 }
 0xa80   : > { %s6668_s0 = sld [smem:[#allocation26_spill]]  ;;  %s6669_s9 = sld [smem:[#allocation37_spill]] }
 0xa81   : > { %s6670_s10 = sld [smem:[#allocation29_spill]]  ;;  %s6671_s11 = sld [smem:[#allocation30_spill]] }
 0xa82   : > { %s6672_s12 = sld [smem:[#allocation32_spill]]  ;;  %s6673_s13 = sld [smem:[#allocation36_spill]] }
 0xa83   : > { %s6674_s24 = smov %s6664_s4  ;;  %s6675_s26 = smov %s6693_s2 }
 0xa84   : > { %s6676_s28 = smov %s5189_s29  ;;  %s6677_s29 = smov %s6667_s30 }
 0xa85   : > { %s6678_s30 = smov %s5197_s8  ;;  %27 = sbr.rel (!%p6487_p3) target bundleno = 23 (0x17), region = 153 }
 0xa86   : > { %s6679_s8 = smov %s6668_s0 }
 0xa8c   :  { %3663 = vsyncpa [#allocation3], 1 }
 0xa8d   :  { %3665 = vsyncpa [#allocation3 + $0x1], 1 }
 0xa8e   :  { %3666 = vsyncpa [#allocation6], 1 }
 0xa8f   :  { %3668 = vsyncpa [#allocation6 + $0x1], 1 }
 0xa90   :  { %3669 = vsyncpa [#allocation9], 1 }
 0xa91   :  { %3670 = vsyncpa [#allocation12], 1 }
 0xa92   :  { %3671 = vsyncpa [#allocation4], 1 }
 0xa93   :  { %3673 = vsyncpa [#allocation4 + $0x1], 1 }

</bundles_post_ra>
